<compile_context>
chip_gen: v5e
topology: v5e:2x2
jax: 0.10.0
libtpu: 0.0.40
codegen_flags: <defaults>
</compile_context>

<pallas_src>
import functools
import math

import jax
import jax.numpy as jnp
from jax.experimental import pallas as pl
from jax.experimental.pallas import tpu as pltpu


# ------------------------------ small helpers -------------------------------

def _round_up(n, m):
    return ((n + m - 1) // m) * m


def _erf(x):
    # Abramowitz & Stegun 7.1.26 (|err| < 1.5e-7), built only from ops that
    # lower cleanly in Mosaic (abs / exp / where).
    z = jnp.abs(x)
    t = 1.0 / (1.0 + 0.3275911 * z)
    poly = ((((1.061405429 * t - 1.453152027) * t + 1.421413741) * t
             - 0.284496736) * t + 0.254829592) * t
    y = 1.0 - poly * jnp.exp(-z * z)
    return jnp.where(x < 0, -y, y)


def _gelu_exact(x):
    # Matches PyTorch nn.GELU default (erf form), not the tanh approximation.
    return 0.5 * x * (1.0 + _erf(x * 0.7071067811865475))


def _ln(x, g, b):
    mu = jnp.mean(x, axis=-1, keepdims=True)
    var = jnp.mean(jnp.square(x - mu), axis=-1, keepdims=True)
    return (x - mu) * jax.lax.rsqrt(var + 1e-5) * g + b


# --------------------------- tiled matmul kernel -----------------------------

def _matmul_kernel(x_ref, w_ref, b_ref, o_ref, acc_ref, *, act):
    @pl.when(pl.program_id(2) == 0)
    def _():
        acc_ref[...] = jnp.zeros_like(acc_ref)

    acc_ref[...] += jnp.dot(x_ref[...], w_ref[...],
                            preferred_element_type=jnp.float32)

    @pl.when(pl.program_id(2) == pl.num_programs(2) - 1)
    def _():
        y = acc_ref[...] + b_ref[...]
        if act == "silu":
            y = y * jax.nn.sigmoid(y)
        elif act == "gelu":
            y = _gelu_exact(y)
        o_ref[...] = y.astype(o_ref.dtype)


def matmul_bias(x, w, b=None, act=None, out_dtype=None):
    """act(x @ w + b): tiled/pipelined MXU matmul, bf16 operands, f32 acc.

    Inputs are zero padded to tile multiples so blocks are (8,128)-aligned and
    output stores are lane dense; padding is sliced off afterwards."""
    M, K = x.shape
    K2, N = w.shape
    assert K == K2
    out_dtype = out_dtype or x.dtype
    if b is None:
        b = jnp.zeros((N,), jnp.float32)

    tm = min(256, _round_up(M, 16))
    tk = min(512, _round_up(K, 128))
    tn = min(256, _round_up(N, 128))
    Mp, Kp, Np = _round_up(M, tm), _round_up(K, tk), _round_up(N, tn)

    xb = jnp.pad(x, ((0, Mp - M), (0, Kp - K))).astype(jnp.bfloat16)
    wb = jnp.pad(w, ((0, Kp - K), (0, Np - N))).astype(jnp.bfloat16)
    bb = jnp.pad(b.astype(jnp.float32), ((0, Np - N),)).reshape(1, Np)

    out = pl.pallas_call(
        functools.partial(_matmul_kernel, act=act),
        out_shape=jax.ShapeDtypeStruct((Mp, Np), out_dtype),
        grid=(Mp // tm, Np // tn, Kp // tk),
        in_specs=[
            pl.BlockSpec((tm, tk), lambda i, j, k: (i, k)),
            pl.BlockSpec((tk, tn), lambda i, j, k: (k, j)),
            pl.BlockSpec((1, tn), lambda i, j, k: (0, j)),
        ],
        out_specs=pl.BlockSpec((tm, tn), lambda i, j, k: (i, j)),
        scratch_shapes=[pltpu.VMEM((tm, tn), jnp.float32)],
        compiler_params=pltpu.CompilerParams(
            dimension_semantics=("parallel", "parallel", "arbitrary")),
    )(xb, wb, bb)
    return out[:M, :N]


# --------------------- fused LayerNorm + Linear kernel ------------------------

def _ln_matmul_kernel(x_ref, g_ref, b_ref, w_ref, wb_ref, o_ref):
    x = x_ref[...].astype(jnp.float32)
    h = _ln(x, g_ref[...], b_ref[...])
    y = jnp.dot(h.astype(jnp.bfloat16), w_ref[...],
                preferred_element_type=jnp.float32) + wb_ref[...]
    o_ref[...] = y.astype(o_ref.dtype)


def ln_linear(x, g, b, w, wb):
    """Fused LayerNorm(x) @ w + wb.  x: (M, D), LN over D, w: (D, N)."""
    M, D = x.shape
    N = w.shape[1]
    tm = min(256, _round_up(M, 8))
    Mp = _round_up(M, tm)
    Np = _round_up(N, 128)

    xp = jnp.pad(x, ((0, Mp - M), (0, 0)))
    wp = jnp.pad(w, ((0, 0), (0, Np - N))).astype(jnp.bfloat16)
    wbp = jnp.pad(wb.astype(jnp.float32), ((0, Np - N),)).reshape(1, Np)

    out = pl.pallas_call(
        _ln_matmul_kernel,
        out_shape=jax.ShapeDtypeStruct((Mp, Np), x.dtype),
        grid=(Mp // tm,),
        in_specs=[
            pl.BlockSpec((tm, D), lambda i: (i, 0)),
            pl.BlockSpec((1, D), lambda i: (0, 0)),
            pl.BlockSpec((1, D), lambda i: (0, 0)),
            pl.BlockSpec((D, Np), lambda i: (0, 0)),
            pl.BlockSpec((1, Np), lambda i: (0, 0)),
        ],
        out_specs=pl.BlockSpec((tm, Np), lambda i: (i, 0)),
        compiler_params=pltpu.CompilerParams(dimension_semantics=("parallel",)),
    )(xp, g.reshape(1, D).astype(jnp.float32),
      b.reshape(1, D).astype(jnp.float32), wp, wbp)
    return out[:M, :N]


# ------------------------ fused transformer block ----------------------------

def _block_kernel(*refs, num_heads, use_skip):
    if use_skip:
        (x_ref, skip_ref, skwx, skws, skb,
         ln1g, ln1b, wq, bq, wk, bk, wv, bv, wp, pb,
         ln2g, ln2b, w1, b1, w2, b2, o_ref) = refs
    else:
        (x_ref,
         ln1g, ln1b, wq, bq, wk, bk, wv, bv, wp, pb,
         ln2g, ln2b, w1, b1, w2, b2, o_ref) = refs

    x = x_ref[0].astype(jnp.float32)                    # (S, D)
    S, D = x.shape
    nh = num_heads
    hd = D // nh
    scale = 1.0 / math.sqrt(hd)

    if use_skip:
        # Linear(cat([x, skip], -1)) done as two half-matmuls: no lane concat
        # and no unaligned lane slicing of the (2D, D) weight.
        x = (jnp.dot(x.astype(jnp.bfloat16), skwx[...],
                     preferred_element_type=jnp.float32)
             + jnp.dot(skip_ref[0].astype(jnp.bfloat16), skws[...],
                       preferred_element_type=jnp.float32)
             + skb[...])

    # ---- multi-head self attention (pre-LN) ----
    h = _ln(x, ln1g[...], ln1b[...]).astype(jnp.bfloat16)
    qs, ks, vs = [], [], []
    for i in range(nh):                                  # per-head weights on a
        qs.append(jnp.dot(h, wq[i], preferred_element_type=jnp.float32) + bq[i])
        ks.append(jnp.dot(h, wk[i], preferred_element_type=jnp.float32) + bk[i])
        vs.append(jnp.dot(h, wv[i], preferred_element_type=jnp.float32) + bv[i])
    # Fold the softmax scale into q while it is still f32 (smaller tensor than
    # the (nh, S, S) score matrix, and before the bf16 cast).
    q = jnp.stack(qs) * scale                            # (nh, S, hd), f32
    k = jnp.stack(ks)
    v = jnp.stack(vs)

    # Head axis as a batch dim -> single batched score / value matmuls.
    s = jnp.einsum("hqd,hkd->hqk", q.astype(jnp.bfloat16),
                   k.astype(jnp.bfloat16),
                   preferred_element_type=jnp.float32)
    s = s - jnp.max(s, axis=-1, keepdims=True)
    p = jnp.exp(s)
    p = p * pl.reciprocal(jnp.sum(p, axis=-1, keepdims=True), approx=True)
    o = jnp.einsum("hqk,hkd->hqd", p.astype(jnp.bfloat16),
                   v.astype(jnp.bfloat16),
                   preferred_element_type=jnp.float32)   # (nh, S, hd)

    proj = jnp.zeros((S, D), jnp.float32)
    for i in range(nh):
        proj = proj + jnp.dot(o[i].astype(jnp.bfloat16), wp[i],
                              preferred_element_type=jnp.float32)
    x = x + proj + pb[...]

    # ---- MLP (pre-LN, exact GELU) ----
    h = _ln(x, ln2g[...], ln2b[...]).astype(jnp.bfloat16)
    h = jnp.dot(h, w1[...], preferred_element_type=jnp.float32) + b1[...]
    h = _gelu_exact(h)
    h = jnp.dot(h.astype(jnp.bfloat16), w2[...],
                preferred_element_type=jnp.float32) + b2[...]
    x = x + h

    o_ref[0] = x.astype(o_ref.dtype)


def transformer_block(x, params, skip=None, num_heads=4):
    B, S, D = x.shape
    nh = num_heads
    hd = D // nh
    use_skip = skip is not None
    bf = jnp.bfloat16

    def head_w(w):          # (D, D) -> (nh, D, hd)
        return w.reshape(D, nh, hd).transpose(1, 0, 2).astype(bf)

    def head_b(b):          # (D,) -> (nh, 1, hd)
        return b.reshape(nh, 1, hd).astype(jnp.float32)

    def row(a):
        return a.reshape(1, -1).astype(jnp.float32)

    qkv_w, qkv_b = params["qkv_w"], params["qkv_b"]
    wq, wk, wv = (head_w(qkv_w[:, :D]), head_w(qkv_w[:, D:2 * D]),
                  head_w(qkv_w[:, 2 * D:]))
    bq, bk, bv = head_b(qkv_b[:D]), head_b(qkv_b[D:2 * D]), head_b(qkv_b[2 * D:])
    wp = params["proj_w"].reshape(nh, hd, D).astype(bf)

    tok_spec = pl.BlockSpec((1, S, D), lambda b: (b, 0, 0))
    args, specs = [x], [tok_spec]

    def add_full(a):
        args.append(a)
        n = a.ndim
        specs.append(pl.BlockSpec(a.shape, lambda b, n=n: (0,) * n))

    if use_skip:
        args.append(skip)
        specs.append(tok_spec)
        skw = params["skip_w"]
        add_full(skw[:D].astype(bf))
        add_full(skw[D:].astype(bf))
        add_full(row(params["skip_b"]))

    add_full(row(params["ln1_g"]))
    add_full(row(params["ln1_b"]))
    for a in (wq, bq, wk, bk, wv, bv, wp):
        add_full(a)
    add_full(row(params["proj_b"]))
    add_full(row(params["ln2_g"]))
    add_full(row(params["ln2_b"]))
    add_full(params["fc1_w"].astype(bf))
    add_full(row(params["fc1_b"]))
    add_full(params["fc2_w"].astype(bf))
    add_full(row(params["fc2_b"]))

    # TODO(synk): for large S this block should be S-tiled (flash-style) to fit
    # v7x's 64 MiB VMEM; at these sizes one (S, D) tile per batch is fine.
    return pl.pallas_call(
        functools.partial(_block_kernel, num_heads=nh, use_skip=use_skip),
        out_shape=jax.ShapeDtypeStruct((B, S, D), x.dtype),
        grid=(B,),
        in_specs=specs,
        out_specs=tok_spec,
        compiler_params=pltpu.CompilerParams(
            dimension_semantics=("parallel",),
            vmem_limit_bytes=64 * 1024 * 1024),
    )(*args)


# ------------------------------ parameters ----------------------------------

def init_params(key, *, img_size, patch_size, in_chans, embed_dim, depth,
                num_heads, clip_dim, num_clip_token):
    del num_heads
    D = embed_dim
    extras = 1 + num_clip_token
    num_patches = (img_size // patch_size) ** 2
    patch_dim = patch_size ** 2 * in_chans

    keys = iter(jax.random.split(key, 64))

    def w(shape, scale=0.02):
        return scale * jax.random.normal(next(keys), shape, jnp.float32)

    zeros = lambda s: jnp.zeros(s, jnp.float32)
    ones = lambda s: jnp.ones(s, jnp.float32)

    def block_params(skip):
        p = dict(
            ln1_g=ones((D,)), ln1_b=zeros((D,)),
            qkv_w=w((D, 3 * D)), qkv_b=zeros((3 * D,)),
            proj_w=w((D, D)), proj_b=zeros((D,)),
            ln2_g=ones((D,)), ln2_b=zeros((D,)),
            fc1_w=w((D, 4 * D)), fc1_b=zeros((4 * D,)),
            fc2_w=w((4 * D, D)), fc2_b=zeros((D,)),
        )
        if skip:
            p["skip_w"] = w((2 * D, D))
            p["skip_b"] = zeros((D,))
        return p

    return dict(
        patch_w=w((in_chans * patch_size ** 2, D)), patch_b=zeros((D,)),
        ctx_w=w((clip_dim, D)), ctx_b=zeros((D,)),
        time_fc1_w=w((D, 4 * D)), time_fc1_b=zeros((4 * D,)),
        time_fc2_w=w((4 * D, D)), time_fc2_b=zeros((D,)),
        pos_embed=w((1, extras + num_patches, D)),
        in_blocks=[block_params(False) for _ in range(depth // 2)],
        mid_block=block_params(False),
        out_blocks=[block_params(True) for _ in range(depth // 2)],
        norm_g=ones((D,)), norm_b=zeros((D,)),
        dec_w=w((D, patch_dim)), dec_b=zeros((patch_dim,)),
        conv_w=w((in_chans * 9, in_chans)), conv_b=zeros((in_chans,)),
    )


# -------------------------------- forward -----------------------------------

def model_forward(params, x, t, c, *, patch_size, num_heads, extras):
    B, C, H, W = x.shape
    D = params["pos_embed"].shape[-1]
    p = patch_size
    hp, wp = H // p, W // p
    L = hp * wp

    # patch embed: Conv2d(C, D, k=p, stride=p) == matmul over flattened patches
    xp = x.reshape(B, C, hp, p, wp, p).transpose(0, 2, 4, 1, 3, 5)
    xp = xp.reshape(B * L, C * p * p)
    x_tok = matmul_bias(xp, params["patch_w"], params["patch_b"]).reshape(B, L, D)

    # context embed
    _, T, clip_dim = c.shape
    c_tok = matmul_bias(c.reshape(B * T, clip_dim),
                        params["ctx_w"], params["ctx_b"]).reshape(B, T, D)

    # timestep embed: guided-diffusion [cos, sin] sinusoid + SiLU MLP
    half = D // 2
    freqs = jnp.exp(-math.log(10000.0) *
                    jnp.arange(half, dtype=jnp.float32) / half)
    ang = t.astype(jnp.float32)[:, None] * freqs[None, :]
    temb = jnp.concatenate([jnp.cos(ang), jnp.sin(ang)], axis=-1)        # (B, D)
    temb = matmul_bias(temb, params["time_fc1_w"], params["time_fc1_b"], act="silu")
    temb = matmul_bias(temb, params["time_fc2_w"], params["time_fc2_b"])

    h = jnp.concatenate([temb[:, None, :], c_tok, x_tok], axis=1) + params["pos_embed"]
    S = h.shape[1]
    assert S == extras + L

    # U-ViT: in blocks -> mid block -> out blocks with long skip connections
    skips = []
    for bp in params["in_blocks"]:
        h = transformer_block(h, bp, num_heads=num_heads)
        skips.append(h)
    h = transformer_block(h, params["mid_block"], num_heads=num_heads)
    for bp in params["out_blocks"]:
        h = transformer_block(h, bp, skip=skips.pop(), num_heads=num_heads)

    # fused final LayerNorm + decoder_pred.  LN / decoder_pred are per-token,
    # so dropping the `extras` tokens BEFORE the kernel is equivalent to the
    # reference slice-after-decode and skips wasted rows (and M = B*L is
    # 8-aligned).  Output is 128-padded -> lane-dense stores.
    dec = ln_linear(h[:, extras:, :].reshape(B * L, D),
                    params["norm_g"], params["norm_b"],
                    params["dec_w"], params["dec_b"]).reshape(B, L, -1)

    # unpatchify (torch reshape/permute order) -> NCHW
    img = dec.reshape(B, hp, wp, p, p, C).transpose(0, 5, 1, 3, 2, 4)
    img = img.reshape(B, C, H, W)

    # final 3x3 conv (padding=1) as a transposed im2col matmul so the Pallas
    # output (C_out, B*H*W) is lane dense.
    # TODO(synk): the 9-slice im2col below still materialises in XLA/HBM; a
    # dedicated Pallas kernel doing shifted reads from a VMEM-resident padded
    # tile would remove that traffic.
    xpad = jnp.pad(img, ((0, 0), (0, 0), (1, 1), (1, 1)))
    cols = jnp.stack([xpad[:, :, i:i + H, j:j + W]
                      for i in range(3) for j in range(3)], axis=2)      # (B, C, 9, H, W)
    cols_t = cols.transpose(1, 2, 0, 3, 4).reshape(C * 9, B * H * W)     # rows = (ci, off)
    out_t = matmul_bias(params["conv_w"].T, cols_t)                      # (C, B*H*W)
    out = (out_t.reshape(C, B, H, W).transpose(1, 0, 2, 3)
           + params["conv_b"].reshape(1, C, 1, 1))
    return out                                                           # NCHW


# --------------------------------- main --------------------------------------

if __name__ == "__main__":
    img_size, patch_size, in_chans = 16, 4, 4
    embed_dim, depth, num_heads = 32, 2, 4
    clip_dim, num_clip_token = 16, 4
    B = 2
    extras = 1 + num_clip_token

    key = jax.random.PRNGKey(0)
    kp, kx, kt, kc = jax.random.split(key, 4)
    params = init_params(kp, img_size=img_size, patch_size=patch_size,
                         in_chans=in_chans, embed_dim=embed_dim, depth=depth,
                         num_heads=num_heads, clip_dim=clip_dim,
                         num_clip_token=num_clip_token)

    x = jax.random.normal(kx, (B, in_chans, img_size, img_size), jnp.float32)
    t = jax.random.uniform(kt, (B,), jnp.float32, 0.0, 1000.0)
    c = jax.random.normal(kc, (B, num_clip_token, clip_dim), jnp.float32)

    fwd = jax.jit(functools.partial(model_forward, patch_size=patch_size,
                                    num_heads=num_heads, extras=extras))
    out = fwd(params, x, t, c)
    jax.block_until_ready(out)

    assert out.shape == (B, in_chans, img_size, img_size), out.shape
    assert bool(jnp.all(jnp.isfinite(out)))
    print("KERNEL_OK")
</pallas_src>

<mosaic_0001>
module attributes {stable_mosaic.version = 11 : i64} {
  func.func @_matmul_kernel(%arg0: i32, %arg1: i32, %arg2: i32, %arg3: memref<16x128xbf16, #tpu.memory_space<vmem>>, %arg4: memref<128x128xbf16, #tpu.memory_space<vmem>>, %arg5: memref<1x128xf32, #tpu.memory_space<vmem>>, %arg6: memref<16x128xf32, #tpu.memory_space<vmem>>, %arg7: memref<16x128xf32, #tpu.memory_space<vmem>>) attributes {dimension_semantics = [#tpu.dimension_semantics<parallel>, #tpu.dimension_semantics<parallel>, #tpu.dimension_semantics<arbitrary>], iteration_bounds = array<i64: 1, 1, 1>, scalar_prefetch = 0 : i64, scratch_operands = 1 : i64, tpu.core_type = #tpu.core_type<tc>, window_params = [{transform_indices = @transform_0, window_bounds = array<i64: 16, 128>}, {transform_indices = @transform_1, window_bounds = array<i64: 128, 128>}, {transform_indices = @transform_2, window_bounds = array<i64: 1, 128>}, {transform_indices = @transform_3, window_bounds = array<i64: 16, 128>}]} {
    %c0_i32 = arith.constant 0 : i32
    %0 = arith.cmpi eq, %arg2, %c0_i32 : i32
    %1 = arith.extui %0 : i1 to i32
    %c0_i32_0 = arith.constant 0 : i32
    %2 = arith.cmpi ne, %1, %c0_i32_0 : i32
    scf.if %2 {
      %cst_10 = arith.constant 0.000000e+00 : f32
      %12 = vector.broadcast %cst_10 : f32 to vector<16x128xf32>
      %c0_11 = arith.constant 0 : index
      %c0_12 = arith.constant 0 : index
      %13 = vector.load %arg7[%c0_11, %c0_12] : memref<16x128xf32, #tpu.memory_space<vmem>>, vector<16x128xf32>
      tpu.vector_store %arg7[%c0_11, %c0_12], %12 {strides = array<i32>} : memref<16x128xf32, #tpu.memory_space<vmem>>, vector<16x128xf32>,
    } else {
    }
    %c0 = arith.constant 0 : index
    %c0_1 = arith.constant 0 : index
    %3 = vector.load %arg7[%c0, %c0_1] : memref<16x128xf32, #tpu.memory_space<vmem>>, vector<16x128xf32>
    %c0_2 = arith.constant 0 : index
    %c0_3 = arith.constant 0 : index
    %4 = vector.load %arg3[%c0_2, %c0_3] : memref<16x128xbf16, #tpu.memory_space<vmem>>, vector<16x128xbf16>
    %c0_4 = arith.constant 0 : index
    %c0_5 = arith.constant 0 : index
    %5 = vector.load %arg4[%c0_4, %c0_5] : memref<128x128xbf16, #tpu.memory_space<vmem>>, vector<128x128xbf16>
    %cst = arith.constant dense<0.000000e+00> : vector<16x128xf32>
    %6 = tpu.matmul %4, %5, %cst {dimension_numbers = #tpu.dot_dimension_numbers<[1], [0], [0], [1], [0, 0, 1, 1], [], []>} : vector<16x128xbf16>, vector<128x128xbf16>, vector<16x128xf32> -> vector<16x128xf32>
    %7 = arith.addf %3, %6 : vector<16x128xf32>
    %c0_6 = arith.constant 0 : index
    %c0_7 = arith.constant 0 : index
    %8 = vector.load %arg7[%c0_6, %c0_7] : memref<16x128xf32, #tpu.memory_space<vmem>>, vector<16x128xf32>
    tpu.vector_store %arg7[%c0_6, %c0_7], %7 {strides = array<i32>} : memref<16x128xf32, #tpu.memory_space<vmem>>, vector<16x128xf32>,
    %c0_i32_8 = arith.constant 0 : i32
    %9 = arith.cmpi eq, %arg2, %c0_i32_8 : i32
    %10 = arith.extui %9 : i1 to i32
    %c0_i32_9 = arith.constant 0 : i32
    %11 = arith.cmpi ne, %10, %c0_i32_9 : i32
    scf.if %11 {
      %c0_10 = arith.constant 0 : index
      %c0_11 = arith.constant 0 : index
      %12 = vector.load %arg7[%c0_10, %c0_11] : memref<16x128xf32, #tpu.memory_space<vmem>>, vector<16x128xf32>
      %c0_12 = arith.constant 0 : index
      %c0_13 = arith.constant 0 : index
      %13 = vector.load %arg5[%c0_12, %c0_13] : memref<1x128xf32, #tpu.memory_space<vmem>>, vector<1x128xf32>
      %14 = vector.broadcast %13 : vector<1x128xf32> to vector<16x128xf32>
      %15 = arith.addf %12, %14 : vector<16x128xf32>
      %16 = arith.negf %15 : vector<16x128xf32>
      %17 = math.exp %16 : vector<16x128xf32>
      %cst_14 = arith.constant 1.000000e+00 : f32
      %18 = vector.broadcast %cst_14 : f32 to vector<16x128xf32>
      %19 = arith.addf %18, %17 : vector<16x128xf32>
      %20 = arith.divf %18, %19 : vector<16x128xf32>
      %21 = arith.mulf %15, %20 : vector<16x128xf32>
      %c0_15 = arith.constant 0 : index
      %c0_16 = arith.constant 0 : index
      %22 = vector.load %arg6[%c0_15, %c0_16] : memref<16x128xf32, #tpu.memory_space<vmem>>, vector<16x128xf32>
      tpu.vector_store %arg6[%c0_15, %c0_16], %21 {strides = array<i32>} : memref<16x128xf32, #tpu.memory_space<vmem>>, vector<16x128xf32>,
    } else {
    }
    return
  }
  func.func @transform_0(%arg0: i32, %arg1: i32, %arg2: i32) -> (i32, i32) {
    %c0_i32 = arith.constant 0 : i32
    return %arg0, %arg2 : i32, i32
  }
  func.func @transform_1(%arg0: i32, %arg1: i32, %arg2: i32) -> (i32, i32) {
    %c0_i32 = arith.constant 0 : i32
    return %arg2, %arg1 : i32, i32
  }
  func.func @transform_2(%arg0: i32, %arg1: i32, %arg2: i32) -> (i32, i32) {
    %c0_i32 = arith.constant 0 : i32
    %c0_i32_0 = arith.constant 0 : i32
    return %c0_i32, %arg1 : i32, i32
  }
  func.func @transform_3(%arg0: i32, %arg1: i32, %arg2: i32) -> (i32, i32) {
    %c0_i32 = arith.constant 0 : i32
    return %arg0, %arg1 : i32, i32
  }
}

module attributes {stable_mosaic.version = 11 : i64} {
  func.func @_matmul_kernel(%arg0: i32, %arg1: i32, %arg2: i32, %arg3: memref<16x128xbf16, #tpu.memory_space<vmem>>, %arg4: memref<128x128xbf16, #tpu.memory_space<vmem>>, %arg5: memref<1x128xf32, #tpu.memory_space<vmem>>, %arg6: memref<16x128xf32, #tpu.memory_space<vmem>>, %arg7: memref<16x128xf32, #tpu.memory_space<vmem>>) attributes {dimension_semantics = [#tpu.dimension_semantics<parallel>, #tpu.dimension_semantics<parallel>, #tpu.dimension_semantics<arbitrary>], iteration_bounds = array<i64: 1, 1, 1>, scalar_prefetch = 0 : i64, scratch_operands = 1 : i64, tpu.core_type = #tpu.core_type<tc>, window_params = [{transform_indices = @transform_0, window_bounds = array<i64: 16, 128>}, {transform_indices = @transform_1, window_bounds = array<i64: 128, 128>}, {transform_indices = @transform_2, window_bounds = array<i64: 1, 128>}, {transform_indices = @transform_3, window_bounds = array<i64: 16, 128>}]} {
    %c0_i32 = arith.constant 0 : i32
    %0 = arith.cmpi eq, %arg2, %c0_i32 : i32
    %1 = arith.extui %0 : i1 to i32
    %c0_i32_0 = arith.constant 0 : i32
    %2 = arith.cmpi ne, %1, %c0_i32_0 : i32
    scf.if %2 {
      %cst_10 = arith.constant 0.000000e+00 : f32
      %12 = vector.broadcast %cst_10 : f32 to vector<16x128xf32>
      %c0_11 = arith.constant 0 : index
      %c0_12 = arith.constant 0 : index
      %13 = vector.load %arg7[%c0_11, %c0_12] : memref<16x128xf32, #tpu.memory_space<vmem>>, vector<16x128xf32>
      tpu.vector_store %arg7[%c0_11, %c0_12], %12 {strides = array<i32>} : memref<16x128xf32, #tpu.memory_space<vmem>>, vector<16x128xf32>,
    } else {
    }
    %c0 = arith.constant 0 : index
    %c0_1 = arith.constant 0 : index
    %3 = vector.load %arg7[%c0, %c0_1] : memref<16x128xf32, #tpu.memory_space<vmem>>, vector<16x128xf32>
    %c0_2 = arith.constant 0 : index
    %c0_3 = arith.constant 0 : index
    %4 = vector.load %arg3[%c0_2, %c0_3] : memref<16x128xbf16, #tpu.memory_space<vmem>>, vector<16x128xbf16>
    %c0_4 = arith.constant 0 : index
    %c0_5 = arith.constant 0 : index
    %5 = vector.load %arg4[%c0_4, %c0_5] : memref<128x128xbf16, #tpu.memory_space<vmem>>, vector<128x128xbf16>
    %cst = arith.constant dense<0.000000e+00> : vector<16x128xf32>
    %6 = tpu.matmul %4, %5, %cst {dimension_numbers = #tpu.dot_dimension_numbers<[1], [0], [0], [1], [0, 0, 1, 1], [], []>} : vector<16x128xbf16>, vector<128x128xbf16>, vector<16x128xf32> -> vector<16x128xf32>
    %7 = arith.addf %3, %6 : vector<16x128xf32>
    %c0_6 = arith.constant 0 : index
    %c0_7 = arith.constant 0 : index
    %8 = vector.load %arg7[%c0_6, %c0_7] : memref<16x128xf32, #tpu.memory_space<vmem>>, vector<16x128xf32>
    tpu.vector_store %arg7[%c0_6, %c0_7], %7 {strides = array<i32>} : memref<16x128xf32, #tpu.memory_space<vmem>>, vector<16x128xf32>,
    %c0_i32_8 = arith.constant 0 : i32
    %9 = arith.cmpi eq, %arg2, %c0_i32_8 : i32
    %10 = arith.extui %9 : i1 to i32
    %c0_i32_9 = arith.constant 0 : i32
    %11 = arith.cmpi ne, %10, %c0_i32_9 : i32
    scf.if %11 {
      %c0_10 = arith.constant 0 : index
      %c0_11 = arith.constant 0 : index
      %12 = vector.load %arg7[%c0_10, %c0_11] : memref<16x128xf32, #tpu.memory_space<vmem>>, vector<16x128xf32>
      %c0_12 = arith.constant 0 : index
      %c0_13 = arith.constant 0 : index
      %13 = vector.load %arg5[%c0_12, %c0_13] : memref<1x128xf32, #tpu.memory_space<vmem>>, vector<1x128xf32>
      %14 = vector.broadcast %13 : vector<1x128xf32> to vector<16x128xf32>
      %15 = arith.addf %12, %14 : vector<16x128xf32>
      %c0_14 = arith.constant 0 : index
      %c0_15 = arith.constant 0 : index
      %16 = vector.load %arg6[%c0_14, %c0_15] : memref<16x128xf32, #tpu.memory_space<vmem>>, vector<16x128xf32>
      tpu.vector_store %arg6[%c0_14, %c0_15], %15 {strides = array<i32>} : memref<16x128xf32, #tpu.memory_space<vmem>>, vector<16x128xf32>,
    } else {
    }
    return
  }
  func.func @transform_0(%arg0: i32, %arg1: i32, %arg2: i32) -> (i32, i32) {
    %c0_i32 = arith.constant 0 : i32
    return %arg0, %arg2 : i32, i32
  }
  func.func @transform_1(%arg0: i32, %arg1: i32, %arg2: i32) -> (i32, i32) {
    %c0_i32 = arith.constant 0 : i32
    return %arg2, %arg1 : i32, i32
  }
  func.func @transform_2(%arg0: i32, %arg1: i32, %arg2: i32) -> (i32, i32) {
    %c0_i32 = arith.constant 0 : i32
    %c0_i32_0 = arith.constant 0 : i32
    return %c0_i32, %arg1 : i32, i32
  }
  func.func @transform_3(%arg0: i32, %arg1: i32, %arg2: i32) -> (i32, i32) {
    %c0_i32 = arith.constant 0 : i32
    return %arg0, %arg1 : i32, i32
  }
}

module attributes {stable_mosaic.version = 11 : i64} {
  func.func @_matmul_kernel(%arg0: i32, %arg1: i32, %arg2: i32, %arg3: memref<32x128xbf16, #tpu.memory_space<vmem>>, %arg4: memref<128x128xbf16, #tpu.memory_space<vmem>>, %arg5: memref<1x128xf32, #tpu.memory_space<vmem>>, %arg6: memref<32x128xf32, #tpu.memory_space<vmem>>, %arg7: memref<32x128xf32, #tpu.memory_space<vmem>>) attributes {dimension_semantics = [#tpu.dimension_semantics<parallel>, #tpu.dimension_semantics<parallel>, #tpu.dimension_semantics<arbitrary>], iteration_bounds = array<i64: 1, 1, 1>, scalar_prefetch = 0 : i64, scratch_operands = 1 : i64, tpu.core_type = #tpu.core_type<tc>, window_params = [{transform_indices = @transform_0, window_bounds = array<i64: 32, 128>}, {transform_indices = @transform_1, window_bounds = array<i64: 128, 128>}, {transform_indices = @transform_2, window_bounds = array<i64: 1, 128>}, {transform_indices = @transform_3, window_bounds = array<i64: 32, 128>}]} {
    %c0_i32 = arith.constant 0 : i32
    %0 = arith.cmpi eq, %arg2, %c0_i32 : i32
    %1 = arith.extui %0 : i1 to i32
    %c0_i32_0 = arith.constant 0 : i32
    %2 = arith.cmpi ne, %1, %c0_i32_0 : i32
    scf.if %2 {
      %cst_10 = arith.constant 0.000000e+00 : f32
      %12 = vector.broadcast %cst_10 : f32 to vector<32x128xf32>
      %c0_11 = arith.constant 0 : index
      %c0_12 = arith.constant 0 : index
      %13 = vector.load %arg7[%c0_11, %c0_12] : memref<32x128xf32, #tpu.memory_space<vmem>>, vector<32x128xf32>
      tpu.vector_store %arg7[%c0_11, %c0_12], %12 {strides = array<i32>} : memref<32x128xf32, #tpu.memory_space<vmem>>, vector<32x128xf32>,
    } else {
    }
    %c0 = arith.constant 0 : index
    %c0_1 = arith.constant 0 : index
    %3 = vector.load %arg7[%c0, %c0_1] : memref<32x128xf32, #tpu.memory_space<vmem>>, vector<32x128xf32>
    %c0_2 = arith.constant 0 : index
    %c0_3 = arith.constant 0 : index
    %4 = vector.load %arg3[%c0_2, %c0_3] : memref<32x128xbf16, #tpu.memory_space<vmem>>, vector<32x128xbf16>
    %c0_4 = arith.constant 0 : index
    %c0_5 = arith.constant 0 : index
    %5 = vector.load %arg4[%c0_4, %c0_5] : memref<128x128xbf16, #tpu.memory_space<vmem>>, vector<128x128xbf16>
    %cst = arith.constant dense<0.000000e+00> : vector<32x128xf32>
    %6 = tpu.matmul %4, %5, %cst {dimension_numbers = #tpu.dot_dimension_numbers<[1], [0], [0], [1], [0, 0, 1, 1], [], []>} : vector<32x128xbf16>, vector<128x128xbf16>, vector<32x128xf32> -> vector<32x128xf32>
    %7 = arith.addf %3, %6 : vector<32x128xf32>
    %c0_6 = arith.constant 0 : index
    %c0_7 = arith.constant 0 : index
    %8 = vector.load %arg7[%c0_6, %c0_7] : memref<32x128xf32, #tpu.memory_space<vmem>>, vector<32x128xf32>
    tpu.vector_store %arg7[%c0_6, %c0_7], %7 {strides = array<i32>} : memref<32x128xf32, #tpu.memory_space<vmem>>, vector<32x128xf32>,
    %c0_i32_8 = arith.constant 0 : i32
    %9 = arith.cmpi eq, %arg2, %c0_i32_8 : i32
    %10 = arith.extui %9 : i1 to i32
    %c0_i32_9 = arith.constant 0 : i32
    %11 = arith.cmpi ne, %10, %c0_i32_9 : i32
    scf.if %11 {
      %c0_10 = arith.constant 0 : index
      %c0_11 = arith.constant 0 : index
      %12 = vector.load %arg7[%c0_10, %c0_11] : memref<32x128xf32, #tpu.memory_space<vmem>>, vector<32x128xf32>
      %c0_12 = arith.constant 0 : index
      %c0_13 = arith.constant 0 : index
      %13 = vector.load %arg5[%c0_12, %c0_13] : memref<1x128xf32, #tpu.memory_space<vmem>>, vector<1x128xf32>
      %14 = vector.broadcast %13 : vector<1x128xf32> to vector<32x128xf32>
      %15 = arith.addf %12, %14 : vector<32x128xf32>
      %c0_14 = arith.constant 0 : index
      %c0_15 = arith.constant 0 : index
      %16 = vector.load %arg6[%c0_14, %c0_15] : memref<32x128xf32, #tpu.memory_space<vmem>>, vector<32x128xf32>
      tpu.vector_store %arg6[%c0_14, %c0_15], %15 {strides = array<i32>} : memref<32x128xf32, #tpu.memory_space<vmem>>, vector<32x128xf32>,
    } else {
    }
    return
  }
  func.func @transform_0(%arg0: i32, %arg1: i32, %arg2: i32) -> (i32, i32) {
    %c0_i32 = arith.constant 0 : i32
    return %arg0, %arg2 : i32, i32
  }
  func.func @transform_1(%arg0: i32, %arg1: i32, %arg2: i32) -> (i32, i32) {
    %c0_i32 = arith.constant 0 : i32
    return %arg2, %arg1 : i32, i32
  }
  func.func @transform_2(%arg0: i32, %arg1: i32, %arg2: i32) -> (i32, i32) {
    %c0_i32 = arith.constant 0 : i32
    %c0_i32_0 = arith.constant 0 : i32
    return %c0_i32, %arg1 : i32, i32
  }
  func.func @transform_3(%arg0: i32, %arg1: i32, %arg2: i32) -> (i32, i32) {
    %c0_i32 = arith.constant 0 : i32
    return %arg0, %arg1 : i32, i32
  }
}

module attributes {stable_mosaic.version = 11 : i64} {
  func.func @_block_kernel(%arg0: i32, %arg1: memref<1x21x32xf32, #tpu.memory_space<vmem>>, %arg2: memref<1x32xf32, #tpu.memory_space<vmem>>, %arg3: memref<1x32xf32, #tpu.memory_space<vmem>>, %arg4: memref<4x32x8xbf16, #tpu.memory_space<vmem>>, %arg5: memref<4x1x8xf32, #tpu.memory_space<vmem>>, %arg6: memref<4x32x8xbf16, #tpu.memory_space<vmem>>, %arg7: memref<4x1x8xf32, #tpu.memory_space<vmem>>, %arg8: memref<4x32x8xbf16, #tpu.memory_space<vmem>>, %arg9: memref<4x1x8xf32, #tpu.memory_space<vmem>>, %arg10: memref<4x8x32xbf16, #tpu.memory_space<vmem>>, %arg11: memref<1x32xf32, #tpu.memory_space<vmem>>, %arg12: memref<1x32xf32, #tpu.memory_space<vmem>>, %arg13: memref<1x32xf32, #tpu.memory_space<vmem>>, %arg14: memref<32x128xbf16, #tpu.memory_space<vmem>>, %arg15: memref<1x128xf32, #tpu.memory_space<vmem>>, %arg16: memref<128x32xbf16, #tpu.memory_space<vmem>>, %arg17: memref<1x32xf32, #tpu.memory_space<vmem>>, %arg18: memref<1x21x32xf32, #tpu.memory_space<vmem>>) attributes {dimension_semantics = [#tpu.dimension_semantics<parallel>], iteration_bounds = array<i64: 2>, scalar_prefetch = 0 : i64, scratch_operands = 0 : i64, tpu.core_type = #tpu.core_type<tc>, window_params = [{transform_indices = @transform_0, window_bounds = array<i64: 1, 21, 32>}, {pipeline_mode = #tpu.pipeline_mode<synchronous>, transform_indices = @transform_1, window_bounds = array<i64: 1, 32>}, {pipeline_mode = #tpu.pipeline_mode<synchronous>, transform_indices = @transform_2, window_bounds = array<i64: 1, 32>}, {pipeline_mode = #tpu.pipeline_mode<synchronous>, transform_indices = @transform_3, window_bounds = array<i64: 4, 32, 8>}, {pipeline_mode = #tpu.pipeline_mode<synchronous>, transform_indices = @transform_4, window_bounds = array<i64: 4, 1, 8>}, {pipeline_mode = #tpu.pipeline_mode<synchronous>, transform_indices = @transform_5, window_bounds = array<i64: 4, 32, 8>}, {pipeline_mode = #tpu.pipeline_mode<synchronous>, transform_indices = @transform_6, window_bounds = array<i64: 4, 1, 8>}, {pipeline_mode = #tpu.pipeline_mode<synchronous>, transform_indices = @transform_7, window_bounds = array<i64: 4, 32, 8>}, {pipeline_mode = #tpu.pipeline_mode<synchronous>, transform_indices = @transform_8, window_bounds = array<i64: 4, 1, 8>}, {pipeline_mode = #tpu.pipeline_mode<synchronous>, transform_indices = @transform_9, window_bounds = array<i64: 4, 8, 32>}, {pipeline_mode = #tpu.pipeline_mode<synchronous>, transform_indices = @transform_10, window_bounds = array<i64: 1, 32>}, {pipeline_mode = #tpu.pipeline_mode<synchronous>, transform_indices = @transform_11, window_bounds = array<i64: 1, 32>}, {pipeline_mode = #tpu.pipeline_mode<synchronous>, transform_indices = @transform_12, window_bounds = array<i64: 1, 32>}, {pipeline_mode = #tpu.pipeline_mode<synchronous>, transform_indices = @transform_13, window_bounds = array<i64: 32, 128>}, {pipeline_mode = #tpu.pipeline_mode<synchronous>, transform_indices = @transform_14, window_bounds = array<i64: 1, 128>}, {pipeline_mode = #tpu.pipeline_mode<synchronous>, transform_indices = @transform_15, window_bounds = array<i64: 128, 32>}, {pipeline_mode = #tpu.pipeline_mode<synchronous>, transform_indices = @transform_16, window_bounds = array<i64: 1, 32>}, {transform_indices = @transform_17, window_bounds = array<i64: 1, 21, 32>}]} {
    %c0 = arith.constant 0 : index
    %c0_0 = arith.constant 0 : index
    %c0_1 = arith.constant 0 : index
    %0 = vector.load %arg1[%c0, %c0_0, %c0_1] : memref<1x21x32xf32, #tpu.memory_space<vmem>>, vector<1x21x32xf32>
    %1 = vector.shape_cast %0 : vector<1x21x32xf32> to vector<21x32xf32>
    %c0_2 = arith.constant 0 : index
    %c0_3 = arith.constant 0 : index
    %2 = vector.load %arg2[%c0_2, %c0_3] : memref<1x32xf32, #tpu.memory_space<vmem>>, vector<1x32xf32>
    %c0_4 = arith.constant 0 : index
    %c0_5 = arith.constant 0 : index
    %3 = vector.load %arg3[%c0_4, %c0_5] : memref<1x32xf32, #tpu.memory_space<vmem>>, vector<1x32xf32>
    %cst = arith.constant dense<0.000000e+00> : vector<21xf32>
    %4 = vector.multi_reduction <add>, %1, %cst [1] : vector<21x32xf32> to vector<21xf32>
    %5 = vector.shape_cast %4 : vector<21xf32> to vector<21x1xf32>
    %cst_6 = arith.constant 3.200000e+01 : f32
    %6 = vector.broadcast %cst_6 : f32 to vector<21x1xf32>
    %7 = arith.divf %5, %6 : vector<21x1xf32>
    %8 = vector.broadcast %7 : vector<21x1xf32> to vector<21x32xf32>
    %9 = arith.subf %1, %8 : vector<21x32xf32>
    %10 = arith.mulf %9, %9 : vector<21x32xf32>
    %cst_7 = arith.constant dense<0.000000e+00> : vector<21xf32>
    %11 = vector.multi_reduction <add>, %10, %cst_7 [1] : vector<21x32xf32> to vector<21xf32>
    %12 = vector.shape_cast %11 : vector<21xf32> to vector<21x1xf32>
    %cst_8 = arith.constant 3.200000e+01 : f32
    %13 = vector.broadcast %cst_8 : f32 to vector<21x1xf32>
    %14 = arith.divf %12, %13 : vector<21x1xf32>
    %15 = vector.broadcast %7 : vector<21x1xf32> to vector<21x32xf32>
    %16 = arith.subf %1, %15 : vector<21x32xf32>
    %cst_9 = arith.constant 9.99999974E-6 : f32
    %17 = vector.broadcast %cst_9 : f32 to vector<21x1xf32>
    %18 = arith.addf %14, %17 : vector<21x1xf32>
    %19 = math.rsqrt %18 : vector<21x1xf32>
    %20 = vector.broadcast %19 : vector<21x1xf32> to vector<21x32xf32>
    %21 = arith.mulf %16, %20 : vector<21x32xf32>
    %22 = vector.broadcast %2 : vector<1x32xf32> to vector<21x32xf32>
    %23 = arith.mulf %21, %22 : vector<21x32xf32>
    %24 = vector.broadcast %3 : vector<1x32xf32> to vector<21x32xf32>
    %25 = arith.addf %23, %24 : vector<21x32xf32>
    %26 = arith.truncf %25 : vector<21x32xf32> to vector<21x32xbf16>
    %c0_10 = arith.constant 0 : index
    %c0_11 = arith.constant 0 : index
    %c0_12 = arith.constant 0 : index
    %27 = vector.load %arg4[%c0_10, %c0_11, %c0_12] : memref<4x32x8xbf16, #tpu.memory_space<vmem>>, vector<1x32x8xbf16>
    %28 = vector.shape_cast %27 : vector<1x32x8xbf16> to vector<32x8xbf16>
    %cst_13 = arith.constant dense<0.000000e+00> : vector<21x8xf32>
    %29 = tpu.matmul %26, %28, %cst_13 {dimension_numbers = #tpu.dot_dimension_numbers<[1], [0], [0], [1], [0, 0, 1, 1], [], []>} : vector<21x32xbf16>, vector<32x8xbf16>, vector<21x8xf32> -> vector<21x8xf32>
    %c0_14 = arith.constant 0 : index
    %c0_15 = arith.constant 0 : index
    %c0_16 = arith.constant 0 : index
    %30 = vector.load %arg5[%c0_14, %c0_15, %c0_16] : memref<4x1x8xf32, #tpu.memory_space<vmem>>, vector<1x1x8xf32>
    %31 = vector.shape_cast %30 : vector<1x1x8xf32> to vector<1x8xf32>
    %32 = vector.broadcast %31 : vector<1x8xf32> to vector<21x8xf32>
    %33 = arith.addf %29, %32 : vector<21x8xf32>
    %c0_17 = arith.constant 0 : index
    %c0_18 = arith.constant 0 : index
    %c0_19 = arith.constant 0 : index
    %34 = vector.load %arg6[%c0_17, %c0_18, %c0_19] : memref<4x32x8xbf16, #tpu.memory_space<vmem>>, vector<1x32x8xbf16>
    %35 = vector.shape_cast %34 : vector<1x32x8xbf16> to vector<32x8xbf16>
    %cst_20 = arith.constant dense<0.000000e+00> : vector<21x8xf32>
    %36 = tpu.matmul %26, %35, %cst_20 {dimension_numbers = #tpu.dot_dimension_numbers<[1], [0], [0], [1], [0, 0, 1, 1], [], []>} : vector<21x32xbf16>, vector<32x8xbf16>, vector<21x8xf32> -> vector<21x8xf32>
    %c0_21 = arith.constant 0 : index
    %c0_22 = arith.constant 0 : index
    %c0_23 = arith.constant 0 : index
    %37 = vector.load %arg7[%c0_21, %c0_22, %c0_23] : memref<4x1x8xf32, #tpu.memory_space<vmem>>, vector<1x1x8xf32>
    %38 = vector.shape_cast %37 : vector<1x1x8xf32> to vector<1x8xf32>
    %39 = vector.broadcast %38 : vector<1x8xf32> to vector<21x8xf32>
    %40 = arith.addf %36, %39 : vector<21x8xf32>
    %c0_24 = arith.constant 0 : index
    %c0_25 = arith.constant 0 : index
    %c0_26 = arith.constant 0 : index
    %41 = vector.load %arg8[%c0_24, %c0_25, %c0_26] : memref<4x32x8xbf16, #tpu.memory_space<vmem>>, vector<1x32x8xbf16>
    %42 = vector.shape_cast %41 : vector<1x32x8xbf16> to vector<32x8xbf16>
    %cst_27 = arith.constant dense<0.000000e+00> : vector<21x8xf32>
    %43 = tpu.matmul %26, %42, %cst_27 {dimension_numbers = #tpu.dot_dimension_numbers<[1], [0], [0], [1], [0, 0, 1, 1], [], []>} : vector<21x32xbf16>, vector<32x8xbf16>, vector<21x8xf32> -> vector<21x8xf32>
    %c0_28 = arith.constant 0 : index
    %c0_29 = arith.constant 0 : index
    %c0_30 = arith.constant 0 : index
    %44 = vector.load %arg9[%c0_28, %c0_29, %c0_30] : memref<4x1x8xf32, #tpu.memory_space<vmem>>, vector<1x1x8xf32>
    %45 = vector.shape_cast %44 : vector<1x1x8xf32> to vector<1x8xf32>
    %46 = vector.broadcast %45 : vector<1x8xf32> to vector<21x8xf32>
    %47 = arith.addf %43, %46 : vector<21x8xf32>
    %c1 = arith.constant 1 : index
    %c0_31 = arith.constant 0 : index
    %c0_32 = arith.constant 0 : index
    %48 = vector.load %arg4[%c1, %c0_31, %c0_32] : memref<4x32x8xbf16, #tpu.memory_space<vmem>>, vector<1x32x8xbf16>
    %49 = vector.shape_cast %48 : vector<1x32x8xbf16> to vector<32x8xbf16>
    %cst_33 = arith.constant dense<0.000000e+00> : vector<21x8xf32>
    %50 = tpu.matmul %26, %49, %cst_33 {dimension_numbers = #tpu.dot_dimension_numbers<[1], [0], [0], [1], [0, 0, 1, 1], [], []>} : vector<21x32xbf16>, vector<32x8xbf16>, vector<21x8xf32> -> vector<21x8xf32>
    %c1_34 = arith.constant 1 : index
    %c0_35 = arith.constant 0 : index
    %c0_36 = arith.constant 0 : index
    %51 = vector.load %arg5[%c1_34, %c0_35, %c0_36] : memref<4x1x8xf32, #tpu.memory_space<vmem>>, vector<1x1x8xf32>
    %52 = vector.shape_cast %51 : vector<1x1x8xf32> to vector<1x8xf32>
    %53 = vector.broadcast %52 : vector<1x8xf32> to vector<21x8xf32>
    %54 = arith.addf %50, %53 : vector<21x8xf32>
    %c1_37 = arith.constant 1 : index
    %c0_38 = arith.constant 0 : index
    %c0_39 = arith.constant 0 : index
    %55 = vector.load %arg6[%c1_37, %c0_38, %c0_39] : memref<4x32x8xbf16, #tpu.memory_space<vmem>>, vector<1x32x8xbf16>
    %56 = vector.shape_cast %55 : vector<1x32x8xbf16> to vector<32x8xbf16>
    %cst_40 = arith.constant dense<0.000000e+00> : vector<21x8xf32>
    %57 = tpu.matmul %26, %56, %cst_40 {dimension_numbers = #tpu.dot_dimension_numbers<[1], [0], [0], [1], [0, 0, 1, 1], [], []>} : vector<21x32xbf16>, vector<32x8xbf16>, vector<21x8xf32> -> vector<21x8xf32>
    %c1_41 = arith.constant 1 : index
    %c0_42 = arith.constant 0 : index
    %c0_43 = arith.constant 0 : index
    %58 = vector.load %arg7[%c1_41, %c0_42, %c0_43] : memref<4x1x8xf32, #tpu.memory_space<vmem>>, vector<1x1x8xf32>
    %59 = vector.shape_cast %58 : vector<1x1x8xf32> to vector<1x8xf32>
    %60 = vector.broadcast %59 : vector<1x8xf32> to vector<21x8xf32>
    %61 = arith.addf %57, %60 : vector<21x8xf32>
    %c1_44 = arith.constant 1 : index
    %c0_45 = arith.constant 0 : index
    %c0_46 = arith.constant 0 : index
    %62 = vector.load %arg8[%c1_44, %c0_45, %c0_46] : memref<4x32x8xbf16, #tpu.memory_space<vmem>>, vector<1x32x8xbf16>
    %63 = vector.shape_cast %62 : vector<1x32x8xbf16> to vector<32x8xbf16>
    %cst_47 = arith.constant dense<0.000000e+00> : vector<21x8xf32>
    %64 = tpu.matmul %26, %63, %cst_47 {dimension_numbers = #tpu.dot_dimension_numbers<[1], [0], [0], [1], [0, 0, 1, 1], [], []>} : vector<21x32xbf16>, vector<32x8xbf16>, vector<21x8xf32> -> vector<21x8xf32>
    %c1_48 = arith.constant 1 : index
    %c0_49 = arith.constant 0 : index
    %c0_50 = arith.constant 0 : index
    %65 = vector.load %arg9[%c1_48, %c0_49, %c0_50] : memref<4x1x8xf32, #tpu.memory_space<vmem>>, vector<1x1x8xf32>
    %66 = vector.shape_cast %65 : vector<1x1x8xf32> to vector<1x8xf32>
    %67 = vector.broadcast %66 : vector<1x8xf32> to vector<21x8xf32>
    %68 = arith.addf %64, %67 : vector<21x8xf32>
    %c2 = arith.constant 2 : index
    %c0_51 = arith.constant 0 : index
    %c0_52 = arith.constant 0 : index
    %69 = vector.load %arg4[%c2, %c0_51, %c0_52] : memref<4x32x8xbf16, #tpu.memory_space<vmem>>, vector<1x32x8xbf16>
    %70 = vector.shape_cast %69 : vector<1x32x8xbf16> to vector<32x8xbf16>
    %cst_53 = arith.constant dense<0.000000e+00> : vector<21x8xf32>
    %71 = tpu.matmul %26, %70, %cst_53 {dimension_numbers = #tpu.dot_dimension_numbers<[1], [0], [0], [1], [0, 0, 1, 1], [], []>} : vector<21x32xbf16>, vector<32x8xbf16>, vector<21x8xf32> -> vector<21x8xf32>
    %c2_54 = arith.constant 2 : index
    %c0_55 = arith.constant 0 : index
    %c0_56 = arith.constant 0 : index
    %72 = vector.load %arg5[%c2_54, %c0_55, %c0_56] : memref<4x1x8xf32, #tpu.memory_space<vmem>>, vector<1x1x8xf32>
    %73 = vector.shape_cast %72 : vector<1x1x8xf32> to vector<1x8xf32>
    %74 = vector.broadcast %73 : vector<1x8xf32> to vector<21x8xf32>
    %75 = arith.addf %71, %74 : vector<21x8xf32>
    %c2_57 = arith.constant 2 : index
    %c0_58 = arith.constant 0 : index
    %c0_59 = arith.constant 0 : index
    %76 = vector.load %arg6[%c2_57, %c0_58, %c0_59] : memref<4x32x8xbf16, #tpu.memory_space<vmem>>, vector<1x32x8xbf16>
    %77 = vector.shape_cast %76 : vector<1x32x8xbf16> to vector<32x8xbf16>
    %cst_60 = arith.constant dense<0.000000e+00> : vector<21x8xf32>
    %78 = tpu.matmul %26, %77, %cst_60 {dimension_numbers = #tpu.dot_dimension_numbers<[1], [0], [0], [1], [0, 0, 1, 1], [], []>} : vector<21x32xbf16>, vector<32x8xbf16>, vector<21x8xf32> -> vector<21x8xf32>
    %c2_61 = arith.constant 2 : index
    %c0_62 = arith.constant 0 : index
    %c0_63 = arith.constant 0 : index
    %79 = vector.load %arg7[%c2_61, %c0_62, %c0_63] : memref<4x1x8xf32, #tpu.memory_space<vmem>>, vector<1x1x8xf32>
    %80 = vector.shape_cast %79 : vector<1x1x8xf32> to vector<1x8xf32>
    %81 = vector.broadcast %80 : vector<1x8xf32> to vector<21x8xf32>
    %82 = arith.addf %78, %81 : vector<21x8xf32>
    %c2_64 = arith.constant 2 : index
    %c0_65 = arith.constant 0 : index
    %c0_66 = arith.constant 0 : index
    %83 = vector.load %arg8[%c2_64, %c0_65, %c0_66] : memref<4x32x8xbf16, #tpu.memory_space<vmem>>, vector<1x32x8xbf16>
    %84 = vector.shape_cast %83 : vector<1x32x8xbf16> to vector<32x8xbf16>
    %cst_67 = arith.constant dense<0.000000e+00> : vector<21x8xf32>
    %85 = tpu.matmul %26, %84, %cst_67 {dimension_numbers = #tpu.dot_dimension_numbers<[1], [0], [0], [1], [0, 0, 1, 1], [], []>} : vector<21x32xbf16>, vector<32x8xbf16>, vector<21x8xf32> -> vector<21x8xf32>
    %c2_68 = arith.constant 2 : index
    %c0_69 = arith.constant 0 : index
    %c0_70 = arith.constant 0 : index
    %86 = vector.load %arg9[%c2_68, %c0_69, %c0_70] : memref<4x1x8xf32, #tpu.memory_space<vmem>>, vector<1x1x8xf32>
    %87 = vector.shape_cast %86 : vector<1x1x8xf32> to vector<1x8xf32>
    %88 = vector.broadcast %87 : vector<1x8xf32> to vector<21x8xf32>
    %89 = arith.addf %85, %88 : vector<21x8xf32>
    %c3 = arith.constant 3 : index
    %c0_71 = arith.constant 0 : index
    %c0_72 = arith.constant 0 : index
    %90 = vector.load %arg4[%c3, %c0_71, %c0_72] : memref<4x32x8xbf16, #tpu.memory_space<vmem>>, vector<1x32x8xbf16>
    %91 = vector.shape_cast %90 : vector<1x32x8xbf16> to vector<32x8xbf16>
    %cst_73 = arith.constant dense<0.000000e+00> : vector<21x8xf32>
    %92 = tpu.matmul %26, %91, %cst_73 {dimension_numbers = #tpu.dot_dimension_numbers<[1], [0], [0], [1], [0, 0, 1, 1], [], []>} : vector<21x32xbf16>, vector<32x8xbf16>, vector<21x8xf32> -> vector<21x8xf32>
    %c3_74 = arith.constant 3 : index
    %c0_75 = arith.constant 0 : index
    %c0_76 = arith.constant 0 : index
    %93 = vector.load %arg5[%c3_74, %c0_75, %c0_76] : memref<4x1x8xf32, #tpu.memory_space<vmem>>, vector<1x1x8xf32>
    %94 = vector.shape_cast %93 : vector<1x1x8xf32> to vector<1x8xf32>
    %95 = vector.broadcast %94 : vector<1x8xf32> to vector<21x8xf32>
    %96 = arith.addf %92, %95 : vector<21x8xf32>
    %c3_77 = arith.constant 3 : index
    %c0_78 = arith.constant 0 : index
    %c0_79 = arith.constant 0 : index
    %97 = vector.load %arg6[%c3_77, %c0_78, %c0_79] : memref<4x32x8xbf16, #tpu.memory_space<vmem>>, vector<1x32x8xbf16>
    %98 = vector.shape_cast %97 : vector<1x32x8xbf16> to vector<32x8xbf16>
    %cst_80 = arith.constant dense<0.000000e+00> : vector<21x8xf32>
    %99 = tpu.matmul %26, %98, %cst_80 {dimension_numbers = #tpu.dot_dimension_numbers<[1], [0], [0], [1], [0, 0, 1, 1], [], []>} : vector<21x32xbf16>, vector<32x8xbf16>, vector<21x8xf32> -> vector<21x8xf32>
    %c3_81 = arith.constant 3 : index
    %c0_82 = arith.constant 0 : index
    %c0_83 = arith.constant 0 : index
    %100 = vector.load %arg7[%c3_81, %c0_82, %c0_83] : memref<4x1x8xf32, #tpu.memory_space<vmem>>, vector<1x1x8xf32>
    %101 = vector.shape_cast %100 : vector<1x1x8xf32> to vector<1x8xf32>
    %102 = vector.broadcast %101 : vector<1x8xf32> to vector<21x8xf32>
    %103 = arith.addf %99, %102 : vector<21x8xf32>
    %c3_84 = arith.constant 3 : index
    %c0_85 = arith.constant 0 : index
    %c0_86 = arith.constant 0 : index
    %104 = vector.load %arg8[%c3_84, %c0_85, %c0_86] : memref<4x32x8xbf16, #tpu.memory_space<vmem>>, vector<1x32x8xbf16>
    %105 = vector.shape_cast %104 : vector<1x32x8xbf16> to vector<32x8xbf16>
    %cst_87 = arith.constant dense<0.000000e+00> : vector<21x8xf32>
    %106 = tpu.matmul %26, %105, %cst_87 {dimension_numbers = #tpu.dot_dimension_numbers<[1], [0], [0], [1], [0, 0, 1, 1], [], []>} : vector<21x32xbf16>, vector<32x8xbf16>, vector<21x8xf32> -> vector<21x8xf32>
    %c3_88 = arith.constant 3 : index
    %c0_89 = arith.constant 0 : index
    %c0_90 = arith.constant 0 : index
    %107 = vector.load %arg9[%c3_88, %c0_89, %c0_90] : memref<4x1x8xf32, #tpu.memory_space<vmem>>, vector<1x1x8xf32>
    %108 = vector.shape_cast %107 : vector<1x1x8xf32> to vector<1x8xf32>
    %109 = vector.broadcast %108 : vector<1x8xf32> to vector<21x8xf32>
    %110 = arith.addf %106, %109 : vector<21x8xf32>
    %111 = vector.shape_cast %33 : vector<21x8xf32> to vector<1x21x8xf32>
    %112 = vector.shape_cast %54 : vector<21x8xf32> to vector<1x21x8xf32>
    %113 = vector.shape_cast %75 : vector<21x8xf32> to vector<1x21x8xf32>
    %114 = vector.shape_cast %96 : vector<21x8xf32> to vector<1x21x8xf32>
    %115 = tpu.concatenate %111, %112, %113, %114 in 0 : vector<1x21x8xf32>, vector<1x21x8xf32>, vector<1x21x8xf32>, vector<1x21x8xf32> -> vector<4x21x8xf32>
    %cst_91 = arith.constant 0.353553385 : f32
    %116 = vector.broadcast %cst_91 : f32 to vector<4x21x8xf32>
    %117 = arith.mulf %115, %116 : vector<4x21x8xf32>
    %118 = vector.shape_cast %40 : vector<21x8xf32> to vector<1x21x8xf32>
    %119 = vector.shape_cast %61 : vector<21x8xf32> to vector<1x21x8xf32>
    %120 = vector.shape_cast %82 : vector<21x8xf32> to vector<1x21x8xf32>
    %121 = vector.shape_cast %103 : vector<21x8xf32> to vector<1x21x8xf32>
    %122 = tpu.concatenate %118, %119, %120, %121 in 0 : vector<1x21x8xf32>, vector<1x21x8xf32>, vector<1x21x8xf32>, vector<1x21x8xf32> -> vector<4x21x8xf32>
    %123 = vector.shape_cast %47 : vector<21x8xf32> to vector<1x21x8xf32>
    %124 = vector.shape_cast %68 : vector<21x8xf32> to vector<1x21x8xf32>
    %125 = vector.shape_cast %89 : vector<21x8xf32> to vector<1x21x8xf32>
    %126 = vector.shape_cast %110 : vector<21x8xf32> to vector<1x21x8xf32>
    %127 = tpu.concatenate %123, %124, %125, %126 in 0 : vector<1x21x8xf32>, vector<1x21x8xf32>, vector<1x21x8xf32>, vector<1x21x8xf32> -> vector<4x21x8xf32>
    %128 = arith.truncf %117 : vector<4x21x8xf32> to vector<4x21x8xbf16>
    %129 = arith.truncf %122 : vector<4x21x8xf32> to vector<4x21x8xbf16>
    "tpu.trace_start"() <{level = 10 : i32, message = "hqd,hkd->hqk"}> : () -> ()
    %cst_92 = arith.constant dense<0.000000e+00> : vector<4x21x21xf32>
    %130 = tpu.matmul %128, %129, %cst_92 {dimension_numbers = #tpu.dot_dimension_numbers<[2], [2], [1], [1], [0, 0, 0, 1, 1, 1], [0], [0]>} : vector<4x21x8xbf16>, vector<4x21x8xbf16>, vector<4x21x21xf32> -> vector<4x21x21xf32>
    "tpu.trace_stop"() : () -> ()
    %cst_93 = arith.constant dense<0xFF800000> : vector<4x21xf32>
    %131 = vector.multi_reduction <maximumf>, %130, %cst_93 [2] : vector<4x21x21xf32> to vector<4x21xf32>
    %132 = vector.shape_cast %131 : vector<4x21xf32> to vector<4x21x1xf32>
    %133 = vector.broadcast %132 : vector<4x21x1xf32> to vector<4x21x21xf32>
    %134 = arith.subf %130, %133 : vector<4x21x21xf32>
    %135 = math.exp %134 : vector<4x21x21xf32>
    %cst_94 = arith.constant dense<0.000000e+00> : vector<4x21xf32>
    %136 = vector.multi_reduction <add>, %135, %cst_94 [2] : vector<4x21x21xf32> to vector<4x21xf32>
    %137 = vector.shape_cast %136 : vector<4x21xf32> to vector<4x21x1xf32>
    %138 = tpu.reciprocal %137 {approx = true} : vector<4x21x1xf32> -> vector<4x21x1xf32>
    %139 = vector.broadcast %138 : vector<4x21x1xf32> to vector<4x21x21xf32>
    %140 = arith.mulf %135, %139 : vector<4x21x21xf32>
    %141 = arith.truncf %140 : vector<4x21x21xf32> to vector<4x21x21xbf16>
    %142 = arith.truncf %127 : vector<4x21x8xf32> to vector<4x21x8xbf16>
    "tpu.trace_start"() <{level = 10 : i32, message = "hqk,hkd->hqd"}> : () -> ()
    %cst_95 = arith.constant dense<0.000000e+00> : vector<4x21x8xf32>
    %143 = tpu.matmul %141, %142, %cst_95 {dimension_numbers = #tpu.dot_dimension_numbers<[2], [1], [1], [2], [0, 0, 0, 1, 1, 2], [0], [0]>} : vector<4x21x21xbf16>, vector<4x21x8xbf16>, vector<4x21x8xf32> -> vector<4x21x8xf32>
    %cst_96 = arith.constant 0.000000e+00 : f32
    "tpu.trace_stop"() : () -> ()
    %144 = vector.broadcast %cst_96 : f32 to vector<21x32xf32>
    %145 = vector.extract_strided_slice %143 {offsets = [0, 0, 0], sizes = [1, 21, 8], strides = [1, 1, 1]} : vector<4x21x8xf32> to vector<1x21x8xf32>
    %146 = vector.shape_cast %145 : vector<1x21x8xf32> to vector<21x8xf32>
    %147 = arith.truncf %146 : vector<21x8xf32> to vector<21x8xbf16>
    %c0_97 = arith.constant 0 : index
    %c0_98 = arith.constant 0 : index
    %c0_99 = arith.constant 0 : index
    %148 = vector.load %arg10[%c0_97, %c0_98, %c0_99] : memref<4x8x32xbf16, #tpu.memory_space<vmem>>, vector<1x8x32xbf16>
    %149 = vector.shape_cast %148 : vector<1x8x32xbf16> to vector<8x32xbf16>
    %cst_100 = arith.constant dense<0.000000e+00> : vector<21x32xf32>
    %150 = tpu.matmul %147, %149, %cst_100 {dimension_numbers = #tpu.dot_dimension_numbers<[1], [0], [0], [1], [0, 0, 1, 1], [], []>} : vector<21x8xbf16>, vector<8x32xbf16>, vector<21x32xf32> -> vector<21x32xf32>
    %151 = arith.addf %144, %150 : vector<21x32xf32>
    %152 = vector.extract_strided_slice %143 {offsets = [1, 0, 0], sizes = [1, 21, 8], strides = [1, 1, 1]} : vector<4x21x8xf32> to vector<1x21x8xf32>
    %153 = vector.shape_cast %152 : vector<1x21x8xf32> to vector<21x8xf32>
    %154 = arith.truncf %153 : vector<21x8xf32> to vector<21x8xbf16>
    %c1_101 = arith.constant 1 : index
    %c0_102 = arith.constant 0 : index
    %c0_103 = arith.constant 0 : index
    %155 = vector.load %arg10[%c1_101, %c0_102, %c0_103] : memref<4x8x32xbf16, #tpu.memory_space<vmem>>, vector<1x8x32xbf16>
    %156 = vector.shape_cast %155 : vector<1x8x32xbf16> to vector<8x32xbf16>
    %cst_104 = arith.constant dense<0.000000e+00> : vector<21x32xf32>
    %157 = tpu.matmul %154, %156, %cst_104 {dimension_numbers = #tpu.dot_dimension_numbers<[1], [0], [0], [1], [0, 0, 1, 1], [], []>} : vector<21x8xbf16>, vector<8x32xbf16>, vector<21x32xf32> -> vector<21x32xf32>
    %158 = arith.addf %151, %157 : vector<21x32xf32>
    %159 = vector.extract_strided_slice %143 {offsets = [2, 0, 0], sizes = [1, 21, 8], strides = [1, 1, 1]} : vector<4x21x8xf32> to vector<1x21x8xf32>
    %160 = vector.shape_cast %159 : vector<1x21x8xf32> to vector<21x8xf32>
    %161 = arith.truncf %160 : vector<21x8xf32> to vector<21x8xbf16>
    %c2_105 = arith.constant 2 : index
    %c0_106 = arith.constant 0 : index
    %c0_107 = arith.constant 0 : index
    %162 = vector.load %arg10[%c2_105, %c0_106, %c0_107] : memref<4x8x32xbf16, #tpu.memory_space<vmem>>, vector<1x8x32xbf16>
    %163 = vector.shape_cast %162 : vector<1x8x32xbf16> to vector<8x32xbf16>
    %cst_108 = arith.constant dense<0.000000e+00> : vector<21x32xf32>
    %164 = tpu.matmul %161, %163, %cst_108 {dimension_numbers = #tpu.dot_dimension_numbers<[1], [0], [0], [1], [0, 0, 1, 1], [], []>} : vector<21x8xbf16>, vector<8x32xbf16>, vector<21x32xf32> -> vector<21x32xf32>
    %165 = arith.addf %158, %164 : vector<21x32xf32>
    %166 = vector.extract_strided_slice %143 {offsets = [3, 0, 0], sizes = [1, 21, 8], strides = [1, 1, 1]} : vector<4x21x8xf32> to vector<1x21x8xf32>
    %167 = vector.shape_cast %166 : vector<1x21x8xf32> to vector<21x8xf32>
    %168 = arith.truncf %167 : vector<21x8xf32> to vector<21x8xbf16>
    %c3_109 = arith.constant 3 : index
    %c0_110 = arith.constant 0 : index
    %c0_111 = arith.constant 0 : index
    %169 = vector.load %arg10[%c3_109, %c0_110, %c0_111] : memref<4x8x32xbf16, #tpu.memory_space<vmem>>, vector<1x8x32xbf16>
    %170 = vector.shape_cast %169 : vector<1x8x32xbf16> to vector<8x32xbf16>
    %cst_112 = arith.constant dense<0.000000e+00> : vector<21x32xf32>
    %171 = tpu.matmul %168, %170, %cst_112 {dimension_numbers = #tpu.dot_dimension_numbers<[1], [0], [0], [1], [0, 0, 1, 1], [], []>} : vector<21x8xbf16>, vector<8x32xbf16>, vector<21x32xf32> -> vector<21x32xf32>
    %172 = arith.addf %165, %171 : vector<21x32xf32>
    %173 = arith.addf %1, %172 : vector<21x32xf32>
    %c0_113 = arith.constant 0 : index
    %c0_114 = arith.constant 0 : index
    %174 = vector.load %arg11[%c0_113, %c0_114] : memref<1x32xf32, #tpu.memory_space<vmem>>, vector<1x32xf32>
    %175 = vector.broadcast %174 : vector<1x32xf32> to vector<21x32xf32>
    %176 = arith.addf %173, %175 : vector<21x32xf32>
    %c0_115 = arith.constant 0 : index
    %c0_116 = arith.constant 0 : index
    %177 = vector.load %arg12[%c0_115, %c0_116] : memref<1x32xf32, #tpu.memory_space<vmem>>, vector<1x32xf32>
    %c0_117 = arith.constant 0 : index
    %c0_118 = arith.constant 0 : index
    %178 = vector.load %arg13[%c0_117, %c0_118] : memref<1x32xf32, #tpu.memory_space<vmem>>, vector<1x32xf32>
    %cst_119 = arith.constant dense<0.000000e+00> : vector<21xf32>
    %179 = vector.multi_reduction <add>, %176, %cst_119 [1] : vector<21x32xf32> to vector<21xf32>
    %180 = vector.shape_cast %179 : vector<21xf32> to vector<21x1xf32>
    %cst_120 = arith.constant 3.200000e+01 : f32
    %181 = vector.broadcast %cst_120 : f32 to vector<21x1xf32>
    %182 = arith.divf %180, %181 : vector<21x1xf32>
    %183 = vector.broadcast %182 : vector<21x1xf32> to vector<21x32xf32>
    %184 = arith.subf %176, %183 : vector<21x32xf32>
    %185 = arith.mulf %184, %184 : vector<21x32xf32>
    %cst_121 = arith.constant dense<0.000000e+00> : vector<21xf32>
    %186 = vector.multi_reduction <add>, %185, %cst_121 [1] : vector<21x32xf32> to vector<21xf32>
    %187 = vector.shape_cast %186 : vector<21xf32> to vector<21x1xf32>
    %cst_122 = arith.constant 3.200000e+01 : f32
    %188 = vector.broadcast %cst_122 : f32 to vector<21x1xf32>
    %189 = arith.divf %187, %188 : vector<21x1xf32>
    %190 = vector.broadcast %182 : vector<21x1xf32> to vector<21x32xf32>
    %191 = arith.subf %176, %190 : vector<21x32xf32>
    %cst_123 = arith.constant 9.99999974E-6 : f32
    %192 = vector.broadcast %cst_123 : f32 to vector<21x1xf32>
    %193 = arith.addf %189, %192 : vector<21x1xf32>
    %194 = math.rsqrt %193 : vector<21x1xf32>
    %195 = vector.broadcast %194 : vector<21x1xf32> to vector<21x32xf32>
    %196 = arith.mulf %191, %195 : vector<21x32xf32>
    %197 = vector.broadcast %177 : vector<1x32xf32> to vector<21x32xf32>
    %198 = arith.mulf %196, %197 : vector<21x32xf32>
    %199 = vector.broadcast %178 : vector<1x32xf32> to vector<21x32xf32>
    %200 = arith.addf %198, %199 : vector<21x32xf32>
    %201 = arith.truncf %200 : vector<21x32xf32> to vector<21x32xbf16>
    %c0_124 = arith.constant 0 : index
    %c0_125 = arith.constant 0 : index
    %202 = vector.load %arg14[%c0_124, %c0_125] : memref<32x128xbf16, #tpu.memory_space<vmem>>, vector<32x128xbf16>
    %cst_126 = arith.constant dense<0.000000e+00> : vector<21x128xf32>
    %203 = tpu.matmul %201, %202, %cst_126 {dimension_numbers = #tpu.dot_dimension_numbers<[1], [0], [0], [1], [0, 0, 1, 1], [], []>} : vector<21x32xbf16>, vector<32x128xbf16>, vector<21x128xf32> -> vector<21x128xf32>
    %c0_127 = arith.constant 0 : index
    %c0_128 = arith.constant 0 : index
    %204 = vector.load %arg15[%c0_127, %c0_128] : memref<1x128xf32, #tpu.memory_space<vmem>>, vector<1x128xf32>
    %205 = vector.broadcast %204 : vector<1x128xf32> to vector<21x128xf32>
    %206 = arith.addf %203, %205 : vector<21x128xf32>
    %cst_129 = arith.constant 5.000000e-01 : f32
    %207 = vector.broadcast %cst_129 : f32 to vector<21x128xf32>
    %208 = arith.mulf %207, %206 : vector<21x128xf32>
    %cst_130 = arith.constant 0.707106769 : f32
    %209 = vector.broadcast %cst_130 : f32 to vector<21x128xf32>
    %210 = arith.mulf %206, %209 : vector<21x128xf32>
    %211 = math.absf %210 : vector<21x128xf32>
    %cst_131 = arith.constant 0.327591091 : f32
    %212 = vector.broadcast %cst_131 : f32 to vector<21x128xf32>
    %213 = arith.mulf %212, %211 : vector<21x128xf32>
    %cst_132 = arith.constant 1.000000e+00 : f32
    %214 = vector.broadcast %cst_132 : f32 to vector<21x128xf32>
    %215 = arith.addf %214, %213 : vector<21x128xf32>
    %cst_133 = arith.constant 1.000000e+00 : f32
    %216 = vector.broadcast %cst_133 : f32 to vector<21x128xf32>
    %217 = arith.divf %216, %215 : vector<21x128xf32>
    %cst_134 = arith.constant 1.06140542 : f32
    %218 = vector.broadcast %cst_134 : f32 to vector<21x128xf32>
    %219 = arith.mulf %218, %217 : vector<21x128xf32>
    %cst_135 = arith.constant 1.45315206 : f32
    %220 = vector.broadcast %cst_135 : f32 to vector<21x128xf32>
    %221 = arith.subf %219, %220 : vector<21x128xf32>
    %222 = arith.mulf %221, %217 : vector<21x128xf32>
    %cst_136 = arith.constant 1.42141378 : f32
    %223 = vector.broadcast %cst_136 : f32 to vector<21x128xf32>
    %224 = arith.addf %222, %223 : vector<21x128xf32>
    %225 = arith.mulf %224, %217 : vector<21x128xf32>
    %cst_137 = arith.constant 0.284496725 : f32
    %226 = vector.broadcast %cst_137 : f32 to vector<21x128xf32>
    %227 = arith.subf %225, %226 : vector<21x128xf32>
    %228 = arith.mulf %227, %217 : vector<21x128xf32>
    %cst_138 = arith.constant 0.254829586 : f32
    %229 = vector.broadcast %cst_138 : f32 to vector<21x128xf32>
    %230 = arith.addf %228, %229 : vector<21x128xf32>
    %231 = arith.mulf %230, %217 : vector<21x128xf32>
    %cst_139 = arith.constant 0.000000e+00 : f32
    %232 = vector.broadcast %cst_139 : f32 to vector<21x128xf32>
    %233 = arith.subf %232, %211 : vector<21x128xf32>
    %234 = arith.mulf %233, %211 : vector<21x128xf32>
    %235 = math.exp %234 : vector<21x128xf32>
    %236 = arith.mulf %231, %235 : vector<21x128xf32>
    %cst_140 = arith.constant 1.000000e+00 : f32
    %237 = vector.broadcast %cst_140 : f32 to vector<21x128xf32>
    %238 = arith.subf %237, %236 : vector<21x128xf32>
    %cst_141 = arith.constant 0.000000e+00 : f32
    %239 = vector.broadcast %cst_141 : f32 to vector<21x128xf32>
    %240 = arith.cmpf olt, %210, %239 : vector<21x128xf32>
    %cst_142 = arith.constant 0.000000e+00 : f32
    %241 = vector.broadcast %cst_142 : f32 to vector<21x128xf32>
    %242 = arith.subf %241, %238 : vector<21x128xf32>
    %243 = arith.select %240, %242, %238 : vector<21x128xi1>, vector<21x128xf32>
    %cst_143 = arith.constant 1.000000e+00 : f32
    %244 = vector.broadcast %cst_143 : f32 to vector<21x128xf32>
    %245 = arith.addf %244, %243 : vector<21x128xf32>
    %246 = arith.mulf %208, %245 : vector<21x128xf32>
    %247 = arith.truncf %246 : vector<21x128xf32> to vector<21x128xbf16>
    %c0_144 = arith.constant 0 : index
    %c0_145 = arith.constant 0 : index
    %248 = vector.load %arg16[%c0_144, %c0_145] : memref<128x32xbf16, #tpu.memory_space<vmem>>, vector<128x32xbf16>
    %cst_146 = arith.constant dense<0.000000e+00> : vector<21x32xf32>
    %249 = tpu.matmul %247, %248, %cst_146 {dimension_numbers = #tpu.dot_dimension_numbers<[1], [0], [0], [1], [0, 0, 1, 1], [], []>} : vector<21x128xbf16>, vector<128x32xbf16>, vector<21x32xf32> -> vector<21x32xf32>
    %c0_147 = arith.constant 0 : index
    %c0_148 = arith.constant 0 : index
    %250 = vector.load %arg17[%c0_147, %c0_148] : memref<1x32xf32, #tpu.memory_space<vmem>>, vector<1x32xf32>
    %251 = vector.broadcast %250 : vector<1x32xf32> to vector<21x32xf32>
    %252 = arith.addf %249, %251 : vector<21x32xf32>
    %253 = arith.addf %176, %252 : vector<21x32xf32>
    %c0_149 = arith.constant 0 : index
    %c0_150 = arith.constant 0 : index
    %c0_151 = arith.constant 0 : index
    %254 = vector.load %arg18[%c0_149, %c0_150, %c0_151] : memref<1x21x32xf32, #tpu.memory_space<vmem>>, vector<1x21x32xf32>
    %255 = vector.shape_cast %254 : vector<1x21x32xf32> to vector<21x32xf32>
    %256 = vector.shape_cast %253 : vector<21x32xf32> to vector<1x21x32xf32>
    tpu.vector_store %arg18[%c0_149, %c0_150, %c0_151], %256 {strides = array<i32>} : memref<1x21x32xf32, #tpu.memory_space<vmem>>, vector<1x21x32xf32>,
    return
  }
  func.func @transform_0(%arg0: i32) -> (i32, i32, i32) {
    %c0_i32 = arith.constant 0 : i32
    %c0_i32_0 = arith.constant 0 : i32
    %c0_i32_1 = arith.constant 0 : i32
    return %arg0, %c0_i32, %c0_i32_0 : i32, i32, i32
  }
  func.func @transform_1(%arg0: i32) -> (i32, i32) {
    %c0_i32 = arith.constant 0 : i32
    %c0_i32_0 = arith.constant 0 : i32
    %c0_i32_1 = arith.constant 0 : i32
    return %c0_i32, %c0_i32_0 : i32, i32
  }
  func.func @transform_2(%arg0: i32) -> (i32, i32) {
    %c0_i32 = arith.constant 0 : i32
    %c0_i32_0 = arith.constant 0 : i32
    %c0_i32_1 = arith.constant 0 : i32
    return %c0_i32, %c0_i32_0 : i32, i32
  }
  func.func @transform_3(%arg0: i32) -> (i32, i32, i32) {
    %c0_i32 = arith.constant 0 : i32
    %c0_i32_0 = arith.constant 0 : i32
    %c0_i32_1 = arith.constant 0 : i32
    %c0_i32_2 = arith.constant 0 : i32
    return %c0_i32, %c0_i32_0, %c0_i32_1 : i32, i32, i32
  }
  func.func @transform_4(%arg0: i32) -> (i32, i32, i32) {
    %c0_i32 = arith.constant 0 : i32
    %c0_i32_0 = arith.constant 0 : i32
    %c0_i32_1 = arith.constant 0 : i32
    %c0_i32_2 = arith.constant 0 : i32
    return %c0_i32, %c0_i32_0, %c0_i32_1 : i32, i32, i32
  }
  func.func @transform_5(%arg0: i32) -> (i32, i32, i32) {
    %c0_i32 = arith.constant 0 : i32
    %c0_i32_0 = arith.constant 0 : i32
    %c0_i32_1 = arith.constant 0 : i32
    %c0_i32_2 = arith.constant 0 : i32
    return %c0_i32, %c0_i32_0, %c0_i32_1 : i32, i32, i32
  }
  func.func @transform_6(%arg0: i32) -> (i32, i32, i32) {
    %c0_i32 = arith.constant 0 : i32
    %c0_i32_0 = arith.constant 0 : i32
    %c0_i32_1 = arith.constant 0 : i32
    %c0_i32_2 = arith.constant 0 : i32
    return %c0_i32, %c0_i32_0, %c0_i32_1 : i32, i32, i32
  }
  func.func @transform_7(%arg0: i32) -> (i32, i32, i32) {
    %c0_i32 = arith.constant 0 : i32
    %c0_i32_0 = arith.constant 0 : i32
    %c0_i32_1 = arith.constant 0 : i32
    %c0_i32_2 = arith.constant 0 : i32
    return %c0_i32, %c0_i32_0, %c0_i32_1 : i32, i32, i32
  }
  func.func @transform_8(%arg0: i32) -> (i32, i32, i32) {
    %c0_i32 = arith.constant 0 : i32
    %c0_i32_0 = arith.constant 0 : i32
    %c0_i32_1 = arith.constant 0 : i32
    %c0_i32_2 = arith.constant 0 : i32
    return %c0_i32, %c0_i32_0, %c0_i32_1 : i32, i32, i32
  }
  func.func @transform_9(%arg0: i32) -> (i32, i32, i32) {
    %c0_i32 = arith.constant 0 : i32
    %c0_i32_0 = arith.constant 0 : i32
    %c0_i32_1 = arith.constant 0 : i32
    %c0_i32_2 = arith.constant 0 : i32
    return %c0_i32, %c0_i32_0, %c0_i32_1 : i32, i32, i32
  }
  func.func @transform_10(%arg0: i32) -> (i32, i32) {
    %c0_i32 = arith.constant 0 : i32
    %c0_i32_0 = arith.constant 0 : i32
    %c0_i32_1 = arith.constant 0 : i32
    return %c0_i32, %c0_i32_0 : i32, i32
  }
  func.func @transform_11(%arg0: i32) -> (i32, i32) {
    %c0_i32 = arith.constant 0 : i32
    %c0_i32_0 = arith.constant 0 : i32
    %c0_i32_1 = arith.constant 0 : i32
    return %c0_i32, %c0_i32_0 : i32, i32
  }
  func.func @transform_12(%arg0: i32) -> (i32, i32) {
    %c0_i32 = arith.constant 0 : i32
    %c0_i32_0 = arith.constant 0 : i32
    %c0_i32_1 = arith.constant 0 : i32
    return %c0_i32, %c0_i32_0 : i32, i32
  }
  func.func @transform_13(%arg0: i32) -> (i32, i32) {
    %c0_i32 = arith.constant 0 : i32
    %c0_i32_0 = arith.constant 0 : i32
    %c0_i32_1 = arith.constant 0 : i32
    return %c0_i32, %c0_i32_0 : i32, i32
  }
  func.func @transform_14(%arg0: i32) -> (i32, i32) {
    %c0_i32 = arith.constant 0 : i32
    %c0_i32_0 = arith.constant 0 : i32
    %c0_i32_1 = arith.constant 0 : i32
    return %c0_i32, %c0_i32_0 : i32, i32
  }
  func.func @transform_15(%arg0: i32) -> (i32, i32) {
    %c0_i32 = arith.constant 0 : i32
    %c0_i32_0 = arith.constant 0 : i32
    %c0_i32_1 = arith.constant 0 : i32
    return %c0_i32, %c0_i32_0 : i32, i32
  }
  func.func @transform_16(%arg0: i32) -> (i32, i32) {
    %c0_i32 = arith.constant 0 : i32
    %c0_i32_0 = arith.constant 0 : i32
    %c0_i32_1 = arith.constant 0 : i32
    return %c0_i32, %c0_i32_0 : i32, i32
  }
  func.func @transform_17(%arg0: i32) -> (i32, i32, i32) {
    %c0_i32 = arith.constant 0 : i32
    %c0_i32_0 = arith.constant 0 : i32
    %c0_i32_1 = arith.constant 0 : i32
    return %arg0, %c0_i32, %c0_i32_0 : i32, i32, i32
  }
}

module attributes {stable_mosaic.version = 11 : i64} {
  func.func @_ln_matmul_kernel(%arg0: i32, %arg1: memref<32x32xf32, #tpu.memory_space<vmem>>, %arg2: memref<1x32xf32, #tpu.memory_space<vmem>>, %arg3: memref<1x32xf32, #tpu.memory_space<vmem>>, %arg4: memref<32x128xbf16, #tpu.memory_space<vmem>>, %arg5: memref<1x128xf32, #tpu.memory_space<vmem>>, %arg6: memref<32x128xf32, #tpu.memory_space<vmem>>) attributes {dimension_semantics = [#tpu.dimension_semantics<parallel>], iteration_bounds = array<i64: 1>, scalar_prefetch = 0 : i64, scratch_operands = 0 : i64, tpu.core_type = #tpu.core_type<tc>, window_params = [{transform_indices = @transform_0, window_bounds = array<i64: 32, 32>}, {pipeline_mode = #tpu.pipeline_mode<synchronous>, transform_indices = @transform_1, window_bounds = array<i64: 1, 32>}, {pipeline_mode = #tpu.pipeline_mode<synchronous>, transform_indices = @transform_2, window_bounds = array<i64: 1, 32>}, {pipeline_mode = #tpu.pipeline_mode<synchronous>, transform_indices = @transform_3, window_bounds = array<i64: 32, 128>}, {pipeline_mode = #tpu.pipeline_mode<synchronous>, transform_indices = @transform_4, window_bounds = array<i64: 1, 128>}, {transform_indices = @transform_5, window_bounds = array<i64: 32, 128>}]} {
    %c0 = arith.constant 0 : index
    %c0_0 = arith.constant 0 : index
    %0 = vector.load %arg1[%c0, %c0_0] : memref<32x32xf32, #tpu.memory_space<vmem>>, vector<32x32xf32>
    %c0_1 = arith.constant 0 : index
    %c0_2 = arith.constant 0 : index
    %1 = vector.load %arg2[%c0_1, %c0_2] : memref<1x32xf32, #tpu.memory_space<vmem>>, vector<1x32xf32>
    %c0_3 = arith.constant 0 : index
    %c0_4 = arith.constant 0 : index
    %2 = vector.load %arg3[%c0_3, %c0_4] : memref<1x32xf32, #tpu.memory_space<vmem>>, vector<1x32xf32>
    %cst = arith.constant dense<0.000000e+00> : vector<32xf32>
    %3 = vector.multi_reduction <add>, %0, %cst [1] : vector<32x32xf32> to vector<32xf32>
    %4 = vector.shape_cast %3 : vector<32xf32> to vector<32x1xf32>
    %cst_5 = arith.constant 3.200000e+01 : f32
    %5 = vector.broadcast %cst_5 : f32 to vector<32x1xf32>
    %6 = arith.divf %4, %5 : vector<32x1xf32>
    %7 = vector.broadcast %6 : vector<32x1xf32> to vector<32x32xf32>
    %8 = arith.subf %0, %7 : vector<32x32xf32>
    %9 = arith.mulf %8, %8 : vector<32x32xf32>
    %cst_6 = arith.constant dense<0.000000e+00> : vector<32xf32>
    %10 = vector.multi_reduction <add>, %9, %cst_6 [1] : vector<32x32xf32> to vector<32xf32>
    %11 = vector.shape_cast %10 : vector<32xf32> to vector<32x1xf32>
    %cst_7 = arith.constant 3.200000e+01 : f32
    %12 = vector.broadcast %cst_7 : f32 to vector<32x1xf32>
    %13 = arith.divf %11, %12 : vector<32x1xf32>
    %14 = vector.broadcast %6 : vector<32x1xf32> to vector<32x32xf32>
    %15 = arith.subf %0, %14 : vector<32x32xf32>
    %cst_8 = arith.constant 9.99999974E-6 : f32
    %16 = vector.broadcast %cst_8 : f32 to vector<32x1xf32>
    %17 = arith.addf %13, %16 : vector<32x1xf32>
    %18 = math.rsqrt %17 : vector<32x1xf32>
    %19 = vector.broadcast %18 : vector<32x1xf32> to vector<32x32xf32>
    %20 = arith.mulf %15, %19 : vector<32x32xf32>
    %21 = vector.broadcast %1 : vector<1x32xf32> to vector<32x32xf32>
    %22 = arith.mulf %20, %21 : vector<32x32xf32>
    %23 = vector.broadcast %2 : vector<1x32xf32> to vector<32x32xf32>
    %24 = arith.addf %22, %23 : vector<32x32xf32>
    %25 = arith.truncf %24 : vector<32x32xf32> to vector<32x32xbf16>
    %c0_9 = arith.constant 0 : index
    %c0_10 = arith.constant 0 : index
    %26 = vector.load %arg4[%c0_9, %c0_10] : memref<32x128xbf16, #tpu.memory_space<vmem>>, vector<32x128xbf16>
    %cst_11 = arith.constant dense<0.000000e+00> : vector<32x128xf32>
    %27 = tpu.matmul %25, %26, %cst_11 {dimension_numbers = #tpu.dot_dimension_numbers<[1], [0], [0], [1], [0, 0, 1, 1], [], []>} : vector<32x32xbf16>, vector<32x128xbf16>, vector<32x128xf32> -> vector<32x128xf32>
    %c0_12 = arith.constant 0 : index
    %c0_13 = arith.constant 0 : index
    %28 = vector.load %arg5[%c0_12, %c0_13] : memref<1x128xf32, #tpu.memory_space<vmem>>, vector<1x128xf32>
    %29 = vector.broadcast %28 : vector<1x128xf32> to vector<32x128xf32>
    %30 = arith.addf %27, %29 : vector<32x128xf32>
    %c0_14 = arith.constant 0 : index
    %c0_15 = arith.constant 0 : index
    %31 = vector.load %arg6[%c0_14, %c0_15] : memref<32x128xf32, #tpu.memory_space<vmem>>, vector<32x128xf32>
    tpu.vector_store %arg6[%c0_14, %c0_15], %30 {strides = array<i32>} : memref<32x128xf32, #tpu.memory_space<vmem>>, vector<32x128xf32>,
    return
  }
  func.func @transform_0(%arg0: i32) -> (i32, i32) {
    %c0_i32 = arith.constant 0 : i32
    %c0_i32_0 = arith.constant 0 : i32
    return %arg0, %c0_i32 : i32, i32
  }
  func.func @transform_1(%arg0: i32) -> (i32, i32) {
    %c0_i32 = arith.constant 0 : i32
    %c0_i32_0 = arith.constant 0 : i32
    %c0_i32_1 = arith.constant 0 : i32
    return %c0_i32, %c0_i32_0 : i32, i32
  }
  func.func @transform_2(%arg0: i32) -> (i32, i32) {
    %c0_i32 = arith.constant 0 : i32
    %c0_i32_0 = arith.constant 0 : i32
    %c0_i32_1 = arith.constant 0 : i32
    return %c0_i32, %c0_i32_0 : i32, i32
  }
  func.func @transform_3(%arg0: i32) -> (i32, i32) {
    %c0_i32 = arith.constant 0 : i32
    %c0_i32_0 = arith.constant 0 : i32
    %c0_i32_1 = arith.constant 0 : i32
    return %c0_i32, %c0_i32_0 : i32, i32
  }
  func.func @transform_4(%arg0: i32) -> (i32, i32) {
    %c0_i32 = arith.constant 0 : i32
    %c0_i32_0 = arith.constant 0 : i32
    %c0_i32_1 = arith.constant 0 : i32
    return %c0_i32, %c0_i32_0 : i32, i32
  }
  func.func @transform_5(%arg0: i32) -> (i32, i32) {
    %c0_i32 = arith.constant 0 : i32
    %c0_i32_0 = arith.constant 0 : i32
    return %arg0, %c0_i32 : i32, i32
  }
}

module attributes {stable_mosaic.version = 11 : i64} {
  func.func @_block_kernel(%arg0: i32, %arg1: memref<1x21x32xf32, #tpu.memory_space<vmem>>, %arg2: memref<1x21x32xf32, #tpu.memory_space<vmem>>, %arg3: memref<32x32xbf16, #tpu.memory_space<vmem>>, %arg4: memref<32x32xbf16, #tpu.memory_space<vmem>>, %arg5: memref<1x32xf32, #tpu.memory_space<vmem>>, %arg6: memref<1x32xf32, #tpu.memory_space<vmem>>, %arg7: memref<1x32xf32, #tpu.memory_space<vmem>>, %arg8: memref<4x32x8xbf16, #tpu.memory_space<vmem>>, %arg9: memref<4x1x8xf32, #tpu.memory_space<vmem>>, %arg10: memref<4x32x8xbf16, #tpu.memory_space<vmem>>, %arg11: memref<4x1x8xf32, #tpu.memory_space<vmem>>, %arg12: memref<4x32x8xbf16, #tpu.memory_space<vmem>>, %arg13: memref<4x1x8xf32, #tpu.memory_space<vmem>>, %arg14: memref<4x8x32xbf16, #tpu.memory_space<vmem>>, %arg15: memref<1x32xf32, #tpu.memory_space<vmem>>, %arg16: memref<1x32xf32, #tpu.memory_space<vmem>>, %arg17: memref<1x32xf32, #tpu.memory_space<vmem>>, %arg18: memref<32x128xbf16, #tpu.memory_space<vmem>>, %arg19: memref<1x128xf32, #tpu.memory_space<vmem>>, %arg20: memref<128x32xbf16, #tpu.memory_space<vmem>>, %arg21: memref<1x32xf32, #tpu.memory_space<vmem>>, %arg22: memref<1x21x32xf32, #tpu.memory_space<vmem>>) attributes {dimension_semantics = [#tpu.dimension_semantics<parallel>], iteration_bounds = array<i64: 2>, scalar_prefetch = 0 : i64, scratch_operands = 0 : i64, tpu.core_type = #tpu.core_type<tc>, window_params = [{transform_indices = @transform_0, window_bounds = array<i64: 1, 21, 32>}, {transform_indices = @transform_1, window_bounds = array<i64: 1, 21, 32>}, {pipeline_mode = #tpu.pipeline_mode<synchronous>, transform_indices = @transform_2, window_bounds = array<i64: 32, 32>}, {pipeline_mode = #tpu.pipeline_mode<synchronous>, transform_indices = @transform_3, window_bounds = array<i64: 32, 32>}, {pipeline_mode = #tpu.pipeline_mode<synchronous>, transform_indices = @transform_4, window_bounds = array<i64: 1, 32>}, {pipeline_mode = #tpu.pipeline_mode<synchronous>, transform_indices = @transform_5, window_bounds = array<i64: 1, 32>}, {pipeline_mode = #tpu.pipeline_mode<synchronous>, transform_indices = @transform_6, window_bounds = array<i64: 1, 32>}, {pipeline_mode = #tpu.pipeline_mode<synchronous>, transform_indices = @transform_7, window_bounds = array<i64: 4, 32, 8>}, {pipeline_mode = #tpu.pipeline_mode<synchronous>, transform_indices = @transform_8, window_bounds = array<i64: 4, 1, 8>}, {pipeline_mode = #tpu.pipeline_mode<synchronous>, transform_indices = @transform_9, window_bounds = array<i64: 4, 32, 8>}, {pipeline_mode = #tpu.pipeline_mode<synchronous>, transform_indices = @transform_10, window_bounds = array<i64: 4, 1, 8>}, {pipeline_mode = #tpu.pipeline_mode<synchronous>, transform_indices = @transform_11, window_bounds = array<i64: 4, 32, 8>}, {pipeline_mode = #tpu.pipeline_mode<synchronous>, transform_indices = @transform_12, window_bounds = array<i64: 4, 1, 8>}, {pipeline_mode = #tpu.pipeline_mode<synchronous>, transform_indices = @transform_13, window_bounds = array<i64: 4, 8, 32>}, {pipeline_mode = #tpu.pipeline_mode<synchronous>, transform_indices = @transform_14, window_bounds = array<i64: 1, 32>}, {pipeline_mode = #tpu.pipeline_mode<synchronous>, transform_indices = @transform_15, window_bounds = array<i64: 1, 32>}, {pipeline_mode = #tpu.pipeline_mode<synchronous>, transform_indices = @transform_16, window_bounds = array<i64: 1, 32>}, {pipeline_mode = #tpu.pipeline_mode<synchronous>, transform_indices = @transform_17, window_bounds = array<i64: 32, 128>}, {pipeline_mode = #tpu.pipeline_mode<synchronous>, transform_indices = @transform_18, window_bounds = array<i64: 1, 128>}, {pipeline_mode = #tpu.pipeline_mode<synchronous>, transform_indices = @transform_19, window_bounds = array<i64: 128, 32>}, {pipeline_mode = #tpu.pipeline_mode<synchronous>, transform_indices = @transform_20, window_bounds = array<i64: 1, 32>}, {transform_indices = @transform_21, window_bounds = array<i64: 1, 21, 32>}]} {
    %c0 = arith.constant 0 : index
    %c0_0 = arith.constant 0 : index
    %c0_1 = arith.constant 0 : index
    %0 = vector.load %arg1[%c0, %c0_0, %c0_1] : memref<1x21x32xf32, #tpu.memory_space<vmem>>, vector<1x21x32xf32>
    %1 = vector.shape_cast %0 : vector<1x21x32xf32> to vector<21x32xf32>
    %2 = arith.truncf %1 : vector<21x32xf32> to vector<21x32xbf16>
    %c0_2 = arith.constant 0 : index
    %c0_3 = arith.constant 0 : index
    %3 = vector.load %arg3[%c0_2, %c0_3] : memref<32x32xbf16, #tpu.memory_space<vmem>>, vector<32x32xbf16>
    %cst = arith.constant dense<0.000000e+00> : vector<21x32xf32>
    %4 = tpu.matmul %2, %3, %cst {dimension_numbers = #tpu.dot_dimension_numbers<[1], [0], [0], [1], [0, 0, 1, 1], [], []>} : vector<21x32xbf16>, vector<32x32xbf16>, vector<21x32xf32> -> vector<21x32xf32>
    %c0_4 = arith.constant 0 : index
    %c0_5 = arith.constant 0 : index
    %c0_6 = arith.constant 0 : index
    %5 = vector.load %arg2[%c0_4, %c0_5, %c0_6] : memref<1x21x32xf32, #tpu.memory_space<vmem>>, vector<1x21x32xf32>
    %6 = vector.shape_cast %5 : vector<1x21x32xf32> to vector<21x32xf32>
    %7 = arith.truncf %6 : vector<21x32xf32> to vector<21x32xbf16>
    %c0_7 = arith.constant 0 : index
    %c0_8 = arith.constant 0 : index
    %8 = vector.load %arg4[%c0_7, %c0_8] : memref<32x32xbf16, #tpu.memory_space<vmem>>, vector<32x32xbf16>
    %cst_9 = arith.constant dense<0.000000e+00> : vector<21x32xf32>
    %9 = tpu.matmul %7, %8, %cst_9 {dimension_numbers = #tpu.dot_dimension_numbers<[1], [0], [0], [1], [0, 0, 1, 1], [], []>} : vector<21x32xbf16>, vector<32x32xbf16>, vector<21x32xf32> -> vector<21x32xf32>
    %10 = arith.addf %4, %9 : vector<21x32xf32>
    %c0_10 = arith.constant 0 : index
    %c0_11 = arith.constant 0 : index
    %11 = vector.load %arg5[%c0_10, %c0_11] : memref<1x32xf32, #tpu.memory_space<vmem>>, vector<1x32xf32>
    %12 = vector.broadcast %11 : vector<1x32xf32> to vector<21x32xf32>
    %13 = arith.addf %10, %12 : vector<21x32xf32>
    %c0_12 = arith.constant 0 : index
    %c0_13 = arith.constant 0 : index
    %14 = vector.load %arg6[%c0_12, %c0_13] : memref<1x32xf32, #tpu.memory_space<vmem>>, vector<1x32xf32>
    %c0_14 = arith.constant 0 : index
    %c0_15 = arith.constant 0 : index
    %15 = vector.load %arg7[%c0_14, %c0_15] : memref<1x32xf32, #tpu.memory_space<vmem>>, vector<1x32xf32>
    %cst_16 = arith.constant dense<0.000000e+00> : vector<21xf32>
    %16 = vector.multi_reduction <add>, %13, %cst_16 [1] : vector<21x32xf32> to vector<21xf32>
    %17 = vector.shape_cast %16 : vector<21xf32> to vector<21x1xf32>
    %cst_17 = arith.constant 3.200000e+01 : f32
    %18 = vector.broadcast %cst_17 : f32 to vector<21x1xf32>
    %19 = arith.divf %17, %18 : vector<21x1xf32>
    %20 = vector.broadcast %19 : vector<21x1xf32> to vector<21x32xf32>
    %21 = arith.subf %13, %20 : vector<21x32xf32>
    %22 = arith.mulf %21, %21 : vector<21x32xf32>
    %cst_18 = arith.constant dense<0.000000e+00> : vector<21xf32>
    %23 = vector.multi_reduction <add>, %22, %cst_18 [1] : vector<21x32xf32> to vector<21xf32>
    %24 = vector.shape_cast %23 : vector<21xf32> to vector<21x1xf32>
    %cst_19 = arith.constant 3.200000e+01 : f32
    %25 = vector.broadcast %cst_19 : f32 to vector<21x1xf32>
    %26 = arith.divf %24, %25 : vector<21x1xf32>
    %27 = vector.broadcast %19 : vector<21x1xf32> to vector<21x32xf32>
    %28 = arith.subf %13, %27 : vector<21x32xf32>
    %cst_20 = arith.constant 9.99999974E-6 : f32
    %29 = vector.broadcast %cst_20 : f32 to vector<21x1xf32>
    %30 = arith.addf %26, %29 : vector<21x1xf32>
    %31 = math.rsqrt %30 : vector<21x1xf32>
    %32 = vector.broadcast %31 : vector<21x1xf32> to vector<21x32xf32>
    %33 = arith.mulf %28, %32 : vector<21x32xf32>
    %34 = vector.broadcast %14 : vector<1x32xf32> to vector<21x32xf32>
    %35 = arith.mulf %33, %34 : vector<21x32xf32>
    %36 = vector.broadcast %15 : vector<1x32xf32> to vector<21x32xf32>
    %37 = arith.addf %35, %36 : vector<21x32xf32>
    %38 = arith.truncf %37 : vector<21x32xf32> to vector<21x32xbf16>
    %c0_21 = arith.constant 0 : index
    %c0_22 = arith.constant 0 : index
    %c0_23 = arith.constant 0 : index
    %39 = vector.load %arg8[%c0_21, %c0_22, %c0_23] : memref<4x32x8xbf16, #tpu.memory_space<vmem>>, vector<1x32x8xbf16>
    %40 = vector.shape_cast %39 : vector<1x32x8xbf16> to vector<32x8xbf16>
    %cst_24 = arith.constant dense<0.000000e+00> : vector<21x8xf32>
    %41 = tpu.matmul %38, %40, %cst_24 {dimension_numbers = #tpu.dot_dimension_numbers<[1], [0], [0], [1], [0, 0, 1, 1], [], []>} : vector<21x32xbf16>, vector<32x8xbf16>, vector<21x8xf32> -> vector<21x8xf32>
    %c0_25 = arith.constant 0 : index
    %c0_26 = arith.constant 0 : index
    %c0_27 = arith.constant 0 : index
    %42 = vector.load %arg9[%c0_25, %c0_26, %c0_27] : memref<4x1x8xf32, #tpu.memory_space<vmem>>, vector<1x1x8xf32>
    %43 = vector.shape_cast %42 : vector<1x1x8xf32> to vector<1x8xf32>
    %44 = vector.broadcast %43 : vector<1x8xf32> to vector<21x8xf32>
    %45 = arith.addf %41, %44 : vector<21x8xf32>
    %c0_28 = arith.constant 0 : index
    %c0_29 = arith.constant 0 : index
    %c0_30 = arith.constant 0 : index
    %46 = vector.load %arg10[%c0_28, %c0_29, %c0_30] : memref<4x32x8xbf16, #tpu.memory_space<vmem>>, vector<1x32x8xbf16>
    %47 = vector.shape_cast %46 : vector<1x32x8xbf16> to vector<32x8xbf16>
    %cst_31 = arith.constant dense<0.000000e+00> : vector<21x8xf32>
    %48 = tpu.matmul %38, %47, %cst_31 {dimension_numbers = #tpu.dot_dimension_numbers<[1], [0], [0], [1], [0, 0, 1, 1], [], []>} : vector<21x32xbf16>, vector<32x8xbf16>, vector<21x8xf32> -> vector<21x8xf32>
    %c0_32 = arith.constant 0 : index
    %c0_33 = arith.constant 0 : index
    %c0_34 = arith.constant 0 : index
    %49 = vector.load %arg11[%c0_32, %c0_33, %c0_34] : memref<4x1x8xf32, #tpu.memory_space<vmem>>, vector<1x1x8xf32>
    %50 = vector.shape_cast %49 : vector<1x1x8xf32> to vector<1x8xf32>
    %51 = vector.broadcast %50 : vector<1x8xf32> to vector<21x8xf32>
    %52 = arith.addf %48, %51 : vector<21x8xf32>
    %c0_35 = arith.constant 0 : index
    %c0_36 = arith.constant 0 : index
    %c0_37 = arith.constant 0 : index
    %53 = vector.load %arg12[%c0_35, %c0_36, %c0_37] : memref<4x32x8xbf16, #tpu.memory_space<vmem>>, vector<1x32x8xbf16>
    %54 = vector.shape_cast %53 : vector<1x32x8xbf16> to vector<32x8xbf16>
    %cst_38 = arith.constant dense<0.000000e+00> : vector<21x8xf32>
    %55 = tpu.matmul %38, %54, %cst_38 {dimension_numbers = #tpu.dot_dimension_numbers<[1], [0], [0], [1], [0, 0, 1, 1], [], []>} : vector<21x32xbf16>, vector<32x8xbf16>, vector<21x8xf32> -> vector<21x8xf32>
    %c0_39 = arith.constant 0 : index
    %c0_40 = arith.constant 0 : index
    %c0_41 = arith.constant 0 : index
    %56 = vector.load %arg13[%c0_39, %c0_40, %c0_41] : memref<4x1x8xf32, #tpu.memory_space<vmem>>, vector<1x1x8xf32>
    %57 = vector.shape_cast %56 : vector<1x1x8xf32> to vector<1x8xf32>
    %58 = vector.broadcast %57 : vector<1x8xf32> to vector<21x8xf32>
    %59 = arith.addf %55, %58 : vector<21x8xf32>
    %c1 = arith.constant 1 : index
    %c0_42 = arith.constant 0 : index
    %c0_43 = arith.constant 0 : index
    %60 = vector.load %arg8[%c1, %c0_42, %c0_43] : memref<4x32x8xbf16, #tpu.memory_space<vmem>>, vector<1x32x8xbf16>
    %61 = vector.shape_cast %60 : vector<1x32x8xbf16> to vector<32x8xbf16>
    %cst_44 = arith.constant dense<0.000000e+00> : vector<21x8xf32>
    %62 = tpu.matmul %38, %61, %cst_44 {dimension_numbers = #tpu.dot_dimension_numbers<[1], [0], [0], [1], [0, 0, 1, 1], [], []>} : vector<21x32xbf16>, vector<32x8xbf16>, vector<21x8xf32> -> vector<21x8xf32>
    %c1_45 = arith.constant 1 : index
    %c0_46 = arith.constant 0 : index
    %c0_47 = arith.constant 0 : index
    %63 = vector.load %arg9[%c1_45, %c0_46, %c0_47] : memref<4x1x8xf32, #tpu.memory_space<vmem>>, vector<1x1x8xf32>
    %64 = vector.shape_cast %63 : vector<1x1x8xf32> to vector<1x8xf32>
    %65 = vector.broadcast %64 : vector<1x8xf32> to vector<21x8xf32>
    %66 = arith.addf %62, %65 : vector<21x8xf32>
    %c1_48 = arith.constant 1 : index
    %c0_49 = arith.constant 0 : index
    %c0_50 = arith.constant 0 : index
    %67 = vector.load %arg10[%c1_48, %c0_49, %c0_50] : memref<4x32x8xbf16, #tpu.memory_space<vmem>>, vector<1x32x8xbf16>
    %68 = vector.shape_cast %67 : vector<1x32x8xbf16> to vector<32x8xbf16>
    %cst_51 = arith.constant dense<0.000000e+00> : vector<21x8xf32>
    %69 = tpu.matmul %38, %68, %cst_51 {dimension_numbers = #tpu.dot_dimension_numbers<[1], [0], [0], [1], [0, 0, 1, 1], [], []>} : vector<21x32xbf16>, vector<32x8xbf16>, vector<21x8xf32> -> vector<21x8xf32>
    %c1_52 = arith.constant 1 : index
    %c0_53 = arith.constant 0 : index
    %c0_54 = arith.constant 0 : index
    %70 = vector.load %arg11[%c1_52, %c0_53, %c0_54] : memref<4x1x8xf32, #tpu.memory_space<vmem>>, vector<1x1x8xf32>
    %71 = vector.shape_cast %70 : vector<1x1x8xf32> to vector<1x8xf32>
    %72 = vector.broadcast %71 : vector<1x8xf32> to vector<21x8xf32>
    %73 = arith.addf %69, %72 : vector<21x8xf32>
    %c1_55 = arith.constant 1 : index
    %c0_56 = arith.constant 0 : index
    %c0_57 = arith.constant 0 : index
    %74 = vector.load %arg12[%c1_55, %c0_56, %c0_57] : memref<4x32x8xbf16, #tpu.memory_space<vmem>>, vector<1x32x8xbf16>
    %75 = vector.shape_cast %74 : vector<1x32x8xbf16> to vector<32x8xbf16>
    %cst_58 = arith.constant dense<0.000000e+00> : vector<21x8xf32>
    %76 = tpu.matmul %38, %75, %cst_58 {dimension_numbers = #tpu.dot_dimension_numbers<[1], [0], [0], [1], [0, 0, 1, 1], [], []>} : vector<21x32xbf16>, vector<32x8xbf16>, vector<21x8xf32> -> vector<21x8xf32>
    %c1_59 = arith.constant 1 : index
    %c0_60 = arith.constant 0 : index
    %c0_61 = arith.constant 0 : index
    %77 = vector.load %arg13[%c1_59, %c0_60, %c0_61] : memref<4x1x8xf32, #tpu.memory_space<vmem>>, vector<1x1x8xf32>
    %78 = vector.shape_cast %77 : vector<1x1x8xf32> to vector<1x8xf32>
    %79 = vector.broadcast %78 : vector<1x8xf32> to vector<21x8xf32>
    %80 = arith.addf %76, %79 : vector<21x8xf32>
    %c2 = arith.constant 2 : index
    %c0_62 = arith.constant 0 : index
    %c0_63 = arith.constant 0 : index
    %81 = vector.load %arg8[%c2, %c0_62, %c0_63] : memref<4x32x8xbf16, #tpu.memory_space<vmem>>, vector<1x32x8xbf16>
    %82 = vector.shape_cast %81 : vector<1x32x8xbf16> to vector<32x8xbf16>
    %cst_64 = arith.constant dense<0.000000e+00> : vector<21x8xf32>
    %83 = tpu.matmul %38, %82, %cst_64 {dimension_numbers = #tpu.dot_dimension_numbers<[1], [0], [0], [1], [0, 0, 1, 1], [], []>} : vector<21x32xbf16>, vector<32x8xbf16>, vector<21x8xf32> -> vector<21x8xf32>
    %c2_65 = arith.constant 2 : index
    %c0_66 = arith.constant 0 : index
    %c0_67 = arith.constant 0 : index
    %84 = vector.load %arg9[%c2_65, %c0_66, %c0_67] : memref<4x1x8xf32, #tpu.memory_space<vmem>>, vector<1x1x8xf32>
    %85 = vector.shape_cast %84 : vector<1x1x8xf32> to vector<1x8xf32>
    %86 = vector.broadcast %85 : vector<1x8xf32> to vector<21x8xf32>
    %87 = arith.addf %83, %86 : vector<21x8xf32>
    %c2_68 = arith.constant 2 : index
    %c0_69 = arith.constant 0 : index
    %c0_70 = arith.constant 0 : index
    %88 = vector.load %arg10[%c2_68, %c0_69, %c0_70] : memref<4x32x8xbf16, #tpu.memory_space<vmem>>, vector<1x32x8xbf16>
    %89 = vector.shape_cast %88 : vector<1x32x8xbf16> to vector<32x8xbf16>
    %cst_71 = arith.constant dense<0.000000e+00> : vector<21x8xf32>
    %90 = tpu.matmul %38, %89, %cst_71 {dimension_numbers = #tpu.dot_dimension_numbers<[1], [0], [0], [1], [0, 0, 1, 1], [], []>} : vector<21x32xbf16>, vector<32x8xbf16>, vector<21x8xf32> -> vector<21x8xf32>
    %c2_72 = arith.constant 2 : index
    %c0_73 = arith.constant 0 : index
    %c0_74 = arith.constant 0 : index
    %91 = vector.load %arg11[%c2_72, %c0_73, %c0_74] : memref<4x1x8xf32, #tpu.memory_space<vmem>>, vector<1x1x8xf32>
    %92 = vector.shape_cast %91 : vector<1x1x8xf32> to vector<1x8xf32>
    %93 = vector.broadcast %92 : vector<1x8xf32> to vector<21x8xf32>
    %94 = arith.addf %90, %93 : vector<21x8xf32>
    %c2_75 = arith.constant 2 : index
    %c0_76 = arith.constant 0 : index
    %c0_77 = arith.constant 0 : index
    %95 = vector.load %arg12[%c2_75, %c0_76, %c0_77] : memref<4x32x8xbf16, #tpu.memory_space<vmem>>, vector<1x32x8xbf16>
    %96 = vector.shape_cast %95 : vector<1x32x8xbf16> to vector<32x8xbf16>
    %cst_78 = arith.constant dense<0.000000e+00> : vector<21x8xf32>
    %97 = tpu.matmul %38, %96, %cst_78 {dimension_numbers = #tpu.dot_dimension_numbers<[1], [0], [0], [1], [0, 0, 1, 1], [], []>} : vector<21x32xbf16>, vector<32x8xbf16>, vector<21x8xf32> -> vector<21x8xf32>
    %c2_79 = arith.constant 2 : index
    %c0_80 = arith.constant 0 : index
    %c0_81 = arith.constant 0 : index
    %98 = vector.load %arg13[%c2_79, %c0_80, %c0_81] : memref<4x1x8xf32, #tpu.memory_space<vmem>>, vector<1x1x8xf32>
    %99 = vector.shape_cast %98 : vector<1x1x8xf32> to vector<1x8xf32>
    %100 = vector.broadcast %99 : vector<1x8xf32> to vector<21x8xf32>
    %101 = arith.addf %97, %100 : vector<21x8xf32>
    %c3 = arith.constant 3 : index
    %c0_82 = arith.constant 0 : index
    %c0_83 = arith.constant 0 : index
    %102 = vector.load %arg8[%c3, %c0_82, %c0_83] : memref<4x32x8xbf16, #tpu.memory_space<vmem>>, vector<1x32x8xbf16>
    %103 = vector.shape_cast %102 : vector<1x32x8xbf16> to vector<32x8xbf16>
    %cst_84 = arith.constant dense<0.000000e+00> : vector<21x8xf32>
    %104 = tpu.matmul %38, %103, %cst_84 {dimension_numbers = #tpu.dot_dimension_numbers<[1], [0], [0], [1], [0, 0, 1, 1], [], []>} : vector<21x32xbf16>, vector<32x8xbf16>, vector<21x8xf32> -> vector<21x8xf32>
    %c3_85 = arith.constant 3 : index
    %c0_86 = arith.constant 0 : index
    %c0_87 = arith.constant 0 : index
    %105 = vector.load %arg9[%c3_85, %c0_86, %c0_87] : memref<4x1x8xf32, #tpu.memory_space<vmem>>, vector<1x1x8xf32>
    %106 = vector.shape_cast %105 : vector<1x1x8xf32> to vector<1x8xf32>
    %107 = vector.broadcast %106 : vector<1x8xf32> to vector<21x8xf32>
    %108 = arith.addf %104, %107 : vector<21x8xf32>
    %c3_88 = arith.constant 3 : index
    %c0_89 = arith.constant 0 : index
    %c0_90 = arith.constant 0 : index
    %109 = vector.load %arg10[%c3_88, %c0_89, %c0_90] : memref<4x32x8xbf16, #tpu.memory_space<vmem>>, vector<1x32x8xbf16>
    %110 = vector.shape_cast %109 : vector<1x32x8xbf16> to vector<32x8xbf16>
    %cst_91 = arith.constant dense<0.000000e+00> : vector<21x8xf32>
    %111 = tpu.matmul %38, %110, %cst_91 {dimension_numbers = #tpu.dot_dimension_numbers<[1], [0], [0], [1], [0, 0, 1, 1], [], []>} : vector<21x32xbf16>, vector<32x8xbf16>, vector<21x8xf32> -> vector<21x8xf32>
    %c3_92 = arith.constant 3 : index
    %c0_93 = arith.constant 0 : index
    %c0_94 = arith.constant 0 : index
    %112 = vector.load %arg11[%c3_92, %c0_93, %c0_94] : memref<4x1x8xf32, #tpu.memory_space<vmem>>, vector<1x1x8xf32>
    %113 = vector.shape_cast %112 : vector<1x1x8xf32> to vector<1x8xf32>
    %114 = vector.broadcast %113 : vector<1x8xf32> to vector<21x8xf32>
    %115 = arith.addf %111, %114 : vector<21x8xf32>
    %c3_95 = arith.constant 3 : index
    %c0_96 = arith.constant 0 : index
    %c0_97 = arith.constant 0 : index
    %116 = vector.load %arg12[%c3_95, %c0_96, %c0_97] : memref<4x32x8xbf16, #tpu.memory_space<vmem>>, vector<1x32x8xbf16>
    %117 = vector.shape_cast %116 : vector<1x32x8xbf16> to vector<32x8xbf16>
    %cst_98 = arith.constant dense<0.000000e+00> : vector<21x8xf32>
    %118 = tpu.matmul %38, %117, %cst_98 {dimension_numbers = #tpu.dot_dimension_numbers<[1], [0], [0], [1], [0, 0, 1, 1], [], []>} : vector<21x32xbf16>, vector<32x8xbf16>, vector<21x8xf32> -> vector<21x8xf32>
    %c3_99 = arith.constant 3 : index
    %c0_100 = arith.constant 0 : index
    %c0_101 = arith.constant 0 : index
    %119 = vector.load %arg13[%c3_99, %c0_100, %c0_101] : memref<4x1x8xf32, #tpu.memory_space<vmem>>, vector<1x1x8xf32>
    %120 = vector.shape_cast %119 : vector<1x1x8xf32> to vector<1x8xf32>
    %121 = vector.broadcast %120 : vector<1x8xf32> to vector<21x8xf32>
    %122 = arith.addf %118, %121 : vector<21x8xf32>
    %123 = vector.shape_cast %45 : vector<21x8xf32> to vector<1x21x8xf32>
    %124 = vector.shape_cast %66 : vector<21x8xf32> to vector<1x21x8xf32>
    %125 = vector.shape_cast %87 : vector<21x8xf32> to vector<1x21x8xf32>
    %126 = vector.shape_cast %108 : vector<21x8xf32> to vector<1x21x8xf32>
    %127 = tpu.concatenate %123, %124, %125, %126 in 0 : vector<1x21x8xf32>, vector<1x21x8xf32>, vector<1x21x8xf32>, vector<1x21x8xf32> -> vector<4x21x8xf32>
    %cst_102 = arith.constant 0.353553385 : f32
    %128 = vector.broadcast %cst_102 : f32 to vector<4x21x8xf32>
    %129 = arith.mulf %127, %128 : vector<4x21x8xf32>
    %130 = vector.shape_cast %52 : vector<21x8xf32> to vector<1x21x8xf32>
    %131 = vector.shape_cast %73 : vector<21x8xf32> to vector<1x21x8xf32>
    %132 = vector.shape_cast %94 : vector<21x8xf32> to vector<1x21x8xf32>
    %133 = vector.shape_cast %115 : vector<21x8xf32> to vector<1x21x8xf32>
    %134 = tpu.concatenate %130, %131, %132, %133 in 0 : vector<1x21x8xf32>, vector<1x21x8xf32>, vector<1x21x8xf32>, vector<1x21x8xf32> -> vector<4x21x8xf32>
    %135 = vector.shape_cast %59 : vector<21x8xf32> to vector<1x21x8xf32>
    %136 = vector.shape_cast %80 : vector<21x8xf32> to vector<1x21x8xf32>
    %137 = vector.shape_cast %101 : vector<21x8xf32> to vector<1x21x8xf32>
    %138 = vector.shape_cast %122 : vector<21x8xf32> to vector<1x21x8xf32>
    %139 = tpu.concatenate %135, %136, %137, %138 in 0 : vector<1x21x8xf32>, vector<1x21x8xf32>, vector<1x21x8xf32>, vector<1x21x8xf32> -> vector<4x21x8xf32>
    %140 = arith.truncf %129 : vector<4x21x8xf32> to vector<4x21x8xbf16>
    %141 = arith.truncf %134 : vector<4x21x8xf32> to vector<4x21x8xbf16>
    "tpu.trace_start"() <{level = 10 : i32, message = "hqd,hkd->hqk"}> : () -> ()
    %cst_103 = arith.constant dense<0.000000e+00> : vector<4x21x21xf32>
    %142 = tpu.matmul %140, %141, %cst_103 {dimension_numbers = #tpu.dot_dimension_numbers<[2], [2], [1], [1], [0, 0, 0, 1, 1, 1], [0], [0]>} : vector<4x21x8xbf16>, vector<4x21x8xbf16>, vector<4x21x21xf32> -> vector<4x21x21xf32>
    "tpu.trace_stop"() : () -> ()
    %cst_104 = arith.constant dense<0xFF800000> : vector<4x21xf32>
    %143 = vector.multi_reduction <maximumf>, %142, %cst_104 [2] : vector<4x21x21xf32> to vector<4x21xf32>
    %144 = vector.shape_cast %143 : vector<4x21xf32> to vector<4x21x1xf32>
    %145 = vector.broadcast %144 : vector<4x21x1xf32> to vector<4x21x21xf32>
    %146 = arith.subf %142, %145 : vector<4x21x21xf32>
    %147 = math.exp %146 : vector<4x21x21xf32>
    %cst_105 = arith.constant dense<0.000000e+00> : vector<4x21xf32>
    %148 = vector.multi_reduction <add>, %147, %cst_105 [2] : vector<4x21x21xf32> to vector<4x21xf32>
    %149 = vector.shape_cast %148 : vector<4x21xf32> to vector<4x21x1xf32>
    %150 = tpu.reciprocal %149 {approx = true} : vector<4x21x1xf32> -> vector<4x21x1xf32>
    %151 = vector.broadcast %150 : vector<4x21x1xf32> to vector<4x21x21xf32>
    %152 = arith.mulf %147, %151 : vector<4x21x21xf32>
    %153 = arith.truncf %152 : vector<4x21x21xf32> to vector<4x21x21xbf16>
    %154 = arith.truncf %139 : vector<4x21x8xf32> to vector<4x21x8xbf16>
    "tpu.trace_start"() <{level = 10 : i32, message = "hqk,hkd->hqd"}> : () -> ()
    %cst_106 = arith.constant dense<0.000000e+00> : vector<4x21x8xf32>
    %155 = tpu.matmul %153, %154, %cst_106 {dimension_numbers = #tpu.dot_dimension_numbers<[2], [1], [1], [2], [0, 0, 0, 1, 1, 2], [0], [0]>} : vector<4x21x21xbf16>, vector<4x21x8xbf16>, vector<4x21x8xf32> -> vector<4x21x8xf32>
    %cst_107 = arith.constant 0.000000e+00 : f32
    "tpu.trace_stop"() : () -> ()
    %156 = vector.broadcast %cst_107 : f32 to vector<21x32xf32>
    %157 = vector.extract_strided_slice %155 {offsets = [0, 0, 0], sizes = [1, 21, 8], strides = [1, 1, 1]} : vector<4x21x8xf32> to vector<1x21x8xf32>
    %158 = vector.shape_cast %157 : vector<1x21x8xf32> to vector<21x8xf32>
    %159 = arith.truncf %158 : vector<21x8xf32> to vector<21x8xbf16>
    %c0_108 = arith.constant 0 : index
    %c0_109 = arith.constant 0 : index
    %c0_110 = arith.constant 0 : index
    %160 = vector.load %arg14[%c0_108, %c0_109, %c0_110] : memref<4x8x32xbf16, #tpu.memory_space<vmem>>, vector<1x8x32xbf16>
    %161 = vector.shape_cast %160 : vector<1x8x32xbf16> to vector<8x32xbf16>
    %cst_111 = arith.constant dense<0.000000e+00> : vector<21x32xf32>
    %162 = tpu.matmul %159, %161, %cst_111 {dimension_numbers = #tpu.dot_dimension_numbers<[1], [0], [0], [1], [0, 0, 1, 1], [], []>} : vector<21x8xbf16>, vector<8x32xbf16>, vector<21x32xf32> -> vector<21x32xf32>
    %163 = arith.addf %156, %162 : vector<21x32xf32>
    %164 = vector.extract_strided_slice %155 {offsets = [1, 0, 0], sizes = [1, 21, 8], strides = [1, 1, 1]} : vector<4x21x8xf32> to vector<1x21x8xf32>
    %165 = vector.shape_cast %164 : vector<1x21x8xf32> to vector<21x8xf32>
    %166 = arith.truncf %165 : vector<21x8xf32> to vector<21x8xbf16>
    %c1_112 = arith.constant 1 : index
    %c0_113 = arith.constant 0 : index
    %c0_114 = arith.constant 0 : index
    %167 = vector.load %arg14[%c1_112, %c0_113, %c0_114] : memref<4x8x32xbf16, #tpu.memory_space<vmem>>, vector<1x8x32xbf16>
    %168 = vector.shape_cast %167 : vector<1x8x32xbf16> to vector<8x32xbf16>
    %cst_115 = arith.constant dense<0.000000e+00> : vector<21x32xf32>
    %169 = tpu.matmul %166, %168, %cst_115 {dimension_numbers = #tpu.dot_dimension_numbers<[1], [0], [0], [1], [0, 0, 1, 1], [], []>} : vector<21x8xbf16>, vector<8x32xbf16>, vector<21x32xf32> -> vector<21x32xf32>
    %170 = arith.addf %163, %169 : vector<21x32xf32>
    %171 = vector.extract_strided_slice %155 {offsets = [2, 0, 0], sizes = [1, 21, 8], strides = [1, 1, 1]} : vector<4x21x8xf32> to vector<1x21x8xf32>
    %172 = vector.shape_cast %171 : vector<1x21x8xf32> to vector<21x8xf32>
    %173 = arith.truncf %172 : vector<21x8xf32> to vector<21x8xbf16>
    %c2_116 = arith.constant 2 : index
    %c0_117 = arith.constant 0 : index
    %c0_118 = arith.constant 0 : index
    %174 = vector.load %arg14[%c2_116, %c0_117, %c0_118] : memref<4x8x32xbf16, #tpu.memory_space<vmem>>, vector<1x8x32xbf16>
    %175 = vector.shape_cast %174 : vector<1x8x32xbf16> to vector<8x32xbf16>
    %cst_119 = arith.constant dense<0.000000e+00> : vector<21x32xf32>
    %176 = tpu.matmul %173, %175, %cst_119 {dimension_numbers = #tpu.dot_dimension_numbers<[1], [0], [0], [1], [0, 0, 1, 1], [], []>} : vector<21x8xbf16>, vector<8x32xbf16>, vector<21x32xf32> -> vector<21x32xf32>
    %177 = arith.addf %170, %176 : vector<21x32xf32>
    %178 = vector.extract_strided_slice %155 {offsets = [3, 0, 0], sizes = [1, 21, 8], strides = [1, 1, 1]} : vector<4x21x8xf32> to vector<1x21x8xf32>
    %179 = vector.shape_cast %178 : vector<1x21x8xf32> to vector<21x8xf32>
    %180 = arith.truncf %179 : vector<21x8xf32> to vector<21x8xbf16>
    %c3_120 = arith.constant 3 : index
    %c0_121 = arith.constant 0 : index
    %c0_122 = arith.constant 0 : index
    %181 = vector.load %arg14[%c3_120, %c0_121, %c0_122] : memref<4x8x32xbf16, #tpu.memory_space<vmem>>, vector<1x8x32xbf16>
    %182 = vector.shape_cast %181 : vector<1x8x32xbf16> to vector<8x32xbf16>
    %cst_123 = arith.constant dense<0.000000e+00> : vector<21x32xf32>
    %183 = tpu.matmul %180, %182, %cst_123 {dimension_numbers = #tpu.dot_dimension_numbers<[1], [0], [0], [1], [0, 0, 1, 1], [], []>} : vector<21x8xbf16>, vector<8x32xbf16>, vector<21x32xf32> -> vector<21x32xf32>
    %184 = arith.addf %177, %183 : vector<21x32xf32>
    %185 = arith.addf %13, %184 : vector<21x32xf32>
    %c0_124 = arith.constant 0 : index
    %c0_125 = arith.constant 0 : index
    %186 = vector.load %arg15[%c0_124, %c0_125] : memref<1x32xf32, #tpu.memory_space<vmem>>, vector<1x32xf32>
    %187 = vector.broadcast %186 : vector<1x32xf32> to vector<21x32xf32>
    %188 = arith.addf %185, %187 : vector<21x32xf32>
    %c0_126 = arith.constant 0 : index
    %c0_127 = arith.constant 0 : index
    %189 = vector.load %arg16[%c0_126, %c0_127] : memref<1x32xf32, #tpu.memory_space<vmem>>, vector<1x32xf32>
    %c0_128 = arith.constant 0 : index
    %c0_129 = arith.constant 0 : index
    %190 = vector.load %arg17[%c0_128, %c0_129] : memref<1x32xf32, #tpu.memory_space<vmem>>, vector<1x32xf32>
    %cst_130 = arith.constant dense<0.000000e+00> : vector<21xf32>
    %191 = vector.multi_reduction <add>, %188, %cst_130 [1] : vector<21x32xf32> to vector<21xf32>
    %192 = vector.shape_cast %191 : vector<21xf32> to vector<21x1xf32>
    %cst_131 = arith.constant 3.200000e+01 : f32
    %193 = vector.broadcast %cst_131 : f32 to vector<21x1xf32>
    %194 = arith.divf %192, %193 : vector<21x1xf32>
    %195 = vector.broadcast %194 : vector<21x1xf32> to vector<21x32xf32>
    %196 = arith.subf %188, %195 : vector<21x32xf32>
    %197 = arith.mulf %196, %196 : vector<21x32xf32>
    %cst_132 = arith.constant dense<0.000000e+00> : vector<21xf32>
    %198 = vector.multi_reduction <add>, %197, %cst_132 [1] : vector<21x32xf32> to vector<21xf32>
    %199 = vector.shape_cast %198 : vector<21xf32> to vector<21x1xf32>
    %cst_133 = arith.constant 3.200000e+01 : f32
    %200 = vector.broadcast %cst_133 : f32 to vector<21x1xf32>
    %201 = arith.divf %199, %200 : vector<21x1xf32>
    %202 = vector.broadcast %194 : vector<21x1xf32> to vector<21x32xf32>
    %203 = arith.subf %188, %202 : vector<21x32xf32>
    %cst_134 = arith.constant 9.99999974E-6 : f32
    %204 = vector.broadcast %cst_134 : f32 to vector<21x1xf32>
    %205 = arith.addf %201, %204 : vector<21x1xf32>
    %206 = math.rsqrt %205 : vector<21x1xf32>
    %207 = vector.broadcast %206 : vector<21x1xf32> to vector<21x32xf32>
    %208 = arith.mulf %203, %207 : vector<21x32xf32>
    %209 = vector.broadcast %189 : vector<1x32xf32> to vector<21x32xf32>
    %210 = arith.mulf %208, %209 : vector<21x32xf32>
    %211 = vector.broadcast %190 : vector<1x32xf32> to vector<21x32xf32>
    %212 = arith.addf %210, %211 : vector<21x32xf32>
    %213 = arith.truncf %212 : vector<21x32xf32> to vector<21x32xbf16>
    %c0_135 = arith.constant 0 : index
    %c0_136 = arith.constant 0 : index
    %214 = vector.load %arg18[%c0_135, %c0_136] : memref<32x128xbf16, #tpu.memory_space<vmem>>, vector<32x128xbf16>
    %cst_137 = arith.constant dense<0.000000e+00> : vector<21x128xf32>
    %215 = tpu.matmul %213, %214, %cst_137 {dimension_numbers = #tpu.dot_dimension_numbers<[1], [0], [0], [1], [0, 0, 1, 1], [], []>} : vector<21x32xbf16>, vector<32x128xbf16>, vector<21x128xf32> -> vector<21x128xf32>
    %c0_138 = arith.constant 0 : index
    %c0_139 = arith.constant 0 : index
    %216 = vector.load %arg19[%c0_138, %c0_139] : memref<1x128xf32, #tpu.memory_space<vmem>>, vector<1x128xf32>
    %217 = vector.broadcast %216 : vector<1x128xf32> to vector<21x128xf32>
    %218 = arith.addf %215, %217 : vector<21x128xf32>
    %cst_140 = arith.constant 5.000000e-01 : f32
    %219 = vector.broadcast %cst_140 : f32 to vector<21x128xf32>
    %220 = arith.mulf %219, %218 : vector<21x128xf32>
    %cst_141 = arith.constant 0.707106769 : f32
    %221 = vector.broadcast %cst_141 : f32 to vector<21x128xf32>
    %222 = arith.mulf %218, %221 : vector<21x128xf32>
    %223 = math.absf %222 : vector<21x128xf32>
    %cst_142 = arith.constant 0.327591091 : f32
    %224 = vector.broadcast %cst_142 : f32 to vector<21x128xf32>
    %225 = arith.mulf %224, %223 : vector<21x128xf32>
    %cst_143 = arith.constant 1.000000e+00 : f32
    %226 = vector.broadcast %cst_143 : f32 to vector<21x128xf32>
    %227 = arith.addf %226, %225 : vector<21x128xf32>
    %cst_144 = arith.constant 1.000000e+00 : f32
    %228 = vector.broadcast %cst_144 : f32 to vector<21x128xf32>
    %229 = arith.divf %228, %227 : vector<21x128xf32>
    %cst_145 = arith.constant 1.06140542 : f32
    %230 = vector.broadcast %cst_145 : f32 to vector<21x128xf32>
    %231 = arith.mulf %230, %229 : vector<21x128xf32>
    %cst_146 = arith.constant 1.45315206 : f32
    %232 = vector.broadcast %cst_146 : f32 to vector<21x128xf32>
    %233 = arith.subf %231, %232 : vector<21x128xf32>
    %234 = arith.mulf %233, %229 : vector<21x128xf32>
    %cst_147 = arith.constant 1.42141378 : f32
    %235 = vector.broadcast %cst_147 : f32 to vector<21x128xf32>
    %236 = arith.addf %234, %235 : vector<21x128xf32>
    %237 = arith.mulf %236, %229 : vector<21x128xf32>
    %cst_148 = arith.constant 0.284496725 : f32
    %238 = vector.broadcast %cst_148 : f32 to vector<21x128xf32>
    %239 = arith.subf %237, %238 : vector<21x128xf32>
    %240 = arith.mulf %239, %229 : vector<21x128xf32>
    %cst_149 = arith.constant 0.254829586 : f32
    %241 = vector.broadcast %cst_149 : f32 to vector<21x128xf32>
    %242 = arith.addf %240, %241 : vector<21x128xf32>
    %243 = arith.mulf %242, %229 : vector<21x128xf32>
    %cst_150 = arith.constant 0.000000e+00 : f32
    %244 = vector.broadcast %cst_150 : f32 to vector<21x128xf32>
    %245 = arith.subf %244, %223 : vector<21x128xf32>
    %246 = arith.mulf %245, %223 : vector<21x128xf32>
    %247 = math.exp %246 : vector<21x128xf32>
    %248 = arith.mulf %243, %247 : vector<21x128xf32>
    %cst_151 = arith.constant 1.000000e+00 : f32
    %249 = vector.broadcast %cst_151 : f32 to vector<21x128xf32>
    %250 = arith.subf %249, %248 : vector<21x128xf32>
    %cst_152 = arith.constant 0.000000e+00 : f32
    %251 = vector.broadcast %cst_152 : f32 to vector<21x128xf32>
    %252 = arith.cmpf olt, %222, %251 : vector<21x128xf32>
    %cst_153 = arith.constant 0.000000e+00 : f32
    %253 = vector.broadcast %cst_153 : f32 to vector<21x128xf32>
    %254 = arith.subf %253, %250 : vector<21x128xf32>
    %255 = arith.select %252, %254, %250 : vector<21x128xi1>, vector<21x128xf32>
    %cst_154 = arith.constant 1.000000e+00 : f32
    %256 = vector.broadcast %cst_154 : f32 to vector<21x128xf32>
    %257 = arith.addf %256, %255 : vector<21x128xf32>
    %258 = arith.mulf %220, %257 : vector<21x128xf32>
    %259 = arith.truncf %258 : vector<21x128xf32> to vector<21x128xbf16>
    %c0_155 = arith.constant 0 : index
    %c0_156 = arith.constant 0 : index
    %260 = vector.load %arg20[%c0_155, %c0_156] : memref<128x32xbf16, #tpu.memory_space<vmem>>, vector<128x32xbf16>
    %cst_157 = arith.constant dense<0.000000e+00> : vector<21x32xf32>
    %261 = tpu.matmul %259, %260, %cst_157 {dimension_numbers = #tpu.dot_dimension_numbers<[1], [0], [0], [1], [0, 0, 1, 1], [], []>} : vector<21x128xbf16>, vector<128x32xbf16>, vector<21x32xf32> -> vector<21x32xf32>
    %c0_158 = arith.constant 0 : index
    %c0_159 = arith.constant 0 : index
    %262 = vector.load %arg21[%c0_158, %c0_159] : memref<1x32xf32, #tpu.memory_space<vmem>>, vector<1x32xf32>
    %263 = vector.broadcast %262 : vector<1x32xf32> to vector<21x32xf32>
    %264 = arith.addf %261, %263 : vector<21x32xf32>
    %265 = arith.addf %188, %264 : vector<21x32xf32>
    %c0_160 = arith.constant 0 : index
    %c0_161 = arith.constant 0 : index
    %c0_162 = arith.constant 0 : index
    %266 = vector.load %arg22[%c0_160, %c0_161, %c0_162] : memref<1x21x32xf32, #tpu.memory_space<vmem>>, vector<1x21x32xf32>
    %267 = vector.shape_cast %266 : vector<1x21x32xf32> to vector<21x32xf32>
    %268 = vector.shape_cast %265 : vector<21x32xf32> to vector<1x21x32xf32>
    tpu.vector_store %arg22[%c0_160, %c0_161, %c0_162], %268 {strides = array<i32>} : memref<1x21x32xf32, #tpu.memory_space<vmem>>, vector<1x21x32xf32>,
    return
  }
  func.func @transform_0(%arg0: i32) -> (i32, i32, i32) {
    %c0_i32 = arith.constant 0 : i32
    %c0_i32_0 = arith.constant 0 : i32
    %c0_i32_1 = arith.constant 0 : i32
    return %arg0, %c0_i32, %c0_i32_0 : i32, i32, i32
  }
  func.func @transform_1(%arg0: i32) -> (i32, i32, i32) {
    %c0_i32 = arith.constant 0 : i32
    %c0_i32_0 = arith.constant 0 : i32
    %c0_i32_1 = arith.constant 0 : i32
    return %arg0, %c0_i32, %c0_i32_0 : i32, i32, i32
  }
  func.func @transform_2(%arg0: i32) -> (i32, i32) {
    %c0_i32 = arith.constant 0 : i32
    %c0_i32_0 = arith.constant 0 : i32
    %c0_i32_1 = arith.constant 0 : i32
    return %c0_i32, %c0_i32_0 : i32, i32
  }
  func.func @transform_3(%arg0: i32) -> (i32, i32) {
    %c0_i32 = arith.constant 0 : i32
    %c0_i32_0 = arith.constant 0 : i32
    %c0_i32_1 = arith.constant 0 : i32
    return %c0_i32, %c0_i32_0 : i32, i32
  }
  func.func @transform_4(%arg0: i32) -> (i32, i32) {
    %c0_i32 = arith.constant 0 : i32
    %c0_i32_0 = arith.constant 0 : i32
    %c0_i32_1 = arith.constant 0 : i32
    return %c0_i32, %c0_i32_0 : i32, i32
  }
  func.func @transform_5(%arg0: i32) -> (i32, i32) {
    %c0_i32 = arith.constant 0 : i32
    %c0_i32_0 = arith.constant 0 : i32
    %c0_i32_1 = arith.constant 0 : i32
    return %c0_i32, %c0_i32_0 : i32, i32
  }
  func.func @transform_6(%arg0: i32) -> (i32, i32) {
    %c0_i32 = arith.constant 0 : i32
    %c0_i32_0 = arith.constant 0 : i32
    %c0_i32_1 = arith.constant 0 : i32
    return %c0_i32, %c0_i32_0 : i32, i32
  }
  func.func @transform_7(%arg0: i32) -> (i32, i32, i32) {
    %c0_i32 = arith.constant 0 : i32
    %c0_i32_0 = arith.constant 0 : i32
    %c0_i32_1 = arith.constant 0 : i32
    %c0_i32_2 = arith.constant 0 : i32
    return %c0_i32, %c0_i32_0, %c0_i32_1 : i32, i32, i32
  }
  func.func @transform_8(%arg0: i32) -> (i32, i32, i32) {
    %c0_i32 = arith.constant 0 : i32
    %c0_i32_0 = arith.constant 0 : i32
    %c0_i32_1 = arith.constant 0 : i32
    %c0_i32_2 = arith.constant 0 : i32
    return %c0_i32, %c0_i32_0, %c0_i32_1 : i32, i32, i32
  }
  func.func @transform_9(%arg0: i32) -> (i32, i32, i32) {
    %c0_i32 = arith.constant 0 : i32
    %c0_i32_0 = arith.constant 0 : i32
    %c0_i32_1 = arith.constant 0 : i32
    %c0_i32_2 = arith.constant 0 : i32
    return %c0_i32, %c0_i32_0, %c0_i32_1 : i32, i32, i32
  }
  func.func @transform_10(%arg0: i32) -> (i32, i32, i32) {
    %c0_i32 = arith.constant 0 : i32
    %c0_i32_0 = arith.constant 0 : i32
    %c0_i32_1 = arith.constant 0 : i32
    %c0_i32_2 = arith.constant 0 : i32
    return %c0_i32, %c0_i32_0, %c0_i32_1 : i32, i32, i32
  }
  func.func @transform_11(%arg0: i32) -> (i32, i32, i32) {
    %c0_i32 = arith.constant 0 : i32
    %c0_i32_0 = arith.constant 0 : i32
    %c0_i32_1 = arith.constant 0 : i32
    %c0_i32_2 = arith.constant 0 : i32
    return %c0_i32, %c0_i32_0, %c0_i32_1 : i32, i32, i32
  }
  func.func @transform_12(%arg0: i32) -> (i32, i32, i32) {
    %c0_i32 = arith.constant 0 : i32
    %c0_i32_0 = arith.constant 0 : i32
    %c0_i32_1 = arith.constant 0 : i32
    %c0_i32_2 = arith.constant 0 : i32
    return %c0_i32, %c0_i32_0, %c0_i32_1 : i32, i32, i32
  }
  func.func @transform_13(%arg0: i32) -> (i32, i32, i32) {
    %c0_i32 = arith.constant 0 : i32
    %c0_i32_0 = arith.constant 0 : i32
    %c0_i32_1 = arith.constant 0 : i32
    %c0_i32_2 = arith.constant 0 : i32
    return %c0_i32, %c0_i32_0, %c0_i32_1 : i32, i32, i32
  }
  func.func @transform_14(%arg0: i32) -> (i32, i32) {
    %c0_i32 = arith.constant 0 : i32
    %c0_i32_0 = arith.constant 0 : i32
    %c0_i32_1 = arith.constant 0 : i32
    return %c0_i32, %c0_i32_0 : i32, i32
  }
  func.func @transform_15(%arg0: i32) -> (i32, i32) {
    %c0_i32 = arith.constant 0 : i32
    %c0_i32_0 = arith.constant 0 : i32
    %c0_i32_1 = arith.constant 0 : i32
    return %c0_i32, %c0_i32_0 : i32, i32
  }
  func.func @transform_16(%arg0: i32) -> (i32, i32) {
    %c0_i32 = arith.constant 0 : i32
    %c0_i32_0 = arith.constant 0 : i32
    %c0_i32_1 = arith.constant 0 : i32
    return %c0_i32, %c0_i32_0 : i32, i32
  }
  func.func @transform_17(%arg0: i32) -> (i32, i32) {
    %c0_i32 = arith.constant 0 : i32
    %c0_i32_0 = arith.constant 0 : i32
    %c0_i32_1 = arith.constant 0 : i32
    return %c0_i32, %c0_i32_0 : i32, i32
  }
  func.func @transform_18(%arg0: i32) -> (i32, i32) {
    %c0_i32 = arith.constant 0 : i32
    %c0_i32_0 = arith.constant 0 : i32
    %c0_i32_1 = arith.constant 0 : i32
    return %c0_i32, %c0_i32_0 : i32, i32
  }
  func.func @transform_19(%arg0: i32) -> (i32, i32) {
    %c0_i32 = arith.constant 0 : i32
    %c0_i32_0 = arith.constant 0 : i32
    %c0_i32_1 = arith.constant 0 : i32
    return %c0_i32, %c0_i32_0 : i32, i32
  }
  func.func @transform_20(%arg0: i32) -> (i32, i32) {
    %c0_i32 = arith.constant 0 : i32
    %c0_i32_0 = arith.constant 0 : i32
    %c0_i32_1 = arith.constant 0 : i32
    return %c0_i32, %c0_i32_0 : i32, i32
  }
  func.func @transform_21(%arg0: i32) -> (i32, i32, i32) {
    %c0_i32 = arith.constant 0 : i32
    %c0_i32_0 = arith.constant 0 : i32
    %c0_i32_1 = arith.constant 0 : i32
    return %arg0, %c0_i32, %c0_i32_0 : i32, i32, i32
  }
}

module attributes {stable_mosaic.version = 11 : i64} {
  func.func @_matmul_kernel(%arg0: i32, %arg1: i32, %arg2: i32, %arg3: memref<16x128xbf16, #tpu.memory_space<vmem>>, %arg4: memref<128x256xbf16, #tpu.memory_space<vmem>>, %arg5: memref<1x256xf32, #tpu.memory_space<vmem>>, %arg6: memref<16x256xf32, #tpu.memory_space<vmem>>, %arg7: memref<16x256xf32, #tpu.memory_space<vmem>>) attributes {dimension_semantics = [#tpu.dimension_semantics<parallel>, #tpu.dimension_semantics<parallel>, #tpu.dimension_semantics<arbitrary>], iteration_bounds = array<i64: 1, 2, 1>, scalar_prefetch = 0 : i64, scratch_operands = 1 : i64, tpu.core_type = #tpu.core_type<tc>, window_params = [{transform_indices = @transform_0, window_bounds = array<i64: 16, 128>}, {transform_indices = @transform_1, window_bounds = array<i64: 128, 256>}, {transform_indices = @transform_2, window_bounds = array<i64: 1, 256>}, {transform_indices = @transform_3, window_bounds = array<i64: 16, 256>}]} {
    %c0_i32 = arith.constant 0 : i32
    %0 = arith.cmpi eq, %arg2, %c0_i32 : i32
    %1 = arith.extui %0 : i1 to i32
    %c0_i32_0 = arith.constant 0 : i32
    %2 = arith.cmpi ne, %1, %c0_i32_0 : i32
    scf.if %2 {
      %cst_10 = arith.constant 0.000000e+00 : f32
      %12 = vector.broadcast %cst_10 : f32 to vector<16x256xf32>
      %c0_11 = arith.constant 0 : index
      %c0_12 = arith.constant 0 : index
      %13 = vector.load %arg7[%c0_11, %c0_12] : memref<16x256xf32, #tpu.memory_space<vmem>>, vector<16x256xf32>
      tpu.vector_store %arg7[%c0_11, %c0_12], %12 {strides = array<i32>} : memref<16x256xf32, #tpu.memory_space<vmem>>, vector<16x256xf32>,
    } else {
    }
    %c0 = arith.constant 0 : index
    %c0_1 = arith.constant 0 : index
    %3 = vector.load %arg7[%c0, %c0_1] : memref<16x256xf32, #tpu.memory_space<vmem>>, vector<16x256xf32>
    %c0_2 = arith.constant 0 : index
    %c0_3 = arith.constant 0 : index
    %4 = vector.load %arg3[%c0_2, %c0_3] : memref<16x128xbf16, #tpu.memory_space<vmem>>, vector<16x128xbf16>
    %c0_4 = arith.constant 0 : index
    %c0_5 = arith.constant 0 : index
    %5 = vector.load %arg4[%c0_4, %c0_5] : memref<128x256xbf16, #tpu.memory_space<vmem>>, vector<128x256xbf16>
    %cst = arith.constant dense<0.000000e+00> : vector<16x256xf32>
    %6 = tpu.matmul %4, %5, %cst {dimension_numbers = #tpu.dot_dimension_numbers<[1], [0], [0], [1], [0, 0, 1, 1], [], []>} : vector<16x128xbf16>, vector<128x256xbf16>, vector<16x256xf32> -> vector<16x256xf32>
    %7 = arith.addf %3, %6 : vector<16x256xf32>
    %c0_6 = arith.constant 0 : index
    %c0_7 = arith.constant 0 : index
    %8 = vector.load %arg7[%c0_6, %c0_7] : memref<16x256xf32, #tpu.memory_space<vmem>>, vector<16x256xf32>
    tpu.vector_store %arg7[%c0_6, %c0_7], %7 {strides = array<i32>} : memref<16x256xf32, #tpu.memory_space<vmem>>, vector<16x256xf32>,
    %c0_i32_8 = arith.constant 0 : i32
    %9 = arith.cmpi eq, %arg2, %c0_i32_8 : i32
    %10 = arith.extui %9 : i1 to i32
    %c0_i32_9 = arith.constant 0 : i32
    %11 = arith.cmpi ne, %10, %c0_i32_9 : i32
    scf.if %11 {
      %c0_10 = arith.constant 0 : index
      %c0_11 = arith.constant 0 : index
      %12 = vector.load %arg7[%c0_10, %c0_11] : memref<16x256xf32, #tpu.memory_space<vmem>>, vector<16x256xf32>
      %c0_12 = arith.constant 0 : index
      %c0_13 = arith.constant 0 : index
      %13 = vector.load %arg5[%c0_12, %c0_13] : memref<1x256xf32, #tpu.memory_space<vmem>>, vector<1x256xf32>
      %14 = vector.broadcast %13 : vector<1x256xf32> to vector<16x256xf32>
      %15 = arith.addf %12, %14 : vector<16x256xf32>
      %c0_14 = arith.constant 0 : index
      %c0_15 = arith.constant 0 : index
      %16 = vector.load %arg6[%c0_14, %c0_15] : memref<16x256xf32, #tpu.memory_space<vmem>>, vector<16x256xf32>
      tpu.vector_store %arg6[%c0_14, %c0_15], %15 {strides = array<i32>} : memref<16x256xf32, #tpu.memory_space<vmem>>, vector<16x256xf32>,
    } else {
    }
    return
  }
  func.func @transform_0(%arg0: i32, %arg1: i32, %arg2: i32) -> (i32, i32) {
    %c0_i32 = arith.constant 0 : i32
    return %arg0, %arg2 : i32, i32
  }
  func.func @transform_1(%arg0: i32, %arg1: i32, %arg2: i32) -> (i32, i32) {
    %c0_i32 = arith.constant 0 : i32
    return %arg2, %arg1 : i32, i32
  }
  func.func @transform_2(%arg0: i32, %arg1: i32, %arg2: i32) -> (i32, i32) {
    %c0_i32 = arith.constant 0 : i32
    %c0_i32_0 = arith.constant 0 : i32
    return %c0_i32, %arg1 : i32, i32
  }
  func.func @transform_3(%arg0: i32, %arg1: i32, %arg2: i32) -> (i32, i32) {
    %c0_i32 = arith.constant 0 : i32
    return %arg0, %arg1 : i32, i32
  }
}

</mosaic_0001>

<bundles_post_ra>
// kernel: model_forward.11
= control target key start
LH: loop header
LB: loop body
LE: loop exit
PB: predicated region body
PF: predicated region fallthrough
CT: control target
= control target key end

     0   :  { %s281_s1 = inlined_call_operand.vmem [shape: bf16[128,128], index: 1, kind: input, shape index: {}]   ;;  %s282_s2 = inlined_call_operand.vmem [shape: f32[1,128], index: 2, kind: input, shape index: {}]   ;;  %s283_s0 = inlined_call_operand.vmem [shape: bf16[16,128], index: 0, kind: input, shape index: {}]   ;;  %s284_s3 = inlined_call_operand.vmem [shape: f32[16,128], index: 3, kind: output, shape index: {}]  }
   0x1   :  { %v215_v0 = vld [vmem:[%s281_s1 + $0x38] sm:$0xff]  ;;  %v214_v1 = vld [vmem:[%s281_s1 + $0x30] sm:$0xff]  ;;  %v213_v2 = vld [vmem:[%s281_s1 + $0x28] sm:$0xff] }
   0x2   :  { %94 = vmatpush.bf16.msra.mxu0 %v215_v0  ;;  %v212_v3 = vld [vmem:[%s281_s1 + $0x20] sm:$0xff]  ;;  %v211_v4 = vld [vmem:[%s281_s1 + $0x18] sm:$0xff]  ;;  %v210_v5 = vld [vmem:[%s281_s1 + $0x10] sm:$0xff] }
   0x3   :  { %v209_v6 = vld [vmem:[%s281_s1 + $0x8] sm:$0xff]  ;;  %v208_v7 = vld [vmem:[%s281_s1] sm:$0xff] }
   0x4   :  { %v207_v8 = vld [vmem:[%s283_s0] sm:$0xff] }
   0x5   :  { %v216_v9 = vld [vmem:[%s282_s2] ss:$0 sm:$0xff] }
   0x6   :  { %95 = vmatpush.bf16.msra.mxu0 %v214_v1 }
   0xa   :  { %96 = vmatpush.bf16.msra.mxu0 %v213_v2 }
   0xe   :  { %97 = vmatpush.bf16.msra.mxu0 %v212_v3 }
  0x12   :  { %98 = vmatpush.bf16.msra.mxu0 %v211_v4 }
  0x16   :  { %99 = vmatpush.bf16.msra.mxu0 %v210_v5 }
  0x1a   :  { %100 = vmatpush.bf16.msra.mxu0 %v209_v6 }
  0x1e   :  { %101 = vmatpush.bf16.msra.mxu0 %v208_v7 }
  0x21   :  { %102 = vmatmul.bf16.vlgmr.msra.gmra.mxu0 %v207_v8 }
  0x9e   :  { %v103_v10 = vpop.f32.mrf.mxu0 }
  0x9f   :  { %v121_v11 = vadd.f32 %v216_v9, %v103_v10 }
  0xa1   :  { %v205_v12 = vmul.f32 -1.442695, %v121_v11 }
  0xa3   :  { %217 = vpow2.f32 %v205_v12 }
  0xa6   :  { %v105_v13 = vpop.f32.mrf.mxu0 }
  0xa7   :  { %v122_v14 = vadd.f32 %v216_v9, %v105_v13 }
  0xa9   :  { %v218_v15 = vpop.eup %217  ;;  %v206_v16 = vmul.f32 -1.442695, %v122_v14 }
  0xaa   :  { %v129_v17 = vadd.f32 1.0, %v218_v15 }
  0xab   :  { %219 = vpow2.f32 %v206_v16 }
  0xac   :  { %221 = vrcp.f32 %v129_v17  ;;  %v142_v23 = vand.u32 2147483648, %v129_v17  ;;  %v140_v25 = vand.u32 2147483647, %v129_v17  ;;  %vm136_vm1 = vweird.f32 %v129_v17 }
  0xae   :  { %v143_v28 = vor.u32 1.1754944e-38, %v142_v23  ;;  %vm141_vm3 = vcmp.eq.f32.partialorder %v140_v25, 8.507059e+37 }
  0xb1   :  { %v220_v18 = vpop.eup %219 }
  0xb2   :  { %v222_v19 = vpop.eup %221  ;;  %v130_v20 = vadd.f32 1.0, %v220_v18 }
  0xb3   :  { %v132_v21 = vmul.f32 %v222_v19, %v129_v17  ;;  %vm137_vm0 = vweird.f32 %v222_v19 }
  0xb4   :  { %223 = vrcp.f32 %v130_v20  ;;  %vm138_vm2 = vmor %vm136_vm1, %vm137_vm0  ;;  %v157_v34 = vand.u32 2147483648, %v130_v20  ;;  %v155_v36 = vand.u32 2147483647, %v130_v20  ;;  %vm151_vm5 = vweird.f32 %v130_v20 }
  0xb5   :  { %v133_v22 = vsub.f32 1.0, %v132_v21 }
  0xb6   :  { %v158_v38 = vor.u32 1.1754944e-38, %v157_v34  ;;  %vm156_vm7 = vcmp.eq.f32.partialorder %v155_v36, 8.507059e+37 }
  0xb7   :  { %v134_v24 = vmul.f32 %v222_v19, %v133_v22 }
  0xb9   :  { %v135_v26 = vadd.f32 %v222_v19, %v134_v24 }
  0xba   :  { %v224_v27 = vpop.eup %223 }
  0xbb   :  { %v139_v29 = vsel %vm138_vm2, %v222_v19, %v135_v26  ;;  %v147_v30 = vmul.f32 %v224_v27, %v130_v20  ;;  %vm152_vm4 = vweird.f32 %v224_v27 }
  0xbc   :  { %v144_v31 = vsel %vm141_vm3, %v143_v28, %v139_v29  ;;  %vm153_vm6 = vmor %vm151_vm5, %vm152_vm4 }
  0xbd   :  { %v161_v32 = vmul.f32 %v144_v31, %v121_v11  ;;  %v148_v33 = vsub.f32 1.0, %v147_v30 }
  0xbf   :  { %163 = vst [vmem:[%s284_s3] sm:$0xff] %v161_v32  ;;  %v149_v35 = vmul.f32 %v224_v27, %v148_v33 }
  0xc1   :  { %v150_v37 = vadd.f32 %v224_v27, %v149_v35 }
  0xc3   :  { %v154_v39 = vsel %vm153_vm6, %v224_v27, %v150_v37 }
  0xc4   :  { %v159_v40 = vsel %vm156_vm7, %v158_v38, %v154_v39 }
  0xc5   :  { %v162_v41 = vmul.f32 %v159_v40, %v122_v14 }
  0xc7   :  { %164 = vst [vmem:[%s284_s3 + $0x8] sm:$0xff] %v162_v41 }

// kernel: model_forward.12
= control target key start
LH: loop header
LB: loop body
LE: loop exit
PB: predicated region body
PF: predicated region fallthrough
CT: control target
= control target key end

     0   :  { %s231_s1 = inlined_call_operand.vmem [shape: bf16[128,128], index: 1, kind: input, shape index: {}]   ;;  %s232_s2 = inlined_call_operand.vmem [shape: f32[1,128], index: 2, kind: input, shape index: {}]   ;;  %s233_s0 = inlined_call_operand.vmem [shape: bf16[16,128], index: 0, kind: input, shape index: {}]   ;;  %s234_s3 = inlined_call_operand.vmem [shape: f32[16,128], index: 3, kind: output, shape index: {}]  }
   0x1   :  { %v173_v0 = vld [vmem:[%s231_s1 + $0x38] sm:$0xff]  ;;  %v172_v1 = vld [vmem:[%s231_s1 + $0x30] sm:$0xff]  ;;  %v171_v2 = vld [vmem:[%s231_s1 + $0x28] sm:$0xff] }
   0x2   :  { %94 = vmatpush.bf16.msra.mxu0 %v173_v0  ;;  %v170_v3 = vld [vmem:[%s231_s1 + $0x20] sm:$0xff]  ;;  %v169_v4 = vld [vmem:[%s231_s1 + $0x18] sm:$0xff]  ;;  %v168_v5 = vld [vmem:[%s231_s1 + $0x10] sm:$0xff] }
   0x3   :  { %v167_v6 = vld [vmem:[%s231_s1 + $0x8] sm:$0xff]  ;;  %v166_v7 = vld [vmem:[%s231_s1] sm:$0xff] }
   0x4   :  { %v165_v8 = vld [vmem:[%s233_s0] sm:$0xff] }
   0x5   :  { %v174_v9 = vld [vmem:[%s232_s2] ss:$0 sm:$0xff] }
   0x6   :  { %95 = vmatpush.bf16.msra.mxu0 %v172_v1 }
   0xa   :  { %96 = vmatpush.bf16.msra.mxu0 %v171_v2 }
   0xe   :  { %97 = vmatpush.bf16.msra.mxu0 %v170_v3 }
  0x12   :  { %98 = vmatpush.bf16.msra.mxu0 %v169_v4 }
  0x16   :  { %99 = vmatpush.bf16.msra.mxu0 %v168_v5 }
  0x1a   :  { %100 = vmatpush.bf16.msra.mxu0 %v167_v6 }
  0x1e   :  { %101 = vmatpush.bf16.msra.mxu0 %v166_v7 }
  0x21   :  { %102 = vmatmul.bf16.vlgmr.msra.gmra.mxu0 %v165_v8 }
  0x9e   :  { %v103_v10 = vpop.f32.mrf.mxu0 }
  0x9f   :  { %v121_v11 = vadd.f32 %v174_v9, %v103_v10 }
  0xa1   :  { %123 = vst [vmem:[%s234_s3] sm:$0xff] %v121_v11 }
  0xa6   :  { %v105_v12 = vpop.f32.mrf.mxu0 }
  0xa7   :  { %v122_v13 = vadd.f32 %v174_v9, %v105_v12 }
  0xa9   :  { %124 = vst [vmem:[%s234_s3 + $0x8] sm:$0xff] %v122_v13 }

// kernel: model_forward.9
= control target key start
LH: loop header
LB: loop body
LE: loop exit
PB: predicated region body
PF: predicated region fallthrough
CT: control target
= control target key end

     0   :  { %s280_s1 = inlined_call_operand.vmem [shape: bf16[128,128], index: 1, kind: input, shape index: {}]   ;;  %s281_s2 = inlined_call_operand.vmem [shape: f32[1,128], index: 2, kind: input, shape index: {}]   ;;  %s282_s0 = inlined_call_operand.vmem [shape: bf16[32,128], index: 0, kind: input, shape index: {}]   ;;  %s283_s3 = inlined_call_operand.vmem [shape: f32[32,128], index: 3, kind: output, shape index: {}]  }
   0x1   :  { %v205_v0 = vld [vmem:[%s280_s1 + $0x38] sm:$0xff]  ;;  %v204_v1 = vld [vmem:[%s280_s1 + $0x30] sm:$0xff]  ;;  %v203_v2 = vld [vmem:[%s280_s1 + $0x28] sm:$0xff] }
   0x2   :  { %106 = vmatpush.bf16.msra.mxu0 %v205_v0  ;;  %206 = vmatpush.bf16.msra.mxu1 %v205_v0  ;;  %v202_v3 = vld [vmem:[%s280_s1 + $0x20] sm:$0xff]  ;;  %v201_v4 = vld [vmem:[%s280_s1 + $0x18] sm:$0xff]  ;;  %v200_v5 = vld [vmem:[%s280_s1 + $0x10] sm:$0xff] }
   0x3   :  { %v199_v6 = vld [vmem:[%s280_s1 + $0x8] sm:$0xff]  ;;  %v198_v7 = vld [vmem:[%s280_s1] sm:$0xff] }
   0x4   :  { %v196_v8 = vld [vmem:[%s282_s0] sm:$0xff]  ;;  %v197_v9 = vld [vmem:[%s282_s0 + $0x8] sm:$0xff] }
   0x5   :  { %v214_v10 = vld [vmem:[%s281_s2] ss:$0 sm:$0xff] }
   0x6   :  { %107 = vmatpush.bf16.msra.mxu0 %v204_v1  ;;  %207 = vmatpush.bf16.msra.mxu1 %v204_v1 }
   0xa   :  { %108 = vmatpush.bf16.msra.mxu0 %v203_v2  ;;  %208 = vmatpush.bf16.msra.mxu1 %v203_v2 }
   0xe   :  { %109 = vmatpush.bf16.msra.mxu0 %v202_v3  ;;  %209 = vmatpush.bf16.msra.mxu1 %v202_v3 }
  0x12   :  { %110 = vmatpush.bf16.msra.mxu0 %v201_v4  ;;  %210 = vmatpush.bf16.msra.mxu1 %v201_v4 }
  0x16   :  { %111 = vmatpush.bf16.msra.mxu0 %v200_v5  ;;  %211 = vmatpush.bf16.msra.mxu1 %v200_v5 }
  0x1a   :  { %112 = vmatpush.bf16.msra.mxu0 %v199_v6  ;;  %212 = vmatpush.bf16.msra.mxu1 %v199_v6 }
  0x1e   :  { %113 = vmatpush.bf16.msra.mxu0 %v198_v7  ;;  %213 = vmatpush.bf16.msra.mxu1 %v198_v7 }
  0x21   :  { %114 = vmatmul.bf16.vlgmr.msra.gmra.mxu0 %v196_v8  ;;  %119 = vmatmul.bf16.vlgmr.msra.gmra.mxu1 %v197_v9 }
  0x9e   :  { %v115_v11 = vpop.f32.mrf.mxu0  ;;  %v120_v12 = vpop.f32.mrf.mxu1 }
  0x9f   :  { %v144_v13 = vadd.f32 %v214_v10, %v115_v11  ;;  %v146_v14 = vadd.f32 %v214_v10, %v120_v12 }
  0xa1   :  { %148 = vst [vmem:[%s283_s3] sm:$0xff] %v144_v13 }
  0xa2   :  { %150 = vst [vmem:[%s283_s3 + $0x10] sm:$0xff] %v146_v14 }
  0xa6   :  { %v117_v15 = vpop.f32.mrf.mxu0  ;;  %v122_v16 = vpop.f32.mrf.mxu1 }
  0xa7   :  { %v145_v17 = vadd.f32 %v214_v10, %v117_v15  ;;  %v147_v18 = vadd.f32 %v214_v10, %v122_v16 }
  0xa9   :  { %149 = vst [vmem:[%s283_s3 + $0x8] sm:$0xff] %v145_v17 }
  0xaa   :  { %151 = vst [vmem:[%s283_s3 + $0x18] sm:$0xff] %v147_v18 }

// kernel: model_forward.16
= control target key start
LH: loop header
LB: loop body
LE: loop exit
PB: predicated region body
PF: predicated region fallthrough
CT: control target
= control target key end

     0   :  { %vm27_vm0 = vcmask 261120   ;;  %v220_v8 = vmov 32.0   ;;  %s320_s0 = inlined_call_operand.vmem [shape: f32[32,32], index: 0, kind: input, shape index: {}]   ;;  %s321_s1 = inlined_call_operand.vmem [shape: f32[1,32], index: 1, kind: input, shape index: {}]   ;;  %s322_s2 = inlined_call_operand.vmem [shape: f32[1,32], index: 2, kind: input, shape index: {}]   ;;  %s323_s4 = inlined_call_operand.vmem [shape: f32[1,128], index: 4, kind: input, shape index: {}]   ;;  %s324_s3 = inlined_call_operand.vmem [shape: bf16[32,128], index: 3, kind: input, shape index: {}]   ;;  %s325_s5 = inlined_call_operand.vmem [shape: f32[32,128], index: 5, kind: output, shape index: {}]  }
   0x1   :  { %v23_v0 = vld [vmem:[%s320_s0 + $0x10] sm:$0xff]  ;;  %v21_v1 = vld [vmem:[%s320_s0] sm:$0xff]  ;;  %v24_v4 = vld [vmem:[%s320_s0 + $0x18] sm:$0xff]  ;;  %210 = vrcp.f32 %v220_v8 }
   0x2   :  { %v34_v2 = vsel %vm27_vm0, %v23_v0, 0.0  ;;  %v28_v3 = vsel %vm27_vm0, %v21_v1, 0.0  ;;  %v22_v5 = vld [vmem:[%s320_s0 + $0x8] sm:$0xff]  ;;  %v37_v6 = vsel %vm27_vm0, %v24_v4, 0.0  ;;  %v202_v40 = vld [vmem:[%s324_s3] sm:$0xff] }
   0x3   :  { %35 = vadd.xlane.f32.xlu1 %v34_v2  ;;  %29 = vadd.xlane.f32.xlu0 %v28_v3  ;;  %v31_v7 = vsel %vm27_vm0, %v22_v5, 0.0  ;;  %v203_v35 = vld [vmem:[%s324_s3 + $0x8] sm:$0xff] }
   0x4   :  { %171 = vmatpush.bf16.msra.mxu0 %v203_v35  ;;  %204 = vmatpush.bf16.msra.mxu1 %v203_v35 }
   0x7   :  { %v211_v9 = vpop.eup %210 }
   0x8   :  { %v41_v10 = vmul.f32 32.0, %v211_v9  ;;  %vm45_vm1 = vweird.f32 %v211_v9  ;;  %172 = vmatpush.bf16.msra.mxu0 %v202_v40  ;;  %205 = vmatpush.bf16.msra.mxu1 %v202_v40 }
   0xa   :  { %v42_v11 = vsub.f32 1.0, %v41_v10  ;;  %v207_v10 = vld [vmem:[%s321_s1] ss:$0 sm:$0xff] }
   0xb   :  { %38 = vadd.xlane.f32.xlu1 %v37_v6  ;;  %32 = vadd.xlane.f32.xlu0 %v31_v7 }
   0xc   :  { %v43_v12 = vmul.f32 %v211_v9, %v42_v11 }
   0xe   :  { %v44_v13 = vadd.f32 %v211_v9, %v43_v12 }
  0x10   :  { %v46_v14 = vsel %vm45_vm1, %v211_v9, %v44_v13 }
  0x76   :  { %v36_v15 = vpop.xlane.xlu1 %35  ;;  %v30_v16 = vpop.xlane.xlu0 %29 }
  0x77   :  { %v49_v17 = vmul.f32 %v46_v14, %v36_v15  ;;  %v47_v18 = vmul.f32 %v46_v14, %v30_v16 }
  0x79   :  { %v267_v19 = vsub.f32 %v23_v0, %v49_v17  ;;  %v269_v20 = vsub.f32 %v21_v1, %v47_v18  ;;  %v208_v17 = vld [vmem:[%s322_s2] ss:$0 sm:$0xff] }
  0x7b   :  { %v57_v21 = vmul.f32 %v267_v19, %v267_v19  ;;  %v55_v22 = vmul.f32 %v269_v20, %v269_v20 }
  0x7d   :  { %v65_v23 = vsel %vm27_vm0, %v57_v21, 0.0  ;;  %v59_v24 = vsel %vm27_vm0, %v55_v22, 0.0 }
  0x7e   :  { %v39_v25 = vpop.xlane.xlu1 %38  ;;  %66 = vadd.xlane.f32.xlu0 %v65_v23  ;;  %60 = vadd.xlane.f32.xlu2 %v59_v24  ;;  %v33_v26 = vpop.xlane.xlu0 %32 }
  0x7f   :  { %v50_v27 = vmul.f32 %v46_v14, %v39_v25  ;;  %v48_v28 = vmul.f32 %v46_v14, %v33_v26 }
  0x81   :  { %v277_v29 = vsub.f32 %v24_v4, %v50_v27  ;;  %v279_v30 = vsub.f32 %v22_v5, %v48_v28 }
  0x83   :  { %v58_v31 = vmul.f32 %v277_v29, %v277_v29  ;;  %v56_v32 = vmul.f32 %v279_v30, %v279_v30 }
  0x85   :  { %v68_v33 = vsel %vm27_vm0, %v58_v31, 0.0  ;;  %v62_v34 = vsel %vm27_vm0, %v56_v32, 0.0 }
  0x86   :  { %69 = vadd.xlane.f32.xlu1 %v68_v33  ;;  %63 = vadd.xlane.f32.xlu2 %v62_v34 }
  0xf1   :  { %v61_v36 = vpop.xlane.xlu2 %60  ;;  %v67_v37 = vpop.xlane.xlu0 %66 }
  0xf2   :  { %v71_v38 = vmul.f32 %v61_v36, %v46_v14  ;;  %v73_v39 = vmul.f32 %v67_v37, %v46_v14 }
  0xf4   :  { %v75_v41 = vadd.f32 1e-05, %v71_v38  ;;  %v77_v42 = vadd.f32 1e-05, %v73_v39 }
  0xf6   :  { %212 = vrsqrt.f32 %v75_v41  ;;  %vm105_vm4 = vweird.f32 %v77_v42  ;;  %vm85_vm5 = vweird.f32 %v75_v41 }
  0xf7   :  { %214 = vrsqrt.f32 %v77_v42 }
  0xf9   :  { %v70_v43 = vpop.xlane.xlu1 %69  ;;  %v64_v44 = vpop.xlane.xlu2 %63 }
  0xfa   :  { %v74_v45 = vmul.f32 %v70_v43, %v46_v14  ;;  %v72_v46 = vmul.f32 %v64_v44, %v46_v14 }
  0xfc   :  { %v213_v47 = vpop.eup %212  ;;  %v78_v48 = vadd.f32 1e-05, %v74_v45  ;;  %v76_v49 = vadd.f32 1e-05, %v72_v46 }
  0xfd   :  { %v215_v50 = vpop.eup %214  ;;  %v80_v51 = vmul.f32 %v213_v47, %v75_v41  ;;  %vm86_vm3 = vweird.f32 %v213_v47 }
  0xfe   :  { %v100_v52 = vmul.f32 %v215_v50, %v77_v42  ;;  %216 = vrsqrt.f32 %v78_v48  ;;  %vm106_vm2 = vweird.f32 %v215_v50  ;;  %vm87_vm7 = vmor %vm85_vm5, %vm86_vm3  ;;  %vm115_vm10 = vweird.f32 %v78_v48 }
  0xff   :  { %v81_v53 = vmul.f32 %v213_v47, %v80_v51  ;;  %218 = vrsqrt.f32 %v76_v49  ;;  %vm107_vm6 = vmor %vm105_vm4, %vm106_vm2  ;;  %vm95_vm12 = vweird.f32 %v76_v49 }
 0x100   :  { %v101_v54 = vmul.f32 %v215_v50, %v100_v52 }
 0x101   :  { %v82_v55 = vmul.f32 0.5, %v81_v53 }
 0x102   :  { %v102_v56 = vmul.f32 0.5, %v101_v54 }
 0x103   :  { %v83_v57 = vsub.f32 1.5, %v82_v55 }
 0x104   :  { %v217_v58 = vpop.eup %216  ;;  %v103_v59 = vsub.f32 1.5, %v102_v56 }
 0x105   :  { %v219_v60 = vpop.eup %218  ;;  %v110_v61 = vmul.f32 %v217_v58, %v78_v48  ;;  %v84_v62 = vmul.f32 %v213_v47, %v83_v57  ;;  %vm116_vm8 = vweird.f32 %v217_v58 }
 0x106   :  { %v104_v63 = vmul.f32 %v215_v50, %v103_v59  ;;  %v90_v0 = vmul.f32 %v219_v60, %v76_v49  ;;  %vm96_vm9 = vweird.f32 %v219_v60  ;;  %vm117_vm11 = vmor %vm115_vm10, %vm116_vm8 }
 0x107   :  { %v111_v1 = vmul.f32 %v217_v58, %v110_v61  ;;  %v88_v5 = vsel %vm87_vm7, %v213_v47, %v84_v62  ;;  %vm97_vm13 = vmor %vm95_vm12, %vm96_vm9 }
 0x108   :  { %v91_v2 = vmul.f32 %v219_v60, %v90_v0  ;;  %v108_v3 = vsel %vm107_vm6, %v215_v50, %v104_v63  ;;  %v119_v11 = vmul.f32 %v88_v5, %v269_v20 }
 0x109   :  { %v112_v4 = vmul.f32 0.5, %v111_v1  ;;  %v121_v8 = vmul.f32 %v108_v3, %v267_v19 }
 0x10a   :  { %v92_v6 = vmul.f32 0.5, %v91_v2  ;;  %v126_v21 = vmul.f32 %v207_v10, %v119_v11 }
 0x10b   :  { %v113_v7 = vsub.f32 1.5, %v112_v4  ;;  %v128_v18 = vmul.f32 %v207_v10, %v121_v8 }
 0x10c   :  { %v93_v9 = vsub.f32 1.5, %v92_v6  ;;  %v133_v25 = vadd.f32 %v208_v17, %v126_v21 }
 0x10d   :  { %v114_v12 = vmul.f32 %v217_v58, %v113_v7  ;;  %v135_v23 = vadd.f32 %v208_v17, %v128_v18 }
 0x10e   :  { %v94_v13 = vmul.f32 %v219_v60, %v93_v9 }
 0x10f   :  { %v118_v14 = vsel %vm117_vm11, %v217_v58, %v114_v12 }
 0x110   :  { %v122_v15 = vmul.f32 %v118_v14, %v277_v29  ;;  %v98_v16 = vsel %vm97_vm13, %v219_v60, %v94_v13  ;;  %v209_v29 = vld [vmem:[%s323_s4] ss:$0 sm:$0xff] }
 0x111   :  { %v120_v19 = vmul.f32 %v98_v16, %v279_v30 }
 0x112   :  { %v129_v22 = vmul.f32 %v207_v10, %v122_v15 }
 0x113   :  { %v127_v20 = vmul.f32 %v207_v10, %v120_v19 }
 0x114   :  { %v136_v24 = vadd.f32 %v208_v17, %v129_v22 }
 0x115   :  { %v134_v26 = vadd.f32 %v208_v17, %v127_v20 }
 0x116   :  { %v138_v27 = vpack.c.bf16 %v136_v24, %v135_v23 }
 0x117   :  { %v137_v28 = vpack.c.bf16 %v134_v26, %v133_v25 }
 0x118   :  { %201 = vmatmul.msk.bf16.vlgmr.msra.gmra.mxu1 %vm27_vm0, %v138_v27 }
 0x119   :  { %200 = vmatmul.msk.bf16.vlgmr.msra.gmra.mxu0 %vm27_vm0, %v137_v28 }
 0x195   :  { %v179_v31 = vpop.f32.mrf.mxu1 }
 0x196   :  { %v174_v32 = vpop.f32.mrf.mxu0  ;;  %v180_v30 = vadd.f32 %v209_v29, %v179_v31 }
 0x197   :  { %v175_v33 = vadd.f32 %v209_v29, %v174_v32 }
 0x198   :  { %186 = vst [vmem:[%s325_s5 + $0x10] sm:$0xff] %v180_v30 }
 0x199   :  { %184 = vst [vmem:[%s325_s5] sm:$0xff] %v175_v33 }
 0x19d   :  { %v181_v34 = vpop.f32.mrf.mxu1 }
 0x19e   :  { %v176_v35 = vpop.f32.mrf.mxu0  ;;  %v182_v36 = vadd.f32 %v209_v29, %v181_v34 }
 0x19f   :  { %v177_v37 = vadd.f32 %v209_v29, %v176_v35 }
 0x1a0   :  { %187 = vst [vmem:[%s325_s5 + $0x18] sm:$0xff] %v182_v36 }
 0x1a1   :  { %185 = vst [vmem:[%s325_s5 + $0x8] sm:$0xff] %v177_v37 }

// kernel: model_forward.13
= control target key start
LH: loop header
LB: loop body
LE: loop exit
PB: predicated region body
PF: predicated region fallthrough
CT: control target
= control target key end

     0   :  { %s2712_s24 = smov 0   ;;  %s3200_s0 = inlined_call_operand.vmem [shape: f32[2,21,32], index: 0, kind: input, shape index: {}]   ;;  %s3201_s1 = inlined_call_operand.vmem [shape: f32[1,32], index: 1, kind: input, shape index: {}]   ;;  %s3202_s2 = inlined_call_operand.vmem [shape: f32[1,32], index: 2, kind: input, shape index: {}]   ;;  %s3203_s3 = inlined_call_operand.vmem [shape: bf16[4,32,8], index: 3, kind: input, shape index: {}]   ;;  %s3204_s4 = inlined_call_operand.vmem [shape: f32[4,1,8], index: 4, kind: input, shape index: {}]   ;;  %s3205_s5 = inlined_call_operand.vmem [shape: bf16[4,32,8], index: 5, kind: input, shape index: {}]   ;;  %s3206_s6 = inlined_call_operand.vmem [shape: f32[4,1,8], index: 6, kind: input, shape index: {}]   ;;  %s3207_s7 = inlined_call_operand.vmem [shape: bf16[4,32,8], index: 7, kind: input, shape index: {}]   ;;  %s3208_s8 = inlined_call_operand.vmem [shape: f32[4,1,8], index: 8, kind: input, shape index: {}]   ;;  %s3209_s9 = inlined_call_operand.vmem [shape: bf16[4,8,32], index: 9, kind: input, shape index: {}]   ;;  %s3210_s10 = inlined_call_operand.vmem [shape: f32[1,32], index: 10, kind: input, shape index: {}]   ;;  %s3211_s11 = inlined_call_operand.vmem [shape: f32[1,32], index: 11, kind: input, shape index: {}]   ;;  %s3212_s12 = inlined_call_operand.vmem [shape: f32[1,32], index: 12, kind: input, shape index: {}]   ;;  %s3213_s13 = inlined_call_operand.vmem [shape: bf16[32,128], index: 13, kind: input, shape index: {}]   ;;  %s3214_s14 = inlined_call_operand.vmem [shape: f32[1,128], index: 14, kind: input, shape index: {}]   ;;  %s3215_s15 = inlined_call_operand.vmem [shape: bf16[128,32], index: 15, kind: input, shape index: {}]   ;;  %s3216_s16 = inlined_call_operand.vmem [shape: f32[1,32], index: 16, kind: input, shape index: {}]   ;;  %s3217_s17 = inlined_call_operand.vmem [shape: f32[2,21,32], index: 17, kind: output, shape index: {}]  }
   0x1   :  { %3218 = sst [smem:[#allocation2_spill]] %s3200_s0 }
   0x2   :  { %3219 = sst [smem:[#allocation3_spill]] %s3201_s1 }
   0x3 LB: > { %s2218_s25 = sadd.s32 4294967295, %s2618_s24   ;;  %p2222_p0 = scmp.ge.s32.totalorder %s2618_s24, 1  ;;  %s2618_s24 = sphi %s2712_s24, %s27_s24  }
   0x4   : > { %p487_p1 = scmp.lt.s32.totalorder %s2618_s24, 3 }
   0x6   : > { %p488_p2 = pnand %p2222_p0, %p487_p1 }
   0x7   : > { %p539_p3 = scmp.lt.s32.totalorder (!%p488_p2), %s2218_s25, 1  ;;  %s3220_s29 = sld [smem:[#allocation2_spill]] (!%p488_p2) }
   0x8   : > { %491 = sbr.rel (%p488_p2) target bundleno = 1841 (0x731), region = 88  ;;  %s3221_s20 = sld [smem:[#allocation3_spill]] (!%p488_p2) }
   0xd   : > { %s3223_s25 = smov (!%p539_p3, %s2218_s25), 1  ;;  %vm562_vm0 = vcmask 258048   ;;  %vm555_vm1 = vcmask 261120   ;;  %v2620_v6 = vmov 32.0   ;;  %v2468_v28 = vld [vmem:[%s3203_s3 + $0x8] sm:$0xff]  ;;  %v2467_v30 = vld [vmem:[%s3203_s3] sm:$0xff] }
   0xe   : > { %s2505_s26 = smul.u32 24, %s3223_s25  ;;  %2535 = vrcp.f32 %v2620_v6  ;;  %v2470_v29 = vld [vmem:[%s3205_s5 + $0x8] sm:$0xff]  ;;  %2501 = vmatpush.bf16.msra.mxu2 %v2468_v28  ;;  %676 = vmatpush.bf16.msra.mxu0 %v2468_v28  ;;  %v2469_v31 = vld [vmem:[%s3205_s5] sm:$0xff]  ;;  %v2474_v36 = vld [vmem:[%s3203_s3 + $0x18] sm:$0xff]  ;;  %vm1176_vm12 = vcmask 64512   ;;  %vm1526_vm13 = vcmask 1041408  }
   0xf   : > { %2503 = vmatpush.bf16.msra.mxu3 %v2470_v29  ;;  %714 = vmatpush.bf16.msra.mxu1 %v2470_v29  ;;  %v2472_v35 = vld [vmem:[%s3207_s7 + $0x8] sm:$0xff]  ;;  %v2471_v39 = vld [vmem:[%s3207_s7] sm:$0xff]  ;;  %v2473_v40 = vld [vmem:[%s3203_s3 + $0x10] sm:$0xff]  ;;  %vm1527_vm14 = vcmask 1042432   ;;  %vm1345_vm15 = vcmask 171008  }
  0x10   : > { %s2728_s0 = scalar_lea.vmem %s3220_s29, %s2505_s26  ;;  %v2476_v47 = vld [vmem:[%s3205_s5 + $0x18] sm:$0xff]  ;;  %v2475_v51 = vld [vmem:[%s3205_s5 + $0x10] sm:$0xff]  ;;  %v2516_v57 = vld [vmem:[%s3221_s20] ss:$0 sm:$0xff]  ;;  %s548_s20 = scalar_lea.vmem %s3217_s17, %s2505_s26 }
  0x11   : > { %v552_v0 = vld [vmem:[%s2728_s0 + $0x10] sm:$0x1f]  ;;  %v551_v1 = vld [vmem:[%s2728_s0 + $0x8] sm:$0xff]  ;;  %v550_v4 = vld [vmem:[%s2728_s0] sm:$0xff] }
  0x12   : > { %v563_v2 = vsel %vm562_vm0, %v552_v0, 0.0  ;;  %v559_v3 = vsel %vm555_vm1, %v551_v1, 0.0  ;;  %v556_v5 = vsel %vm555_vm1, %v550_v4, 0.0  ;;  %2502 = vmatpush.bf16.msra.mxu2 %v2467_v30  ;;  %677 = vmatpush.bf16.msra.mxu0 %v2467_v30  ;;  %v2478_v48 = vld [vmem:[%s3207_s7 + $0x18] sm:$0xff]  ;;  %v2477_v52 = vld [vmem:[%s3207_s7 + $0x10] sm:$0xff] }
  0x13   : > { %564 = vadd.xlane.f32.xlu0 %v563_v2  ;;  %560 = vadd.xlane.f32.xlu1 %v559_v3  ;;  %v2517_v60 = vld [vmem:[%s3202_s2] ss:$0 sm:$0xff]  ;;  %v2488_v28 = vld [vmem:[%s3205_s5 + $0x38] sm:$0xff]  ;;  %v2487_v30 = vld [vmem:[%s3205_s5 + $0x30] sm:$0xff] }
  0x14   : > { %v2536_v7 = vpop.eup %2535  ;;  %2504 = vmatpush.bf16.msra.mxu3 %v2469_v31  ;;  %715 = vmatpush.bf16.msra.mxu1 %v2469_v31  ;;  %v2490_v29 = vld [vmem:[%s3207_s7 + $0x38] sm:$0xff]  ;;  %v2489_v31 = vld [vmem:[%s3207_s7 + $0x30] sm:$0xff] }
  0x15   : > { %v567_v8 = vmul.f32 32.0, %v2536_v7  ;;  %vm571_vm2 = vweird.f32 %v2536_v7 }
  0x16   : > { %752 = vmatpush.bf16.msrb.mxu2 %v2472_v35  ;;  %832 = vmatpush.bf16.msrb.mxu0 %v2476_v47 }
  0x17   : > { %v568_v9 = vsub.f32 1.0, %v567_v8 }
  0x18   : > { %792 = vmatpush.bf16.msrb.mxu3 %v2474_v36  ;;  %872 = vmatpush.bf16.msrb.mxu1 %v2478_v48 }
  0x19   : > { %v569_v10 = vmul.f32 %v2536_v7, %v568_v9  ;;  %v2480_v9 = vld [vmem:[%s3203_s3 + $0x28] sm:$0xff] }
  0x1a   : > { %753 = vmatpush.bf16.msrb.mxu2 %v2471_v39  ;;  %833 = vmatpush.bf16.msrb.mxu0 %v2475_v51 }
  0x1b   : > { %557 = vadd.xlane.f32.xlu0 %v556_v5  ;;  %v570_v11 = vadd.f32 %v2536_v7, %v569_v10  ;;  %v2482_v10 = vld [vmem:[%s3205_s5 + $0x28] sm:$0xff] }
  0x1c   : > { %793 = vmatpush.bf16.msrb.mxu3 %v2473_v40  ;;  %873 = vmatpush.bf16.msrb.mxu1 %v2477_v52 }
  0x1d   : > { %v2736_v12 = vsel %vm571_vm2, %v2536_v7, %v570_v11  ;;  %vm1352_vm2 = vcmask 167936  }
  0x86   : > { %v565_v13 = vpop.xlane.xlu0 %564  ;;  %v561_v17 = vpop.xlane.xlu1 %560 }
  0x87   : > { %v575_v14 = vmul.f32 %v2736_v12, %v565_v13  ;;  %v574_v21 = vmul.f32 %v2736_v12, %v561_v17  ;;  %v2479_v13 = vld [vmem:[%s3203_s3 + $0x20] sm:$0xff] }
  0x89   : > { %v2739_v15 = vsub.f32 %v552_v0, %v575_v14  ;;  %v2748_v23 = vsub.f32 %v551_v1, %v574_v21  ;;  %v2481_v14 = vld [vmem:[%s3205_s5 + $0x20] sm:$0xff] }
  0x8b   : > { %v581_v16 = vmul.f32 %v2739_v15, %v2739_v15  ;;  %v580_v26 = vmul.f32 %v2748_v23, %v2748_v23 }
  0x8d   : > { %v588_v18 = vsel %vm562_vm0, %v581_v16, 0.0  ;;  %v585_v27 = vsel %vm555_vm1, %v580_v26, 0.0  ;;  %v2483_v26 = vld [vmem:[%s3207_s7 + $0x20] sm:$0xff] }
  0x8e   : > { %589 = vadd.xlane.f32.xlu1 %v588_v18  ;;  %v558_v19 = vpop.xlane.xlu0 %557 }
  0x8f   : > { %v573_v20 = vmul.f32 %v2736_v12, %v558_v19 }
  0x91   : > { %v2746_v22 = vsub.f32 %v550_v4, %v573_v20 }
  0x93   : > { %v579_v24 = vmul.f32 %v2746_v22, %v2746_v22 }
  0x95   : > { %v582_v25 = vsel %vm555_vm1, %v579_v24, 0.0 }
  0x96   : > { %583 = vadd.xlane.f32.xlu2 %v582_v25 }
  0x9e   : > { %586 = vadd.xlane.f32.xlu2 %v585_v27  ;;  %v2485_v27 = vld [vmem:[%s3203_s3 + $0x30] sm:$0xff] }
 0x101   : > { %v590_v32 = vpop.xlane.xlu1 %589 }
 0x102   : > { %v593_v33 = vmul.f32 %v590_v32, %v2736_v12  ;;  %v2519_v32 = vld [vmem:[%s3206_s6] ss:$0 sm:$0xff] }
 0x104   : > { %v596_v34 = vadd.f32 1e-05, %v593_v33 }
 0x106   : > { %2537 = vrsqrt.f32 %v596_v34  ;;  %vm623_vm4 = vweird.f32 %v596_v34 }
 0x109   : > { %v584_v37 = vpop.xlane.xlu2 %583 }
 0x10a   : > { %v591_v38 = vmul.f32 %v584_v37, %v2736_v12 }
 0x10c   : > { %v2538_v41 = vpop.eup %2537  ;;  %v594_v42 = vadd.f32 1e-05, %v591_v38 }
 0x10d   : > { %v618_v43 = vmul.f32 %v2538_v41, %v596_v34  ;;  %vm624_vm3 = vweird.f32 %v2538_v41 }
 0x10e   : > { %2539 = vrsqrt.f32 %v594_v42  ;;  %vm625_vm5 = vmor %vm623_vm4, %vm624_vm3  ;;  %vm603_vm7 = vweird.f32 %v594_v42  ;;  %vm1696_vm3 = vcmask 1043456  }
 0x10f   : > { %v619_v44 = vmul.f32 %v2538_v41, %v618_v43 }
 0x111   : > { %v620_v45 = vmul.f32 0.5, %v619_v44  ;;  %v587_v46 = vpop.xlane.xlu2 %586 }
 0x112   : > { %v592_v49 = vmul.f32 %v587_v46, %v2736_v12 }
 0x113   : > { %v621_v50 = vsub.f32 1.5, %v620_v45  ;;  %v2518_v45 = vld [vmem:[%s3204_s4] ss:$0 sm:$0xff] }
 0x114   : > { %v2540_v53 = vpop.eup %2539  ;;  %v595_v54 = vadd.f32 1e-05, %v592_v49 }
 0x115   : > { %v622_v55 = vmul.f32 %v2538_v41, %v621_v50  ;;  %v598_v56 = vmul.f32 %v2540_v53, %v594_v42  ;;  %vm604_vm6 = vweird.f32 %v2540_v53 }
 0x116   : > { %2541 = vrsqrt.f32 %v595_v54  ;;  %vm605_vm8 = vmor %vm603_vm7, %vm604_vm6  ;;  %vm613_vm10 = vweird.f32 %v595_v54 }
 0x117   : > { %v626_v58 = vsel %vm625_vm5, %v2538_v41, %v622_v55  ;;  %v599_v59 = vmul.f32 %v2540_v53, %v598_v56 }
 0x118   : > { %v629_v61 = vmul.f32 %v626_v58, %v2739_v15 }
 0x119   : > { %v600_v62 = vmul.f32 0.5, %v599_v59 }
 0x11a   : > { %v635_v63 = vmul.f32 %v2516_v57, %v629_v61 }
 0x11b   : > { %v601_v0 = vsub.f32 1.5, %v600_v62 }
 0x11c   : > { %v2542_v1 = vpop.eup %2541  ;;  %v641_v2 = vadd.f32 %v2517_v60, %v635_v63 }
 0x11d   : > { %v602_v3 = vmul.f32 %v2540_v53, %v601_v0  ;;  %v608_v4 = vmul.f32 %v2542_v1, %v595_v54  ;;  %vm614_vm9 = vweird.f32 %v2542_v1 }
 0x11e   : > { %v2802_v5 = vpack.c.bf16 %v641_v2, %v641_v2  ;;  %vm615_vm11 = vmor %vm613_vm10, %vm614_vm9 }
 0x11f   : > { %v609_v6 = vmul.f32 %v2542_v1, %v608_v4  ;;  %v606_v7 = vsel %vm605_vm8, %v2540_v53, %v602_v3 }
 0x120   : > { %2234 = vmatmul.msk.bf16.vlgmr.msra.gmra.mxu2 %vm555_vm1, %v2802_v5  ;;  %2244 = vmatmul.msk.bf16.vlgmr.msra.gmra.mxu3 %vm555_vm1, %v2802_v5  ;;  %v627_v15 = vmul.f32 %v606_v7, %v2746_v22  ;;  %v2484_v22 = vld [vmem:[%s3207_s7 + $0x28] sm:$0xff] }
 0x121   : > { %v610_v8 = vmul.f32 0.5, %v609_v6  ;;  %912 = vmatpush.bf16.msra.mxu2 %v2480_v9  ;;  %952 = vmatpush.bf16.msra.mxu3 %v2482_v10 }
 0x122   : > { %v633_v18 = vmul.f32 %v2516_v57, %v627_v15 }
 0x123   : > { %v611_v11 = vsub.f32 1.5, %v610_v8 }
 0x124   : > { %v639_v21 = vadd.f32 %v2517_v60, %v633_v18 }
 0x125   : > { %v612_v16 = vmul.f32 %v2542_v1, %v611_v11  ;;  %913 = vmatpush.bf16.msra.mxu2 %v2479_v13  ;;  %953 = vmatpush.bf16.msra.mxu3 %v2481_v14 }
 0x127   : > { %v616_v17 = vsel %vm615_vm11, %v2542_v1, %v612_v16 }
 0x128   : > { %v628_v19 = vmul.f32 %v616_v17, %v2748_v23  ;;  %v2486_v23 = vld [vmem:[%s3203_s3 + $0x38] sm:$0xff]  ;;  %v2621_v17 = vmov 65535  }
 0x129   : > { %v1528_v18 = vsel %vm1526_vm13, 4294967295, %v2621_v17 }
 0x12a   : > { %v634_v20 = vmul.f32 %v2516_v57, %v628_v19 }
 0x12c   : > { %v640_v24 = vadd.f32 %v2517_v60, %v634_v20 }
 0x12e   : > { %v642_v25 = vpack.c.bf16 %v640_v24, %v639_v21  ;;  %v2896_v24 = vsel %vm1527_vm14, %v1528_v18, 0  ;;  %v2525_v18 = vld [vmem:[%s3206_s6 + $0x2] ss:$0 sm:$0xff] }
 0x130   : > { %2233 = vmatmul.msk.bf16.vlgmr.msra.gmra.mxu0 %vm555_vm1, %v642_v25  ;;  %2243 = vmatmul.msk.bf16.vlgmr.msra.gmra.mxu1 %vm555_vm1, %v642_v25 }
 0x131   : > { %2253 = vmatmul.msk.bf16.vlgmr.msrb.gmra.mxu2 %vm555_vm1, %v642_v25  ;;  %2268 = vmatmul.msk.bf16.vlgmr.msrb.gmra.mxu3 %vm555_vm1, %v642_v25 }
 0x132   : > { %992 = vmatpush.bf16.msra.mxu0 %v2484_v22  ;;  %1032 = vmatpush.bf16.msra.mxu1 %v2486_v23 }
 0x133   : > { %1072 = vmatpush.bf16.msrb.mxu2 %v2488_v28  ;;  %1112 = vmatpush.bf16.msrb.mxu3 %v2490_v29 }
 0x136   : > { %993 = vmatpush.bf16.msra.mxu0 %v2483_v26  ;;  %1033 = vmatpush.bf16.msra.mxu1 %v2485_v27  ;;  %v2522_v26 = vld [vmem:[%s3206_s6 + $0x1] ss:$0 sm:$0xff] }
 0x137   : > { %1073 = vmatpush.bf16.msrb.mxu2 %v2487_v30  ;;  %1113 = vmatpush.bf16.msrb.mxu3 %v2489_v31  ;;  %v2523_v27 = vld [vmem:[%s3208_s8 + $0x1] ss:$0 sm:$0xff] }
 0x140   : > { %2283 = vmatmul.msk.bf16.vlgmr.msrb.gmra.mxu0 %vm555_vm1, %v642_v25  ;;  %2298 = vmatmul.msk.bf16.vlgmr.msrb.gmra.mxu1 %vm555_vm1, %v642_v25 }
 0x141   : > { %2254 = vmatmul.msk.bf16.gmra.mxu2 %vm555_vm1, %v2802_v5  ;;  %2269 = vmatmul.msk.bf16.gmra.mxu3 %vm555_vm1, %v2802_v5 }
 0x150   : > { %2284 = vmatmul.msk.bf16.gmra.mxu0 %vm555_vm1, %v2802_v5  ;;  %2299 = vmatmul.msk.bf16.gmra.mxu1 %vm555_vm1, %v2802_v5 }
 0x151   : > { %2313 = vmatmul.msk.bf16.vlgmr.msra.gmra.mxu2 %vm555_vm1, %v642_v25  ;;  %2328 = vmatmul.msk.bf16.vlgmr.msra.gmra.mxu3 %vm555_vm1, %v642_v25 }
 0x160   : > { %2343 = vmatmul.msk.bf16.vlgmr.msra.gmra.mxu0 %vm555_vm1, %v642_v25  ;;  %2358 = vmatmul.msk.bf16.vlgmr.msra.gmra.mxu1 %vm555_vm1, %v642_v25 }
 0x161   : > { %2314 = vmatmul.msk.bf16.gmra.mxu2 %vm555_vm1, %v2802_v5  ;;  %2329 = vmatmul.msk.bf16.gmra.mxu3 %vm555_vm1, %v2802_v5 }
 0x170   : > { %2344 = vmatmul.msk.bf16.gmra.mxu0 %vm555_vm1, %v2802_v5  ;;  %2359 = vmatmul.msk.bf16.gmra.mxu1 %vm555_vm1, %v2802_v5 }
 0x171   : > { %2373 = vmatmul.msk.bf16.vlgmr.msrb.gmra.mxu2 %vm555_vm1, %v642_v25  ;;  %2388 = vmatmul.msk.bf16.vlgmr.msrb.gmra.mxu3 %vm555_vm1, %v642_v25 }
 0x181   : > { %2374 = vmatmul.msk.bf16.gmra.mxu2 %vm555_vm1, %v2802_v5  ;;  %2389 = vmatmul.msk.bf16.gmra.mxu3 %vm555_vm1, %v2802_v5  ;;  %v2520_v5 = vld [vmem:[%s3208_s8] ss:$0 sm:$0xff] }
 0x1a3   : > { %v684_v33 = vpop.f32.mrf.mxu2  ;;  %v722_v34 = vpop.f32.mrf.mxu3 }
 0x1a4   : > { %v723_v35 = vadd.f32 %v2519_v32, %v722_v34  ;;  %v685_v6 = vadd.f32 %v2518_v45, %v684_v33 }
 0x1a6   : > { %v1150_v36 = vpack.c.bf16 %v723_v35, %v723_v35  ;;  %v1126_v19 = vmul.f32 0.35355338, %v685_v6 }
 0x1a8   : > { %v1173_v37 = vunpack.c.l.b16 %v1150_v36  ;;  %v1138_v23 = vpack.c.bf16 %v1126_v19, %v1126_v19 }
 0x1aa   : > { %v1175_v38 = vpack.c.b16 %v1173_v37, %v1173_v37 }
 0x1ab   : > { %v686_v39 = vpop.f32.mrf.mxu2  ;;  %v724_v40 = vpop.f32.mrf.mxu3 }
 0x1ac   : > { %v1187_v41 = vsel %vm1176_vm12, %v1175_v38, 0  ;;  %v1165_v38 = vunpack.c.l.b16 %v1138_v23 }
 0x1ad   : > { %v679_v42 = vpop.f32.mrf.mxu0  ;;  %v717_v43 = vpop.f32.mrf.mxu1  ;;  %1195 = vmatpush.bf16.xpose.msrb.mxu0 %v1187_v41  ;;  %v2521_v41 = vld [vmem:[%s3204_s4 + $0x1] ss:$0 sm:$0xff] }
 0x1ae   : > { %v718_v44 = vadd.f32 %v2519_v32, %v717_v43  ;;  %v680_v50 = vadd.f32 %v2518_v45, %v679_v42 }
 0x1b0   : > { %v1148_v51 = vpack.c.bf16 %v718_v44, %v718_v44  ;;  %v1124_v56 = vmul.f32 0.35355338, %v680_v50 }
 0x1b2   : > { %v1171_v57 = vunpack.c.l.b16 %v1148_v51  ;;  %v1136_v1 = vpack.c.bf16 %v1124_v56, %v1124_v56 }
 0x1b4   : > { %v755_v46 = vpop.f32.mrf.mxu2  ;;  %v2885_v47 = vpop.f32.mrf.mxu3  ;;  %v1163_v4 = vunpack.c.l.b16 %v1136_v1 }
 0x1b5   : > { %v681_v48 = vpop.f32.mrf.mxu0  ;;  %v719_v49 = vpop.f32.mrf.mxu1  ;;  %v756_v15 = vadd.f32 %v2520_v5, %v755_v46  ;;  %v1167_v46 = vpack.c.b16 %v1165_v38, %v1165_v38 }
 0x1b6   : > { %v682_v52 = vadd.f32 %v2518_v45, %v681_v48  ;;  %v720_v53 = vadd.f32 %v2519_v32, %v719_v49 }
 0x1b7   : > { %v1491_v25 = vpack.c.bf16 %v756_v15, %v756_v15 }
 0x1b8   : > { %v1125_v54 = vmul.f32 0.35355338, %v682_v52  ;;  %v1149_v55 = vpack.c.bf16 %v720_v53, %v720_v53  ;;  %v796_v53 = vadd.f32 %v2521_v41, %v2885_v47 }
 0x1b9   : > { %v1514_v37 = vunpack.c.l.b16 %v1491_v25 }
 0x1ba   : > { %v1172_v58 = vunpack.c.l.b16 %v1149_v55  ;;  %v1137_v59 = vpack.c.bf16 %v1125_v54, %v1125_v54 }
 0x1bc   : > { %v757_v60 = vpop.f32.mrf.mxu2  ;;  %v797_v61 = vpop.f32.mrf.mxu3  ;;  %v1174_v62 = vpack.c.b16 %v1172_v58, %v1171_v57  ;;  %v1164_v3 = vunpack.c.l.b16 %v1137_v59 }
 0x1bd   : > { %v835_v63 = vpop.f32.mrf.mxu0  ;;  %v2887_v0 = vpop.f32.mrf.mxu1  ;;  %v758_v10 = vadd.f32 %v2520_v5, %v757_v60  ;;  %v798_v48 = vadd.f32 %v2521_v41, %v797_v61 }
 0x1be   : > { %v1184_v2 = vsel %vm1176_vm12, %v1174_v62, 0  ;;  %v1166_v7 = vpack.c.b16 %v1164_v3, %v1163_v4  ;;  %v836_v39 = vadd.f32 %v2522_v26, %v835_v63  ;;  %v876_v61 = vadd.f32 %v2523_v27, %v2887_v0 }
 0x1bf   : > { %1196 = vmatpush.bf16.xpose.msrb.mxu0 %v1184_v2  ;;  %v1492_v20 = vpack.c.bf16 %v758_v10, %v758_v10  ;;  %v1128_v60 = vmul.f32 0.35355338, %v798_v48  ;;  %v1127_v63 = vmul.f32 0.35355338, %v796_v53 }
 0x1c0   : > { %v1151_v49 = vpack.c.bf16 %v836_v39, %v836_v39  ;;  %v1494_v47 = vpack.c.bf16 %v876_v61, %v876_v61 }
 0x1c1   : > { %v1515_v30 = vunpack.c.l.b16 %v1492_v20  ;;  %v1140_v4 = vpack.c.bf16 %v1128_v60, %v1128_v60  ;;  %v1139_v10 = vpack.c.bf16 %v1127_v63, %v1127_v63 }
 0x1c2   : > { %v1218_v62 = vunpack.c.l.b16 %v1151_v49  ;;  %v1562_v0 = vunpack.c.l.b16 %v1494_v47 }
 0x1c3   : > { %v1517_v42 = vpack.c.b16 %v1515_v30, %v1514_v37  ;;  %v1211_v15 = vunpack.c.l.b16 %v1140_v4  ;;  %v2526_v37 = vld [vmem:[%s3208_s8 + $0x2] ss:$0 sm:$0xff] }
 0x1c4   : > { %v760_v8 = vpop.f32.mrf.mxu2  ;;  %v2893_v9 = vpop.f32.mrf.mxu3 }
 0x1c5   : > { %v761_v11 = vadd.f32 %v2520_v5, %v760_v8  ;;  %v837_v13 = vpop.f32.mrf.mxu0  ;;  %v877_v14 = vpop.f32.mrf.mxu1  ;;  %v801_v20 = vadd.f32 %v2521_v41, %v2893_v9 }
 0x1c6   : > { %2390 = vmatmul.msk.bf16.vlgmr.msrb.gmra.mxu0 %vm1176_vm12, %v1166_v7  ;;  %v838_v34 = vadd.f32 %v2522_v26, %v837_v13  ;;  %v878_v57 = vadd.f32 %v2523_v27, %v877_v14 }
 0x1c7   : > { %v1493_v16 = vpack.c.bf16 %v761_v11, %v761_v11  ;;  %v1129_v30 = vmul.f32 0.35355338, %v801_v20 }
 0x1c8   : > { %v1152_v43 = vpack.c.bf16 %v838_v34, %v838_v34  ;;  %v1495_v2 = vpack.c.bf16 %v878_v57, %v878_v57 }
 0x1c9   : > { %v1516_v21 = vunpack.c.l.b16 %v1493_v16  ;;  %v1210_v16 = vunpack.c.l.b16 %v1139_v10 }
 0x1ca   : > { %v1219_v56 = vunpack.c.l.b16 %v1152_v43  ;;  %v1563_v11 = vunpack.c.l.b16 %v1495_v2 }
 0x1cb   : > { %v1518_v22 = vpack.c.b16 %v1516_v21, %v1516_v21  ;;  %v1213_v19 = vpack.c.b16 %v1211_v15, %v1210_v16 }
 0x1cc   : > { %v762_v28 = vpop.f32.mrf.mxu2  ;;  %v802_v29 = vpop.f32.mrf.mxu3  ;;  %v1221_v1 = vpack.c.b16 %v1219_v56, %v1218_v62  ;;  %v1565_v17 = vpack.c.b16 %v1563_v11, %v1562_v0 }
 0x1cd   : > { %v1531_v31 = vand.u32 %v2896_v24, %v1518_v22  ;;  %v840_v32 = vpop.f32.mrf.mxu0  ;;  %v880_v33 = vpop.f32.mrf.mxu1 }
 0x1ce   : > { %v841_v35 = vadd.f32 %v2522_v26, %v840_v32  ;;  %v881_v36 = vadd.f32 %v2523_v27, %v880_v33  ;;  %v1230_v14 = vsel %vm1176_vm12, %v1221_v1, 0 }
 0x1cf   : > { %1539 = vmatpush.bf16.msra.mxu0 %v1531_v31  ;;  %v2524_v31 = vld [vmem:[%s3204_s4 + $0x2] ss:$0 sm:$0xff] }
 0x1d0   : > { %v1153_v40 = vpack.c.bf16 %v841_v35, %v841_v35  ;;  %v1496_v45 = vpack.c.bf16 %v881_v36, %v881_v36  ;;  %v1141_v36 = vpack.c.bf16 %v1129_v30, %v1129_v30 }
 0x1d2   : > { %v1220_v44 = vunpack.c.l.b16 %v1153_v40  ;;  %v1564_v58 = vunpack.c.l.b16 %v1496_v45 }
 0x1d3   : > { %1540 = vmatpush.bf16.msra.mxu0 %v1517_v42 }
 0x1d4   : > { %v1222_v50 = vpack.c.b16 %v1220_v44, %v1220_v44  ;;  %v915_v51 = vpop.f32.mrf.mxu2  ;;  %v955_v52 = vpop.f32.mrf.mxu3  ;;  %v1566_v3 = vpack.c.b16 %v1564_v58, %v1564_v58 }
 0x1d5   : > { %v842_v54 = vpop.f32.mrf.mxu0  ;;  %v882_v55 = vpop.f32.mrf.mxu1  ;;  %v956_v28 = vadd.f32 %v2525_v18, %v955_v52  ;;  %v916_v40 = vadd.f32 %v2524_v31, %v915_v51 }
 0x1d6   : > { %2391 = vmatmul.msk.bf16.gmra.mxu0 %vm1176_vm12, %v1167_v46  ;;  %v1233_v59 = vsel %vm1176_vm12, %v1222_v50, 0  ;;  %v1575_v13 = vand.u32 %v1566_v3, %v2896_v24  ;;  %v1212_v50 = vunpack.c.l.b16 %v1141_v36 }
 0x1d7   : > { %1241 = vmatpush.bf16.xpose.msrb.mxu1 %v1233_v59  ;;  %v1154_v9 = vpack.c.bf16 %v956_v28, %v956_v28  ;;  %v1130_v54 = vmul.f32 0.35355338, %v916_v40 }
 0x1d8   : > { %v1214_v51 = vpack.c.b16 %v1212_v50, %v1212_v50 }
 0x1d9   : > { %v1264_v48 = vunpack.c.l.b16 %v1154_v9  ;;  %v1142_v63 = vpack.c.bf16 %v1130_v54, %v1130_v54 }
 0x1dc   : > { %v917_v5 = vpop.f32.mrf.mxu2  ;;  %v957_v6 = vpop.f32.mrf.mxu3 }
 0x1dd   : > { %v995_v7 = vpop.f32.mrf.mxu0  ;;  %v2912_v8 = vpop.f32.mrf.mxu1  ;;  %v958_v22 = vadd.f32 %v2525_v18, %v957_v6  ;;  %v918_v34 = vadd.f32 %v2524_v31, %v917_v5 }
 0x1de   : > { %v996_v52 = vadd.f32 %v2526_v37, %v995_v7  ;;  %v1256_v7 = vunpack.c.l.b16 %v1142_v63 }
 0x1df   : > { %1242 = vmatpush.bf16.xpose.msrb.mxu1 %v1230_v14  ;;  %v1155_v32 = vpack.c.bf16 %v958_v22, %v958_v22  ;;  %v1131_v49 = vmul.f32 0.35355338, %v918_v34 }
 0x1e0   : > { %v1497_v59 = vpack.c.bf16 %v996_v52, %v996_v52 }
 0x1e1   : > { %v1265_v41 = vunpack.c.l.b16 %v1155_v32  ;;  %v1143_v58 = vpack.c.bf16 %v1131_v49, %v1131_v49 }
 0x1e2   : > { %v1606_v6 = vunpack.c.l.b16 %v1497_v59 }
 0x1e3   : > { %v1267_v55 = vpack.c.b16 %v1265_v41, %v1264_v48  ;;  %v1257_v5 = vunpack.c.l.b16 %v1143_v58 }
 0x1e4   : > { %v920_v21 = vpop.f32.mrf.mxu2  ;;  %v960_v25 = vpop.f32.mrf.mxu3 }
 0x1e5   : > { %v961_v23 = vadd.f32 %v2525_v18, %v960_v25  ;;  %v997_v26 = vpop.f32.mrf.mxu0  ;;  %v2920_v27 = vpop.f32.mrf.mxu1  ;;  %v1276_v3 = vsel %vm1176_vm12, %v1267_v55, 0  ;;  %v1259_v11 = vpack.c.b16 %v1257_v5, %v1256_v7  ;;  %v2529_v18 = vld [vmem:[%s3208_s8 + $0x3] ss:$0 sm:$0xff] }
 0x1e6   : > { %2392 = vmatmul.msk.bf16.vlgmr.msrb.gmra.mxu1 %vm1176_vm12, %v1213_v19  ;;  %v998_v45 = vadd.f32 %v2526_v37, %v997_v26 }
 0x1e7   : > { %1583 = vmatpush.bf16.msra.mxu1 %v1575_v13  ;;  %v1156_v29 = vpack.c.bf16 %v961_v23, %v961_v23  ;;  %v921_v13 = vadd.f32 %v2524_v31, %v920_v21 }
 0x1e8   : > { %v1498_v56 = vpack.c.bf16 %v998_v45, %v998_v45 }
 0x1e9   : > { %v1266_v33 = vunpack.c.l.b16 %v1156_v29  ;;  %v1132_v0 = vmul.f32 0.35355338, %v921_v13  ;;  %v2527_v29 = vld [vmem:[%s3204_s4 + $0x3] ss:$0 sm:$0xff] }
 0x1ea   : > { %v1607_v4 = vunpack.c.l.b16 %v1498_v56  ;;  %v1038_v9 = vadd.f32 %v2527_v29, %v2920_v27  ;;  %v1036_v36 = vadd.f32 %v2527_v29, %v2912_v8 }
 0x1eb   : > { %1584 = vmatpush.bf16.msra.mxu1 %v1565_v17  ;;  %v1268_v35 = vpack.c.b16 %v1266_v33, %v1266_v33  ;;  %v1144_v16 = vpack.c.bf16 %v1132_v0, %v1132_v0  ;;  %v2528_v17 = vld [vmem:[%s3206_s6 + $0x3] ss:$0 sm:$0xff] }
 0x1ec   : > { %v922_v38 = vpop.f32.mrf.mxu2  ;;  %v962_v39 = vpop.f32.mrf.mxu3  ;;  %v1609_v10 = vpack.c.b16 %v1607_v4, %v1606_v6  ;;  %v1133_v48 = vmul.f32 0.35355338, %v1036_v36 }
 0x1ed   : > { %v1000_v42 = vpop.f32.mrf.mxu0  ;;  %v2929_v43 = vpop.f32.mrf.mxu1  ;;  %v1279_v44 = vsel %vm1176_vm12, %v1268_v35, 0  ;;  %v1258_v23 = vunpack.c.l.b16 %v1144_v16 }
 0x1ee   : > { %v1001_v46 = vadd.f32 %v2526_v37, %v1000_v42  ;;  %1287 = vmatpush.bf16.xpose.msra.mxu2 %v1279_v44  ;;  %v1134_v44 = vmul.f32 0.35355338, %v1038_v9  ;;  %v1145_v8 = vpack.c.bf16 %v1133_v48, %v1133_v48 }
 0x1ef   : > { %v1260_v33 = vpack.c.b16 %v1258_v23, %v1258_v23 }
 0x1f0   : > { %v1499_v53 = vpack.c.bf16 %v1001_v46, %v1001_v46  ;;  %v1146_v52 = vpack.c.bf16 %v1134_v44, %v1134_v44 }
 0x1f2   : > { %v1608_v57 = vunpack.c.l.b16 %v1499_v53 }
 0x1f4   : > { %v1610_v60 = vpack.c.b16 %v1608_v57, %v1608_v57  ;;  %v1075_v62 = vpop.f32.mrf.mxu2  ;;  %v1115_v61 = vpop.f32.mrf.mxu3  ;;  %v1303_v57 = vunpack.c.l.b16 %v1146_v52 }
 0x1f5   : > { %v1002_v1 = vpop.f32.mrf.mxu0  ;;  %v1042_v2 = vpop.f32.mrf.mxu1  ;;  %v1076_v26 = vadd.f32 %v2528_v17, %v1075_v62  ;;  %v1116_v46 = vadd.f32 %v2529_v18, %v1115_v61  ;;  %v1041_v62 = vadd.f32 %v2527_v29, %v2929_v43 }
 0x1f6   : > { %v1619_v47 = vand.u32 %v1610_v60, %v2896_v24  ;;  %1288 = vmatpush.bf16.xpose.msra.mxu2 %v1276_v3  ;;  %2393 = vmatmul.msk.bf16.gmra.mxu1 %vm1176_vm12, %v1214_v51  ;;  %v1302_v51 = vunpack.c.l.b16 %v1145_v8 }
 0x1f7   : > { %v1157_v34 = vpack.c.bf16 %v1076_v26, %v1076_v26  ;;  %v1500_v53 = vpack.c.bf16 %v1116_v46, %v1116_v46  ;;  %v1135_v61 = vmul.f32 0.35355338, %v1041_v62 }
 0x1f8   : > { %v1305_v60 = vpack.c.b16 %v1303_v57, %v1302_v51 }
 0x1f9   : > { %v1310_v45 = vunpack.c.l.b16 %v1157_v34  ;;  %v1650_v58 = vunpack.c.l.b16 %v1500_v53  ;;  %v1147_v63 = vpack.c.bf16 %v1135_v61, %v1135_v61 }
 0x1fb   : > { %v1304_v1 = vunpack.c.l.b16 %v1147_v63 }
 0x1fc   : > { %v1077_v14 = vpop.f32.mrf.mxu2  ;;  %v1117_v15 = vpop.f32.mrf.mxu3 }
 0x1fd   : > { %2394 = vmatmul.msk.bf16.vlgmr.msra.gmra.mxu2 %vm1176_vm12, %v1259_v11  ;;  %v1078_v25 = vadd.f32 %v2528_v17, %v1077_v14  ;;  %v1118_v40 = vadd.f32 %v2529_v18, %v1117_v15  ;;  %v1306_v2 = vpack.c.b16 %v1304_v1, %v1304_v1 }
 0x1fe   : > { %1627 = vmatpush.bf16.msrb.mxu2 %v1619_v47 }
 0x1ff   : > { %v1158_v30 = vpack.c.bf16 %v1078_v25, %v1078_v25  ;;  %v1501_v27 = vpack.c.bf16 %v1118_v40, %v1118_v40 }
 0x201   : > { %v1311_v39 = vunpack.c.l.b16 %v1158_v30  ;;  %v1651_v54 = vunpack.c.l.b16 %v1501_v27 }
 0x202   : > { %1628 = vmatpush.bf16.msrb.mxu2 %v1609_v10 }
 0x203   : > { %v1313_v49 = vpack.c.b16 %v1311_v39, %v1310_v45  ;;  %v1653_v59 = vpack.c.b16 %v1651_v54, %v1650_v58 }
 0x204   : > { %v1080_v19 = vpop.f32.mrf.mxu2  ;;  %v1120_v20 = vpop.f32.mrf.mxu3 }
 0x205   : > { %v1081_v22 = vadd.f32 %v2528_v17, %v1080_v19  ;;  %v1121_v21 = vadd.f32 %v2529_v18, %v1120_v20  ;;  %v1322_v56 = vsel %vm1176_vm12, %v1313_v49, 0 }
 0x207   : > { %v1159_v28 = vpack.c.bf16 %v1081_v22, %v1081_v22  ;;  %v1502_v32 = vpack.c.bf16 %v1121_v21, %v1121_v21 }
 0x209   : > { %v1312_v31 = vunpack.c.l.b16 %v1159_v28  ;;  %v1652_v41 = vunpack.c.l.b16 %v1502_v32 }
 0x20b   : > { %v1314_v35 = vpack.c.b16 %v1312_v31, %v1312_v31  ;;  %v1654_v50 = vpack.c.b16 %v1652_v41, %v1652_v41 }
 0x20c   : > { %v1082_v37 = vpop.f32.mrf.mxu2  ;;  %v1122_v38 = vpop.f32.mrf.mxu3 }
 0x20d   : > { %2395 = vmatmul.msk.bf16.gmra.mxu2 %vm1176_vm12, %v1260_v33  ;;  %v1325_v42 = vsel %vm1176_vm12, %v1314_v35, 0  ;;  %v1663_v55 = vand.u32 %v1654_v50, %v2896_v24 }
 0x20e   : > { %1333 = vmatpush.bf16.xpose.msra.mxu3 %v1325_v42 }
 0x216   : > { %1334 = vmatpush.bf16.xpose.msra.mxu3 %v1322_v56 }
 0x21d   : > { %2396 = vmatmul.msk.bf16.vlgmr.msra.gmra.mxu3 %vm1176_vm12, %v1305_v60 }
 0x21e   : > { %1671 = vmatpush.bf16.msrb.mxu3 %v1663_v55 }
 0x222   : > { %1672 = vmatpush.bf16.msrb.mxu3 %v1653_v59 }
 0x22d   : > { %2397 = vmatmul.msk.bf16.gmra.mxu3 %vm1176_vm12, %v1306_v2 }
 0x243   : > { %v1198_v24 = vpop.f32.mrf.mxu0 }
 0x244   : > { %v1346_v0 = vsel %vm1345_vm15, %v1198_v24, -inf }
 0x24b   : > { %v2954_v3 = vpop.f32.mrf.mxu0 }
 0x24c   : > { %v1349_v21 = vsel %vm1345_vm15, %v2954_v3, -inf }
 0x253   : > { %v2956_v4 = vpop.f32.mrf.mxu0 }
 0x254   : > { %v1353_v20 = vsel %vm1352_vm2, %v2956_v4, -inf }
 0x25b   : > { %v1205_v47 = vpop.f32.mrf.mxu0 }
 0x263   : > { %v2958_v5 = vpop.f32.mrf.mxu1 }
 0x264   : > { %v1356_v26 = vsel %vm1345_vm15, %v2958_v5, -inf }
 0x26b   : > { %v1246_v6 = vpop.f32.mrf.mxu1 }
 0x26c   : > { %v1359_v17 = vsel %vm1345_vm15, %v1246_v6, -inf }
 0x273   : > { %v2960_v7 = vpop.f32.mrf.mxu1 }
 0x274   : > { %v1362_v31 = vsel %vm1352_vm2, %v2960_v7, -inf }
 0x27b   : > { %v1251_v43 = vpop.f32.mrf.mxu1 }
 0x280   : > { %v1290_v10 = vpop.f32.mrf.mxu2 }
 0x281   : > { %v1365_v11 = vsel %vm1345_vm15, %v1290_v10, -inf }
 0x282   : > { %1366 = vmax.xlane.f32.xlu0 %v1365_v11 }
 0x288   : > { %v1292_v13 = vpop.f32.mrf.mxu2 }
 0x289   : > { %v1368_v14 = vsel %vm1345_vm15, %v1292_v13, -inf }
 0x28a   : > { %1369 = vmax.xlane.f32.xlu1 %v1368_v14 }
 0x290   : > { %v2964_v15 = vpop.f32.mrf.mxu2 }
 0x291   : > { %v1371_v28 = vsel %vm1352_vm2, %v2964_v15, -inf }
 0x292   : > { %1347 = vmax.xlane.f32.xlu1 %v1346_v0 }
 0x298   : > { %v1297_v16 = vpop.f32.mrf.mxu2 }
 0x29a   : > { %1360 = vmax.xlane.f32.xlu1 %v1359_v17 }
 0x2a0   : > { %v1336_v18 = vpop.f32.mrf.mxu3 }
 0x2a1   : > { %v1374_v19 = vsel %vm1345_vm15, %v1336_v18, -inf }
 0x2a2   : > { %1375 = vmax.xlane.f32.xlu2 %v1374_v19  ;;  %1354 = vmax.xlane.f32.xlu1 %v1353_v20 }
 0x2a8   : > { %v1338_v25 = vpop.f32.mrf.mxu3 }
 0x2a9   : > { %v1377_v22 = vsel %vm1345_vm15, %v1338_v25, -inf }
 0x2aa   : > { %1378 = vmax.xlane.f32.xlu0 %v1377_v22  ;;  %1350 = vmax.xlane.f32.xlu2 %v1349_v21 }
 0x2b0   : > { %v2974_v23 = vpop.f32.mrf.mxu3 }
 0x2b1   : > { %v1380_v30 = vsel %vm1352_vm2, %v2974_v23, -inf }
 0x2b2   : > { %1357 = vmax.xlane.f32.xlu0 %v1356_v26  ;;  %1372 = vmax.xlane.f32.xlu2 %v1371_v28 }
 0x2b8   : > { %v1343_v29 = vpop.f32.mrf.mxu3 }
 0x2ba   : > { %1381 = vmax.xlane.f32.xlu0 %v1380_v30  ;;  %1363 = vmax.xlane.f32.xlu2 %v1362_v31 }
 0x2f5   : > { %v1367_v32 = vpop.xlane.xlu0 %1366 }
 0x2f6   : > { %v1389_v33 = vsub.f32 %v1290_v10, %v1367_v32 }
 0x2f8   : > { %v1407_v9 = vmul.f32 1.442695, %v1389_v33 }
 0x2fa   : > { %2543 = vpow2.f32 %v1407_v9 }
 0x2fd   : > { %v1370_v34 = vpop.xlane.xlu1 %1369 }
 0x2fe   : > { %v1390_v35 = vsub.f32 %v1292_v13, %v1370_v34 }
 0x300   : > { %v2984_v36 = vpop.eup %2543  ;;  %v1409_v37 = vmul.f32 1.442695, %v1390_v35 }
 0x301   : > { %v1437_v38 = vsel %vm1345_vm15, %v2984_v36, 0.0 }
 0x302   : > { %2545 = vpow2.f32 %v1409_v37  ;;  %1438 = vadd.xlane.f32.xlu0 %v1437_v38 }
 0x305   : > { %v1348_v39 = vpop.xlane.xlu1 %1347 }
 0x306   : > { %v1383_v40 = vsub.f32 %v1198_v24, %v1348_v39 }
 0x308   : > { %v2988_v41 = vpop.eup %2545  ;;  %v1395_v42 = vmul.f32 1.442695, %v1383_v40 }
 0x309   : > { %v1440_v44 = vsel %vm1345_vm15, %v2988_v41, 0.0 }
 0x30a   : > { %2547 = vpow2.f32 %v1395_v42  ;;  %1441 = vadd.xlane.f32.xlu1 %v1440_v44 }
 0x30d   : > { %v1361_v45 = vpop.xlane.xlu1 %1360 }
 0x30e   : > { %v1387_v46 = vsub.f32 %v1246_v6, %v1361_v45 }
 0x310   : > { %v2992_v48 = vpop.eup %2547  ;;  %v1403_v49 = vmul.f32 1.442695, %v1387_v46 }
 0x311   : > { %v1419_v27 = vsel %vm1345_vm15, %v2992_v48, 0.0 }
 0x312   : > { %2549 = vpow2.f32 %v1403_v49  ;;  %1420 = vadd.xlane.f32.xlu1 %v1419_v27 }
 0x315   : > { %v1376_v50 = vpop.xlane.xlu2 %1375  ;;  %v1355_v52 = vpop.xlane.xlu1 %1354 }
 0x316   : > { %v1392_v53 = vsub.f32 %v1336_v18, %v1376_v50  ;;  %v1385_v8 = vsub.f32 %v2956_v4, %v1355_v52 }
 0x318   : > { %v2997_v54 = vpop.eup %2549  ;;  %v1413_v55 = vmul.f32 1.442695, %v1392_v53  ;;  %v1399_v56 = vmul.f32 1.442695, %v1385_v8 }
 0x319   : > { %v1431_v57 = vsel %vm1345_vm15, %v2997_v54, 0.0 }
 0x31a   : > { %2551 = vpow2.f32 %v1413_v55  ;;  %1432 = vadd.xlane.f32.xlu1 %v1431_v57 }
 0x31b   : > { %2553 = vpow2.f32 %v1399_v56 }
 0x31d   : > { %v1379_v58 = vpop.xlane.xlu0 %1378  ;;  %v1351_v51 = vpop.xlane.xlu2 %1350 }
 0x31e   : > { %v1393_v59 = vsub.f32 %v1338_v25, %v1379_v58  ;;  %v1384_v60 = vsub.f32 %v2954_v3, %v1351_v51 }
 0x320   : > { %v3002_v62 = vpop.eup %2551  ;;  %v1415_v61 = vmul.f32 1.442695, %v1393_v59  ;;  %v1397_v63 = vmul.f32 1.442695, %v1384_v60 }
 0x321   : > { %v3004_v1 = vpop.eup %2553  ;;  %v1446_v2 = vsel %vm1345_vm15, %v3002_v62, 0.0 }
 0x322   : > { %2555 = vpow2.f32 %v1415_v61  ;;  %1447 = vadd.xlane.f32.xlu2 %v1446_v2  ;;  %v1425_v24 = vsel %vm1352_vm2, %v3004_v1, 0.0 }
 0x323   : > { %2557 = vpow2.f32 %v1397_v63  ;;  %1426 = vadd.xlane.f32.xlu1 %v1425_v24 }
 0x325   : > { %v1358_v4 = vpop.xlane.xlu0 %1357  ;;  %v1373_v47 = vpop.xlane.xlu2 %1372 }
 0x326   : > { %v1386_v3 = vsub.f32 %v2958_v5, %v1358_v4  ;;  %v1391_v6 = vsub.f32 %v2964_v15, %v1373_v47 }
 0x328   : > { %v3012_v43 = vpop.eup %2555  ;;  %v1401_v10 = vmul.f32 1.442695, %v1386_v3  ;;  %v1411_v11 = vmul.f32 1.442695, %v1391_v6 }
 0x329   : > { %v3014_v13 = vpop.eup %2557  ;;  %v1449_v14 = vsel %vm1345_vm15, %v3012_v43, 0.0 }
 0x32a   : > { %2559 = vpow2.f32 %v1401_v10  ;;  %1450 = vadd.xlane.f32.xlu0 %v1449_v14  ;;  %v1422_v0 = vsel %vm1345_vm15, %v3014_v13, 0.0 }
 0x32b   : > { %2561 = vpow2.f32 %v1411_v11  ;;  %1423 = vadd.xlane.f32.xlu2 %v1422_v0 }
 0x32d   : > { %v1382_v16 = vpop.xlane.xlu0 %1381  ;;  %v1364_v5 = vpop.xlane.xlu2 %1363 }
 0x32e   : > { %v1394_v15 = vsub.f32 %v2974_v23, %v1382_v16  ;;  %v1388_v17 = vsub.f32 %v2960_v7, %v1364_v5 }
 0x330   : > { %v3022_v18 = vpop.eup %2559  ;;  %v1417_v19 = vmul.f32 1.442695, %v1394_v15  ;;  %v1405_v20 = vmul.f32 1.442695, %v1388_v17 }
 0x331   : > { %v3024_v25 = vpop.eup %2561  ;;  %v1428_v22 = vsel %vm1345_vm15, %v3022_v18, 0.0 }
 0x332   : > { %2563 = vpow2.f32 %v1417_v19  ;;  %1429 = vadd.xlane.f32.xlu0 %v1428_v22  ;;  %v1443_v21 = vsel %vm1352_vm2, %v3024_v25, 0.0 }
 0x333   : > { %2565 = vpow2.f32 %v1405_v20  ;;  %1444 = vadd.xlane.f32.xlu2 %v1443_v21 }
 0x338   : > { %v3030_v26 = vpop.eup %2563 }
 0x339   : > { %v3032_v23 = vpop.eup %2565  ;;  %v1452_v7 = vsel %vm1352_vm2, %v3030_v26, 0.0 }
 0x33a   : > { %1453 = vadd.xlane.f32.xlu0 %v1452_v7  ;;  %v1434_v28 = vsel %vm1352_vm2, %v3032_v23, 0.0 }
 0x33b   : > { %1435 = vadd.xlane.f32.xlu2 %v1434_v28 }
 0x375   : > { %v1439_v29 = vpop.xlane.xlu0 %1438 }
 0x376   : > { %2567 = vrcp.f32 %v1439_v29 }
 0x37c   : > { %v2568_v31 = vpop.eup %2567 }
 0x37d   : > { %v1442_v30 = vpop.xlane.xlu1 %1441  ;;  %v1473_v32 = vmul.f32 %v2568_v31, %v2984_v36 }
 0x37e   : > { %2569 = vrcp.f32 %v1442_v30 }
 0x37f   : > { %v1485_v9 = vpack.c.bf16 %v1473_v32, %v1473_v32 }
 0x381   : > { %v1598_v37 = vunpack.c.l.b16 %v1485_v9 }
 0x384   : > { %v2570_v33 = vpop.eup %2569 }
 0x385   : > { %v1474_v34 = vmul.f32 %v2570_v33, %v2988_v41  ;;  %v1421_v40 = vpop.xlane.xlu1 %1420 }
 0x387   : > { %v1486_v35 = vpack.c.bf16 %v1474_v34, %v1474_v34 }
 0x389   : > { %v1599_v38 = vunpack.c.l.b16 %v1486_v35 }
 0x38b   : > { %v1601_v39 = vpack.c.b16 %v1599_v38, %v1598_v37  ;;  %v2406_v37 = vld [vmem:[%s3209_s9 + $0x4] sm:$0xf]  ;;  %v1685_v38 = vld [vmem:[%s3209_s9] sm:$0xf] }
 0x38d   : > { %2402 = vmatmul.msk.bf16.vlgmr.msrb.gmra.mxu2 %vm1345_vm15, %v1601_v39  ;;  %v1433_v44 = vpop.xlane.xlu1 %1432 }
 0x395   : > { %v1448_v42 = vpop.xlane.xlu2 %1447 }
 0x396   : > { %2571 = vrcp.f32 %v1448_v42  ;;  %v1427_v50 = vpop.xlane.xlu1 %1426  ;;  %v1725_v42 = vsel %vm1696_vm3, %v1685_v38, 0 }
 0x397   : > { %2573 = vrcp.f32 %v1421_v40  ;;  %v1698_v40 = vsel %vm1696_vm3, %v2406_v37, 0  ;;  %1734 = vmatpush.bf16.msrb.mxu1 %v1725_v42 }
 0x398   : > { %1707 = vmatpush.bf16.msrb.mxu0 %v1698_v40 }
 0x39c   : > { %v2572_v46 = vpop.eup %2571 }
 0x39d   : > { %v1451_v45 = vpop.xlane.xlu0 %1450  ;;  %v2574_v36 = vpop.eup %2573  ;;  %v1476_v41 = vmul.f32 %v2572_v46, %v3002_v62 }
 0x39e   : > { %2575 = vrcp.f32 %v1451_v45  ;;  %v1424_v49 = vpop.xlane.xlu2 %1423  ;;  %v1467_v27 = vmul.f32 %v2574_v36, %v2992_v48 }
 0x39f   : > { %2577 = vrcp.f32 %v1424_v49  ;;  %v1488_v8 = vpack.c.bf16 %v1476_v41, %v1476_v41 }
 0x3a0   : > { %2579 = vrcp.f32 %v1433_v44  ;;  %v1479_v58 = vpack.c.bf16 %v1467_v27, %v1467_v27 }
 0x3a1   : > { %2581 = vrcp.f32 %v1427_v50  ;;  %v1642_v48 = vunpack.c.l.b16 %v1488_v8 }
 0x3a2   : > { %v1506_v2 = vunpack.c.l.b16 %v1479_v58 }
 0x3a4   : > { %v2576_v52 = vpop.eup %2575 }
 0x3a5   : > { %v2578_v53 = vpop.eup %2577  ;;  %v1477_v55 = vmul.f32 %v2576_v52, %v3012_v43  ;;  %v1430_v56 = vpop.xlane.xlu0 %1429 }
 0x3a6   : > { %v2580_v57 = vpop.eup %2579  ;;  %v1468_v51 = vmul.f32 %v2578_v53, %v3014_v13  ;;  %2583 = vrcp.f32 %v1430_v56  ;;  %v1445_v59 = vpop.xlane.xlu2 %1444 }
 0x3a7   : > { %v1489_v60 = vpack.c.bf16 %v1477_v55, %v1477_v55  ;;  %2585 = vrcp.f32 %v1445_v59  ;;  %v1471_v62 = vmul.f32 %v2580_v57, %v2997_v54  ;;  %v2582_v4 = vpop.eup %2581 }
 0x3a8   : > { %v1480_v61 = vpack.c.bf16 %v1468_v51, %v1468_v51  ;;  %v1469_v5 = vmul.f32 %v2582_v4, %v3004_v1 }
 0x3a9   : > { %v1643_v63 = vunpack.c.l.b16 %v1489_v60  ;;  %v1483_v10 = vpack.c.bf16 %v1471_v62, %v1471_v62 }
 0x3aa   : > { %v1507_v24 = vunpack.c.l.b16 %v1480_v61  ;;  %v1481_v21 = vpack.c.bf16 %v1469_v5, %v1469_v5 }
 0x3ab   : > { %v1645_v47 = vpack.c.b16 %v1643_v63, %v1642_v48  ;;  %v1555_v15 = vunpack.c.l.b16 %v1483_v10 }
 0x3ac   : > { %v2584_v3 = vpop.eup %2583  ;;  %v1509_v6 = vpack.c.b16 %v1507_v24, %v1506_v2  ;;  %v1508_v30 = vunpack.c.l.b16 %v1481_v21 }
 0x3ad   : > { %v2586_v43 = vpop.eup %2585  ;;  %v1470_v11 = vmul.f32 %v2584_v3, %v3022_v18  ;;  %v1454_v13 = vpop.xlane.xlu0 %1453  ;;  %2404 = vmatmul.msk.bf16.vlgmr.msrb.gmra.mxu3 %vm1345_vm15, %v1645_v47 }
 0x3ae   : > { %2587 = vrcp.f32 %v1454_v13  ;;  %v1436_v14 = vpop.xlane.xlu2 %1435  ;;  %2398 = vmatmul.msk.bf16.vlgmr.msra.gmra.mxu0 %vm1345_vm15, %v1509_v6  ;;  %v1475_v54 = vmul.f32 %v2586_v43, %v3024_v25  ;;  %v1510_v33 = vpack.c.b16 %v1508_v30, %v1508_v30 }
 0x3af   : > { %v1482_v0 = vpack.c.bf16 %v1470_v11, %v1470_v11  ;;  %2589 = vrcp.f32 %v1436_v14 }
 0x3b0   : > { %v1487_v16 = vpack.c.bf16 %v1475_v54, %v1475_v54 }
 0x3b1   : > { %v1554_v17 = vunpack.c.l.b16 %v1482_v0  ;;  %v2530_v0 = vld [vmem:[%s3210_s10] ss:$0 sm:$0xff] }
 0x3b2   : > { %v1600_v19 = vunpack.c.l.b16 %v1487_v16  ;;  %v2609_v16 = vld [vmem:[%s2728_s0] sm:$0xff] }
 0x3b3   : > { %v1557_v20 = vpack.c.b16 %v1555_v15, %v1554_v17 }
 0x3b4   : > { %v2588_v22 = vpop.eup %2587  ;;  %v1602_v18 = vpack.c.b16 %v1600_v19, %v1600_v19 }
 0x3b5   : > { %v2590_v7 = vpop.eup %2589  ;;  %2400 = vmatmul.msk.bf16.vlgmr.msra.gmra.mxu1 %vm1345_vm15, %v1557_v20  ;;  %v1478_v28 = vmul.f32 %v2588_v22, %v3030_v26  ;;  %v2411_v26 = vld [vmem:[%s3209_s9 + $0x8] sm:$0xf] }
 0x3b6   : > { %2403 = vmatmul.msk.bf16.gmra.mxu2 %vm1345_vm15, %v1602_v18  ;;  %v1472_v29 = vmul.f32 %v2590_v7, %v3032_v23  ;;  %v1756_v35 = vsel %vm1696_vm3, %v2411_v26, 0  ;;  %v2414_v23 = vld [vmem:[%s3209_s9 + $0xc] sm:$0xf] }
 0x3b7   : > { %v1490_v25 = vpack.c.bf16 %v1478_v28, %v1478_v28  ;;  %1765 = vmatpush.bf16.msra.mxu2 %v1756_v35  ;;  %v1790_v39 = vsel %vm1696_vm3, %v2414_v23, 0  ;;  %v2611_v35 = vld [vmem:[%s2728_s0 + $0x10] sm:$0x1f] }
 0x3b8   : > { %v1484_v32 = vpack.c.bf16 %v1472_v29, %v1472_v29  ;;  %1799 = vmatpush.bf16.msra.mxu3 %v1790_v39 }
 0x3b9   : > { %v1644_v31 = vunpack.c.l.b16 %v1490_v25  ;;  %v2610_v25 = vld [vmem:[%s2728_s0 + $0x8] sm:$0xff] }
 0x3ba   : > { %v1556_v9 = vunpack.c.l.b16 %v1484_v32 }
 0x3bb   : > { %v1646_v1 = vpack.c.b16 %v1644_v31, %v1644_v31 }
 0x3bc   : > { %v1558_v34 = vpack.c.b16 %v1556_v9, %v1556_v9 }
 0x3bd   : > { %2405 = vmatmul.msk.bf16.gmra.mxu3 %vm1345_vm15, %v1646_v1 }
 0x3be   : > { %2399 = vmatmul.msk.bf16.gmra.mxu0 %vm1345_vm15, %v1510_v33 }
 0x3c5   : > { %2401 = vmatmul.msk.bf16.gmra.mxu1 %vm1345_vm15, %v1558_v34 }
 0x410   : > { %v1630_v44 = vpop.f32.mrf.mxu2 }
 0x418   : > { %v1632_v45 = vpop.f32.mrf.mxu2 }
 0x419   : > { %v1745_v46 = vpack.c.bf16 %v1632_v45, %v1630_v44 }
 0x41b   : > { %2412 = vmatmul.msk.bf16.vlgmr.msra.gmra.mxu2 %vm1176_vm12, %v1745_v46 }
 0x42b   : > { %v1542_v49 = vpop.f32.mrf.mxu0 }
 0x430   : > { %v1674_v36 = vpop.f32.mrf.mxu3 }
 0x432   : > { %v1586_v41 = vpop.f32.mrf.mxu1 }
 0x433   : > { %v1544_v27 = vpop.f32.mrf.mxu0 }
 0x434   : > { %v1683_v50 = vpack.c.bf16 %v1544_v27, %v1542_v49 }
 0x436   : > { %2409 = vmatmul.msk.bf16.vlgmr.msrb.gmra.mxu1 %vm1176_vm12, %v1683_v50 }
 0x438   : > { %v1676_v52 = vpop.f32.mrf.mxu3 }
 0x439   : > { %v1635_v53 = vpop.f32.mrf.mxu2  ;;  %v1779_v8 = vpack.c.bf16 %v1676_v52, %v1674_v36 }
 0x43a   : > { %v1746_v55 = vpack.c.bf16 %v1635_v53, %v1635_v53  ;;  %v1588_v56 = vpop.f32.mrf.mxu1 }
 0x43b   : > { %v1547_v57 = vpop.f32.mrf.mxu0  ;;  %v1686_v58 = vpack.c.bf16 %v1588_v56, %v1586_v41  ;;  %2415 = vmatmul.msk.bf16.vlgmr.msra.gmra.mxu3 %vm1176_vm12, %v1779_v8 }
 0x43c   : > { %2413 = vmatmul.msk.bf16.gmra.mxu2 %vm1176_vm12, %v1746_v55  ;;  %v1684_v62 = vpack.c.bf16 %v1547_v57, %v1547_v57 }
 0x43d   : > { %2407 = vmatmul.msk.bf16.vlgmr.msrb.gmra.mxu0 %vm1176_vm12, %v1686_v58  ;;  %v2492_v58 = vld [vmem:[%s3213_s13 + $0x8] sm:$0xff] }
 0x43e   : > { %1937 = vmatpush.bf16.msra.mxu0 %v2492_v58  ;;  %v2497_v58 = vld [vmem:[%s3215_s15 + $0x20] sm:$0xff] }
 0x440   : > { %v1679_v51 = vpop.f32.mrf.mxu3 }
 0x441   : > { %v1637_v59 = vpop.f32.mrf.mxu2  ;;  %v1780_v63 = vpack.c.bf16 %v1679_v51, %v1679_v51 }
 0x442   : > { %v1591_v60 = vpop.f32.mrf.mxu1 }
 0x443   : > { %v1549_v61 = vpop.f32.mrf.mxu0  ;;  %v1687_v24 = vpack.c.bf16 %v1591_v60, %v1591_v60 }
 0x444   : > { %v2491_v61 = vld [vmem:[%s3213_s13] sm:$0xff] }
 0x445   : > { %1938 = vmatpush.bf16.msra.mxu0 %v2491_v61 }
 0x446   : > { %2410 = vmatmul.msk.bf16.gmra.mxu1 %vm1176_vm12, %v1684_v62 }
 0x448   : > { %v1681_v48 = vpop.f32.mrf.mxu3 }
 0x44a   : > { %v1593_v2 = vpop.f32.mrf.mxu1 }
 0x44b   : > { %2416 = vmatmul.msk.bf16.gmra.mxu3 %vm1176_vm12, %v1780_v63 }
 0x44d   : > { %2408 = vmatmul.msk.bf16.gmra.mxu0 %vm1176_vm12, %v1687_v24 }
 0x49e   : > { %v1767_v4 = vpop.f32.mrf.mxu2 }
 0x4a6   : > { %v1769_v3 = vpop.f32.mrf.mxu2 }
 0x4b3   : > { %v1736_v47 = vpop.f32.mrf.mxu1 }
 0x4ba   : > { %v1709_v6 = vpop.f32.mrf.mxu0 }
 0x4bb   : > { %v1737_v43 = vadd.f32 %v1736_v47, %v1709_v6  ;;  %v1738_v10 = vpop.f32.mrf.mxu1 }
 0x4bd   : > { %v1776_v11 = vadd.f32 %v1767_v4, %v1737_v43 }
 0x4be   : > { %v1801_v13 = vpop.f32.mrf.mxu3 }
 0x4bf   : > { %v1772_v14 = vpop.f32.mrf.mxu2  ;;  %v1810_v54 = vadd.f32 %v1801_v13, %v1776_v11 }
 0x4c1   : > { %v1813_v5 = vadd.f32 %v2609_v16, %v1810_v54 }
 0x4c2   : > { %v1711_v15 = vpop.f32.mrf.mxu0 }
 0x4c3   : > { %v3082_v17 = vadd.f32 %v2530_v0, %v1813_v5  ;;  %v1739_v19 = vadd.f32 %v1738_v10, %v1711_v15  ;;  %v1741_v20 = vpop.f32.mrf.mxu1 }
 0x4c5   : > { %v1777_v22 = vadd.f32 %v1769_v3, %v1739_v19  ;;  %v1825_v18 = vsel %vm555_vm1, %v3082_v17, 0.0  ;;  %v2531_v19 = vld [vmem:[%s3211_s11] ss:$0 sm:$0xff] }
 0x4c6   : > { %v1803_v21 = vpop.f32.mrf.mxu3  ;;  %1826 = vadd.xlane.f32.xlu0 %v1825_v18 }
 0x4c7   : > { %v1774_v7 = vpop.f32.mrf.mxu2  ;;  %v1811_v28 = vadd.f32 %v1803_v21, %v1777_v22 }
 0x4c8   : > { %v2532_v7 = vld [vmem:[%s3212_s12] ss:$0 sm:$0xff] }
 0x4c9   : > { %v1814_v29 = vadd.f32 %v2610_v25, %v1811_v28 }
 0x4ca   : > { %v1714_v30 = vpop.f32.mrf.mxu0 }
 0x4cb   : > { %v3087_v31 = vadd.f32 %v2530_v0, %v1814_v29  ;;  %v1742_v1 = vadd.f32 %v1741_v20, %v1714_v30  ;;  %v1743_v32 = vpop.f32.mrf.mxu1 }
 0x4cd   : > { %v1778_v33 = vadd.f32 %v1772_v14, %v1742_v1  ;;  %v1828_v9 = vsel %vm555_vm1, %v3087_v31, 0.0 }
 0x4ce   : > { %v1806_v34 = vpop.f32.mrf.mxu3  ;;  %1829 = vadd.xlane.f32.xlu1 %v1828_v9 }
 0x4cf   : > { %v1812_v26 = vadd.f32 %v1806_v34, %v1778_v33 }
 0x4d1   : > { %v1815_v23 = vadd.f32 %v2611_v35, %v1812_v26 }
 0x4d2   : > { %v1716_v37 = vpop.f32.mrf.mxu0 }
 0x4d3   : > { %v3092_v38 = vadd.f32 %v2530_v0, %v1815_v23 }
 0x4d5   : > { %v1831_v39 = vsel %vm562_vm0, %v3092_v38, 0.0 }
 0x4d6   : > { %v1808_v40 = vpop.f32.mrf.mxu3  ;;  %1832 = vadd.xlane.f32.xlu2 %v1831_v39 }
 0x4d7   : > { %v2533_v40 = vld [vmem:[%s3214_s14] ss:$0 sm:$0xff] }
 0x539   : > { %v1827_v42 = vpop.xlane.xlu0 %1826 }
 0x53a   : > { %v1834_v44 = vmul.f32 %v1827_v42, %v2736_v12 }
 0x53c   : > { %v1837_v45 = vsub.f32 %v3082_v17, %v1834_v44 }
 0x53e   : > { %v1840_v46 = vmul.f32 %v1837_v45, %v1837_v45 }
 0x540   : > { %v1843_v49 = vsel %vm555_vm1, %v1840_v46, 0.0  ;;  %v2500_v46 = vld [vmem:[%s3215_s15 + $0x38] sm:$0xff] }
 0x541   : > { %1844 = vadd.xlane.f32.xlu0 %v1843_v49  ;;  %v1830_v36 = vpop.xlane.xlu1 %1829  ;;  %2139 = vmatpush.bf16.msra.mxu1 %v2500_v46 }
 0x542   : > { %v1835_v41 = vmul.f32 %v1830_v36, %v2736_v12 }
 0x544   : > { %v1838_v27 = vsub.f32 %v3087_v31, %v1835_v41 }
 0x546   : > { %v1841_v50 = vmul.f32 %v1838_v27, %v1838_v27 }
 0x548   : > { %v1846_v52 = vsel %vm555_vm1, %v1841_v50, 0.0 }
 0x549   : > { %1847 = vadd.xlane.f32.xlu1 %v1846_v52  ;;  %v1833_v53 = vpop.xlane.xlu2 %1832 }
 0x54a   : > { %v1836_v8 = vmul.f32 %v1833_v53, %v2736_v12 }
 0x54c   : > { %v1839_v55 = vsub.f32 %v3092_v38, %v1836_v8  ;;  %v2498_v8 = vld [vmem:[%s3215_s15 + $0x28] sm:$0xff] }
 0x54e   : > { %v1842_v56 = vmul.f32 %v1839_v55, %v1839_v55 }
 0x550   : > { %v1849_v57 = vsel %vm562_vm0, %v1842_v56, 0.0 }
 0x551   : > { %1850 = vadd.xlane.f32.xlu2 %v1849_v57 }
 0x5b4   : > { %v1845_v51 = vpop.xlane.xlu0 %1844 }
 0x5b5   : > { %v1852_v59 = vmul.f32 %v1845_v51, %v2736_v12 }
 0x5b7   : > { %v1855_v60 = vadd.f32 1e-05, %v1852_v59 }
 0x5b9   : > { %2591 = vrsqrt.f32 %v1855_v60  ;;  %vm1864_vm5 = vweird.f32 %v1855_v60 }
 0x5bc   : > { %v1848_v62 = vpop.xlane.xlu1 %1847 }
 0x5bd   : > { %v1853_v48 = vmul.f32 %v1848_v62, %v2736_v12 }
 0x5bf   : > { %v2592_v63 = vpop.eup %2591  ;;  %v1856_v2 = vadd.f32 1e-05, %v1853_v48 }
 0x5c0   : > { %v1859_v24 = vmul.f32 %v2592_v63, %v1855_v60  ;;  %vm1865_vm4 = vweird.f32 %v2592_v63 }
 0x5c1   : > { %2593 = vrsqrt.f32 %v1856_v2  ;;  %vm1866_vm6 = vmor %vm1864_vm5, %vm1865_vm4  ;;  %vm1874_vm8 = vweird.f32 %v1856_v2 }
 0x5c2   : > { %v1860_v4 = vmul.f32 %v2592_v63, %v1859_v24 }
 0x5c4   : > { %v1861_v47 = vmul.f32 0.5, %v1860_v4  ;;  %v1851_v3 = vpop.xlane.xlu2 %1850 }
 0x5c5   : > { %v1854_v6 = vmul.f32 %v1851_v3, %v2736_v12 }
 0x5c6   : > { %v1862_v43 = vsub.f32 1.5, %v1861_v47 }
 0x5c7   : > { %v2594_v10 = vpop.eup %2593  ;;  %v1857_v11 = vadd.f32 1e-05, %v1854_v6 }
 0x5c8   : > { %v1863_v13 = vmul.f32 %v2592_v63, %v1862_v43  ;;  %v1869_v14 = vmul.f32 %v2594_v10, %v1856_v2  ;;  %vm1875_vm7 = vweird.f32 %v2594_v10 }
 0x5c9   : > { %2595 = vrsqrt.f32 %v1857_v11  ;;  %vm1876_vm9 = vmor %vm1874_vm8, %vm1875_vm7  ;;  %vm1884_vm11 = vweird.f32 %v1857_v11 }
 0x5ca   : > { %v1870_v54 = vmul.f32 %v2594_v10, %v1869_v14  ;;  %v1867_v0 = vsel %vm1866_vm6, %v2592_v63, %v1863_v13  ;;  %v2496_v63 = vld [vmem:[%s3215_s15 + $0x18] sm:$0xff] }
 0x5cb   : > { %v1888_v12 = vmul.f32 %v1867_v0, %v1837_v45 }
 0x5cc   : > { %v1871_v16 = vmul.f32 0.5, %v1870_v54 }
 0x5cd   : > { %v1894_v28 = vmul.f32 %v2531_v19, %v1888_v12 }
 0x5ce   : > { %v1872_v5 = vsub.f32 1.5, %v1871_v16 }
 0x5cf   : > { %v2596_v15 = vpop.eup %2595  ;;  %v1900_v32 = vadd.f32 %v2532_v7, %v1894_v28 }
 0x5d0   : > { %v1873_v20 = vmul.f32 %v2594_v10, %v1872_v5  ;;  %v1879_v22 = vmul.f32 %v2596_v15, %v1857_v11  ;;  %vm1885_vm10 = vweird.f32 %v2596_v15 }
 0x5d1   : > { %vm1886_vm12 = vmor %vm1884_vm11, %vm1885_vm10 }
 0x5d2   : > { %v1877_v18 = vsel %vm1876_vm9, %v2594_v10, %v1873_v20  ;;  %v1880_v21 = vmul.f32 %v2596_v15, %v1879_v22  ;;  %v2495_v10 = vld [vmem:[%s3215_s15 + $0x10] sm:$0xff] }
 0x5d3   : > { %v1889_v25 = vmul.f32 %v1877_v18, %v1838_v27  ;;  %v2499_v27 = vld [vmem:[%s3215_s15 + $0x30] sm:$0xff] }
 0x5d4   : > { %v1881_v29 = vmul.f32 0.5, %v1880_v21  ;;  %2140 = vmatpush.bf16.msra.mxu1 %v2499_v27 }
 0x5d5   : > { %v1895_v30 = vmul.f32 %v2531_v19, %v1889_v25  ;;  %v2493_v25 = vld [vmem:[%s3215_s15] sm:$0xff] }
 0x5d6   : > { %v1882_v1 = vsub.f32 1.5, %v1881_v29 }
 0x5d7   : > { %v1901_v33 = vadd.f32 %v2532_v7, %v1895_v30 }
 0x5d8   : > { %v1883_v9 = vmul.f32 %v2596_v15, %v1882_v1  ;;  %2141 = vmatpush.bf16.msra.mxu1 %v2498_v8 }
 0x5d9   : > { %v1903_v34 = vpack.c.bf16 %v1901_v33, %v1900_v32 }
 0x5da   : > { %v1887_v26 = vsel %vm1886_vm12, %v2596_v15, %v1883_v9 }
 0x5db   : > { %2425 = vmatmul.msk.bf16.vlgmr.msra.gmra.mxu0 %vm555_vm1, %v1903_v34  ;;  %v1890_v35 = vmul.f32 %v1887_v26, %v1839_v55 }
 0x5dc   : > { %2142 = vmatpush.bf16.msra.mxu1 %v2497_v58 }
 0x5dd   : > { %v1896_v23 = vmul.f32 %v2531_v19, %v1890_v35  ;;  %v2494_v19 = vld [vmem:[%s3215_s15 + $0x8] sm:$0xff] }
 0x5df   : > { %v1902_v37 = vadd.f32 %v2532_v7, %v1896_v23 }
 0x5e0   : > { %2143 = vmatpush.bf16.msra.mxu1 %v2496_v63 }
 0x5e1   : > { %v1904_v39 = vpack.c.bf16 %v1902_v37, %v1902_v37 }
 0x5e4   : > { %2144 = vmatpush.bf16.msra.mxu1 %v2495_v10 }
 0x5e8   : > { %2145 = vmatpush.bf16.msra.mxu1 %v2494_v19 }
 0x5eb   : > { %2426 = vmatmul.msk.bf16.gmra.mxu0 %vm555_vm1, %v1904_v39 }
 0x5ec   : > { %2146 = vmatpush.bf16.msra.mxu1 %v2493_v25 }
 0x658   : > { %v1940_v42 = vpop.f32.mrf.mxu0 }
 0x659   : > { %v3125_v44 = vadd.f32 %v2533_v40, %v1940_v42 }
 0x65b   : > { %v3128_v45 = vmul.f32 0.70710677, %v3125_v44 }
 0x65d   : > { %v1955_v49 = vand.u32 2147483647, %v3128_v45  ;;  %vm2054_vm11 = vcmp.lt.f32.partialorder %v3128_v45, 0.0 }
 0x65f   : > { %v1958_v36 = vmul.f32 0.3275911, %v1955_v49  ;;  %v2036_v16 = vsub.f32 0.0, %v1955_v49 }
 0x660   : > { %v1942_v41 = vpop.f32.mrf.mxu0 }
 0x661   : > { %v1961_v50 = vadd.f32 1.0, %v1958_v36  ;;  %v3137_v52 = vadd.f32 %v2533_v40, %v1942_v41  ;;  %v2039_v18 = vmul.f32 %v2036_v16, %v1955_v49 }
 0x663   : > { %2597 = vrcp.f32 %v1961_v50  ;;  %v3140_v53 = vmul.f32 0.70710677, %v3137_v52  ;;  %v1975_v2 = vand.u32 2147483648, %v1961_v50  ;;  %v1973_v47 = vand.u32 2147483647, %v1961_v50 }
 0x664   : > { %vm1969_vm14 = vweird.f32 %v1961_v50  ;;  %v2042_v9 = vmul.f32 1.442695, %v2039_v18 }
 0x665   : > { %v3146_v55 = vand.u32 2147483647, %v3140_v53  ;;  %v1976_v11 = vor.u32 1.1754944e-38, %v1975_v2  ;;  %vm1974_vm2 = vcmp.eq.f32.partialorder %v1973_v47, 8.507059e+37  ;;  %vm2055_vm12 = vcmp.lt.f32.partialorder %v3140_v53, 0.0 }
 0x667   : > { %v1959_v56 = vmul.f32 0.3275911, %v3146_v55  ;;  %v2037_v23 = vsub.f32 0.0, %v3146_v55 }
 0x668   : > { %v1945_v57 = vpop.f32.mrf.mxu0 }
 0x669   : > { %v2598_v51 = vpop.eup %2597  ;;  %v3152_v59 = vadd.f32 %v2533_v40, %v1945_v57  ;;  %v1962_v61 = vadd.f32 1.0, %v1959_v56  ;;  %v2040_v27 = vmul.f32 %v2037_v23, %v3146_v55 }
 0x66a   : > { %v1965_v60 = vmul.f32 %v2598_v51, %v1961_v50  ;;  %vm1970_vm13 = vweird.f32 %v2598_v51 }
 0x66b   : > { %v3155_v62 = vmul.f32 0.70710677, %v3152_v59  ;;  %2599 = vrcp.f32 %v1962_v61  ;;  %vm1971_vm15 = vmor %vm1969_vm14, %vm1970_vm13  ;;  %v1990_v22 = vand.u32 2147483648, %v1962_v61  ;;  %v1988_v7 = vand.u32 2147483647, %v1962_v61 }
 0x66c   : > { %v1966_v48 = vsub.f32 1.0, %v1965_v60  ;;  %vm1984_vm4 = vweird.f32 %v1962_v61  ;;  %v2044_v63 = vmul.f32 1.442695, %v2040_v27 }
 0x66d   : > { %v3161_v24 = vand.u32 2147483647, %v3155_v62  ;;  %v1991_v32 = vor.u32 1.1754944e-38, %v1990_v22  ;;  %vm1989_vm6 = vcmp.eq.f32.partialorder %v1988_v7, 8.507059e+37  ;;  %vm2056_vm13 = vcmp.lt.f32.partialorder %v3155_v62, 0.0 }
 0x66e   : > { %v1967_v4 = vmul.f32 %v2598_v51, %v1966_v48 }
 0x66f   : > { %v1960_v3 = vmul.f32 0.3275911, %v3161_v24  ;;  %v2038_v60 = vsub.f32 0.0, %v3161_v24 }
 0x670   : > { %v1968_v6 = vadd.f32 %v2598_v51, %v1967_v4  ;;  %v1947_v43 = vpop.f32.mrf.mxu0 }
 0x671   : > { %v1963_v13 = vadd.f32 1.0, %v1960_v3  ;;  %v2600_v14 = vpop.eup %2599  ;;  %v2041_v43 = vmul.f32 %v2038_v60, %v3161_v24 }
 0x672   : > { %v1972_v54 = vsel %vm1971_vm15, %v2598_v51, %v1968_v6  ;;  %v1980_v5 = vmul.f32 %v2600_v14, %v1962_v61  ;;  %vm1985_vm3 = vweird.f32 %v2600_v14 }
 0x673   : > { %v1977_v0 = vsel %vm1974_vm2, %v1976_v11, %v1972_v54  ;;  %2601 = vrcp.f32 %v1963_v13  ;;  %vm1986_vm5 = vmor %vm1984_vm4, %vm1985_vm3  ;;  %v2005_v40 = vand.u32 2147483648, %v1963_v13  ;;  %v2003_v49 = vand.u32 2147483647, %v1963_v13 }
 0x674   : > { %v2009_v15 = vmul.f32 1.0614054, %v1977_v0  ;;  %v1981_v12 = vsub.f32 1.0, %v1980_v5  ;;  %2603 = vpow2.f32 %v2042_v9  ;;  %vm1999_vm8 = vweird.f32 %v1963_v13 }
 0x675   : > { %v2006_v56 = vor.u32 1.1754944e-38, %v2005_v40  ;;  %vm2004_vm10 = vcmp.eq.f32.partialorder %v2003_v49, 8.507059e+37  ;;  %2605 = vpow2.f32 %v2044_v63  ;;  %v2046_v16 = vmul.f32 1.442695, %v2041_v43 }
 0x676   : > { %v2427_v20 = vadd.f32 -1.4531521, %v2009_v15  ;;  %v1982_v21 = vmul.f32 %v2600_v14, %v1981_v12 }
 0x677   : > { %2607 = vpow2.f32 %v2046_v16 }
 0x678   : > { %v2015_v28 = vmul.f32 %v2427_v20, %v1977_v0  ;;  %v1983_v30 = vadd.f32 %v2600_v14, %v1982_v21 }
 0x679   : > { %v2602_v29 = vpop.eup %2601 }
 0x67a   : > { %v2018_v1 = vadd.f32 1.4214138, %v2015_v28  ;;  %v1995_v33 = vmul.f32 %v2602_v29, %v1963_v13  ;;  %v1987_v34 = vsel %vm1986_vm5, %v2600_v14, %v1983_v30  ;;  %vm2000_vm7 = vweird.f32 %v2602_v29  ;;  %v2604_v4 = vpop.eup %2603 }
 0x67b   : > { %v1992_v35 = vsel %vm1989_vm6, %v1991_v32, %v1987_v34  ;;  %vm2001_vm9 = vmor %vm1999_vm8, %vm2000_vm7  ;;  %v1950_v32 = vmul.f32 0.5, %v3137_v52 }
 0x67c   : > { %v2021_v26 = vmul.f32 %v2018_v1, %v1977_v0  ;;  %v1996_v37 = vsub.f32 1.0, %v1995_v33  ;;  %v2010_v39 = vmul.f32 1.0614054, %v1992_v35  ;;  %v1949_v1 = vmul.f32 0.5, %v3125_v44  ;;  %v2534_v44 = vld [vmem:[%s3216_s16] ss:$0 sm:$0xff] }
 0x67e   : > { %v2430_v42 = vadd.f32 -0.28449672, %v2021_v26  ;;  %v1997_v46 = vmul.f32 %v2602_v29, %v1996_v37  ;;  %v2428_v36 = vadd.f32 -1.4531521, %v2010_v39  ;;  %v1951_v39 = vmul.f32 0.5, %v3152_v59 }
 0x680   : > { %v2027_v41 = vmul.f32 %v2430_v42, %v1977_v0  ;;  %v1998_v50 = vadd.f32 %v2602_v29, %v1997_v46  ;;  %v2016_v8 = vmul.f32 %v2428_v36, %v1992_v35 }
 0x682   : > { %v2030_v57 = vadd.f32 0.2548296, %v2027_v41  ;;  %v2002_v58 = vsel %vm2001_vm9, %v2602_v29, %v1998_v50  ;;  %v2019_v51 = vadd.f32 1.4214138, %v2016_v8 }
 0x683   : > { %v2007_v61 = vsel %vm2004_vm10, %v2006_v56, %v2002_v58 }
 0x684   : > { %v2033_v48 = vmul.f32 %v2030_v57, %v1977_v0  ;;  %v2011_v2 = vmul.f32 1.0614054, %v2007_v61  ;;  %v2022_v47 = vmul.f32 %v2019_v51, %v1992_v35  ;;  %v2606_v0 = vpop.eup %2605 }
 0x685   : > { %v2608_v29 = vpop.eup %2607 }
 0x686   : > { %v2048_v3 = vmul.f32 %v2604_v4, %v2033_v48  ;;  %v2429_v6 = vadd.f32 -1.4531521, %v2011_v2  ;;  %v2431_v55 = vadd.f32 -0.28449672, %v2022_v47 }
 0x688   : > { %v2017_v10 = vmul.f32 %v2429_v6, %v2007_v61  ;;  %v2051_v11 = vsub.f32 1.0, %v2048_v3  ;;  %v2028_v13 = vmul.f32 %v2431_v55, %v1992_v35 }
 0x68a   : > { %v2020_v14 = vadd.f32 1.4214138, %v2017_v10  ;;  %v2031_v54 = vadd.f32 0.2548296, %v2028_v13  ;;  %v2057_v15 = vsub.f32 0.0, %v2051_v11 }
 0x68c   : > { %v2023_v5 = vmul.f32 %v2020_v14, %v2007_v61  ;;  %v2034_v19 = vmul.f32 %v2031_v54, %v1992_v35  ;;  %v2060_v18 = vsel %vm2054_vm11, %v2057_v15, %v2051_v11 }
 0x68d   : > { %v2063_v28 = vadd.f32 1.0, %v2060_v18 }
 0x68e   : > { %v2432_v12 = vadd.f32 -0.28449672, %v2023_v5  ;;  %v2049_v20 = vmul.f32 %v2606_v0, %v2034_v19 }
 0x68f   : > { %v2066_v34 = vmul.f32 %v2063_v28, %v1949_v1 }
 0x690   : > { %v2029_v22 = vmul.f32 %v2432_v12, %v2007_v61  ;;  %v2052_v21 = vsub.f32 1.0, %v2049_v20 }
 0x692   : > { %v2032_v24 = vadd.f32 0.2548296, %v2029_v22  ;;  %v2058_v7 = vsub.f32 0.0, %v2052_v21 }
 0x694   : > { %v2035_v25 = vmul.f32 %v2032_v24, %v2007_v61  ;;  %v2061_v30 = vsel %vm2055_vm12, %v2058_v7, %v2052_v21 }
 0x695   : > { %v2064_v33 = vadd.f32 1.0, %v2061_v30 }
 0x696   : > { %v2050_v9 = vmul.f32 %v2608_v29, %v2035_v25 }
 0x697   : > { %v2067_v45 = vmul.f32 %v2064_v33, %v1950_v32 }
 0x698   : > { %v2053_v26 = vsub.f32 1.0, %v2050_v9 }
 0x699   : > { %v2069_v35 = vpack.c.bf16 %v2067_v45, %v2066_v34 }
 0x69a   : > { %v2059_v23 = vsub.f32 0.0, %v2053_v26 }
 0x69b   : > { %2147 = vmatmul.bf16.vlgmr.msra.gmra.mxu1 %v2069_v35 }
 0x69c   : > { %v2062_v37 = vsel %vm2056_vm13, %v2059_v23, %v2053_v26 }
 0x69d   : > { %v2065_v53 = vadd.f32 1.0, %v2062_v37 }
 0x69f   : > { %v2068_v40 = vmul.f32 %v2065_v53, %v1951_v39 }
 0x6a1   : > { %v2070_v42 = vpack.c.bf16 %v2068_v40, %v2068_v40 }
 0x6ab   : > { %2152 = vmatmul.bf16.gmra.mxu1 %v2070_v42 }
 0x718   : > { %v2148_v52 = vpop.f32.mrf.mxu1 }
 0x719   : > { %v2149_v46 = vadd.f32 %v2534_v44, %v2148_v52 }
 0x71b   : > { %v2157_v62 = vadd.f32 %v2149_v46, %v3082_v17 }
 0x71d   : > { %2160 = vst.msk [vmem:[%s548_s20] sm:$0xff] %vm555_vm1, %v2157_v62 }
 0x720   : > { %v2150_v49 = vpop.f32.mrf.mxu1 }
 0x721   : > { %v2151_v59 = vadd.f32 %v2534_v44, %v2150_v49 }
 0x723   : > { %v2158_v36 = vadd.f32 %v2151_v59, %v3087_v31 }
 0x725   : > { %2161 = vst.msk [vmem:[%s548_s20 + $0x8] sm:$0xff] %vm555_vm1, %v2158_v36 }
 0x728   : > { %v2153_v41 = vpop.f32.mrf.mxu1 }
 0x729   : > { %v2154_v27 = vadd.f32 %v2534_v44, %v2153_v41 }
 0x72b   : > { %v2159_v50 = vadd.f32 %v2154_v27, %v3092_v38 }
 0x72d   : > { %2162 = vst.msk [vmem:[%s548_s20 + $0x10] sm:$0x1f] %vm562_vm0, %v2159_v50 }
 0x730   : > { %v2155_v8 = vpop.f32.mrf.mxu1 }
 0x731 PF: > { %s27_s24 = sadd.s32 1, %s2618_s24  }
 0x732   : > { %p24_p4 = scmp.ge.s32.totalorder %s27_s24, 4  }
 0x734   :  { %26 = sbr.rel (!%p24_p4) target bundleno = 3 (0x3), region = 139 }

// kernel: model_forward.15
= control target key start
LH: loop header
LB: loop body
LE: loop exit
PB: predicated region body
PF: predicated region fallthrough
CT: control target
= control target key end

     0   :  { %s3483_s0 = inlined_call_operand.vmem [shape: f32[2,21,32], index: 0, kind: input, shape index: {}]   ;;  %s3484_s1 = inlined_call_operand.vmem [shape: f32[2,21,32], index: 1, kind: input, shape index: {}]   ;;  %s3485_s2 = inlined_call_operand.vmem [shape: bf16[32,32], index: 2, kind: input, shape index: {}]   ;;  %s3486_s3 = inlined_call_operand.vmem [shape: bf16[32,32], index: 3, kind: input, shape index: {}]   ;;  %s3487_s4 = inlined_call_operand.vmem [shape: f32[1,32], index: 4, kind: input, shape index: {}]   ;;  %s3488_s5 = inlined_call_operand.vmem [shape: f32[1,32], index: 5, kind: input, shape index: {}]   ;;  %s3489_s6 = inlined_call_operand.vmem [shape: f32[1,32], index: 6, kind: input, shape index: {}]   ;;  %s3490_s7 = inlined_call_operand.vmem [shape: bf16[4,32,8], index: 7, kind: input, shape index: {}]   ;;  %s3491_s8 = inlined_call_operand.vmem [shape: f32[4,1,8], index: 8, kind: input, shape index: {}]   ;;  %s3492_s9 = inlined_call_operand.vmem [shape: bf16[4,32,8], index: 9, kind: input, shape index: {}]   ;;  %s3493_s10 = inlined_call_operand.vmem [shape: f32[4,1,8], index: 10, kind: input, shape index: {}]   ;;  %s3494_s11 = inlined_call_operand.vmem [shape: bf16[4,32,8], index: 11, kind: input, shape index: {}]   ;;  %s3495_s12 = inlined_call_operand.vmem [shape: f32[4,1,8], index: 12, kind: input, shape index: {}]   ;;  %s3496_s13 = inlined_call_operand.vmem [shape: bf16[4,8,32], index: 13, kind: input, shape index: {}]   ;;  %s3497_s14 = inlined_call_operand.vmem [shape: f32[1,32], index: 14, kind: input, shape index: {}]   ;;  %s3498_s15 = inlined_call_operand.vmem [shape: f32[1,32], index: 15, kind: input, shape index: {}]   ;;  %s3499_s16 = inlined_call_operand.vmem [shape: f32[1,32], index: 16, kind: input, shape index: {}]   ;;  %s3500_s17 = inlined_call_operand.vmem [shape: bf16[32,128], index: 17, kind: input, shape index: {}]   ;;  %s3501_s18 = inlined_call_operand.vmem [shape: f32[1,128], index: 18, kind: input, shape index: {}]   ;;  %s3502_s19 = inlined_call_operand.vmem [shape: bf16[128,32], index: 19, kind: input, shape index: {}]   ;;  %s3503_s20 = inlined_call_operand.vmem [shape: f32[1,32], index: 20, kind: input, shape index: {}]   ;;  %s3504_s21 = inlined_call_operand.vmem [shape: f32[2,21,32], index: 21, kind: output, shape index: {}]  }
   0x1   :  { %3507 = sst [smem:[#allocation2_spill]] %s3483_s0 }
   0x2   :  { %3508 = sst [smem:[#allocation3_spill]] %s3484_s1 }
   0x3   :  { %3509 = sst [smem:[#allocation4_spill]] %s3485_s2  ;;  %s2985_s2 = smov 0  }
   0x4   :  { %3510 = sst [smem:[#allocation5_spill]] %s3486_s3 }
   0x5   :  { %3511 = sst [smem:[#allocation6_spill]] %s3487_s4 }
   0x6   :  { %3512 = sst [smem:[#allocation7_spill]] %s3488_s5 }
   0x7 LB: > { %s2452_s25 = sadd.s32 4294967295, %s2871_s2   ;;  %p2456_p0 = scmp.ge.s32.totalorder %s2871_s2, 1  ;;  %s2871_s2 = sphi %s2985_s2, %s31_s2  }
   0x8   : > { %p597_p1 = scmp.lt.s32.totalorder %s2871_s2, 3 }
   0xa   : > { %p598_p2 = pnand %p2456_p0, %p597_p1 }
   0xb   : > { %s3513_s3 = sld [smem:[#allocation5_spill]] (!%p598_p2)  ;;  %p662_p3 = scmp.lt.s32.totalorder (!%p598_p2), %s2452_s25, 1 }
   0xc   : > { %601 = sbr.rel (%p598_p2) target bundleno = 2026 (0x7ea), region = 104  ;;  %s3514_s0 = sld [smem:[#allocation4_spill]] (!%p598_p2) }
   0xd   : > { %s3515_s26 = sld [smem:[#allocation3_spill]] (!%p598_p2) }
   0xe   : > { %s3516_s4 = sld [smem:[#allocation2_spill]] (!%p598_p2) }
   0xf   : > { %s3517_s22 = sld [smem:[#allocation6_spill]] (!%p598_p2) }
  0x11   : > { %v2725_v0 = vld [vmem:[%s3513_s3 + $0x8] sm:$0xff]  ;;  %v2724_v2 = vld [vmem:[%s3513_s3] sm:$0xff]  ;;  %s3520_s25 = smov (!%p662_p3, %s2452_s25), 1  ;;  %vm708_vm0 = vcmask 261120   ;;  %vm784_vm1 = vcmask 258048   ;;  %v2873_v32 = vmov 32.0  }
  0x12   : > { %v2723_v1 = vld [vmem:[%s3514_s0 + $0x8] sm:$0xff]  ;;  %721 = vmatpush.bf16.msra.mxu0 %v2725_v0  ;;  %v2722_v3 = vld [vmem:[%s3514_s0] sm:$0xff]  ;;  %s3005_s23 = smul.u32 24, %s3520_s25  ;;  %2791 = vrcp.f32 %v2873_v32  ;;  %v2733_v57 = vld [vmem:[%s3490_s7 + $0x18] sm:$0xff]  ;;  %s3518_s25 = sld [smem:[#allocation7_spill]]  ;;  %vm1748_vm12 = vcmask 1041408  }
  0x13   : > { %757 = vmatpush.bf16.msra.mxu1 %v2723_v1  ;;  %v2727_v54 = vld [vmem:[%s3490_s7 + $0x8] sm:$0xff]  ;;  %v2726_v60 = vld [vmem:[%s3490_s7] sm:$0xff]  ;;  %v2732_v0 = vld [vmem:[%s3490_s7 + $0x10] sm:$0xff]  ;;  %vm1398_vm13 = vcmask 64512   ;;  %vm1749_vm14 = vcmask 1042432   ;;  %vm1567_vm15 = vcmask 171008  }
  0x14   : > { %s671_s27 = scalar_lea.vmem %s3515_s26, %s3005_s23  ;;  %s666_s30 = scalar_lea.vmem %s3516_s4, %s3005_s23  ;;  %v2729_v55 = vld [vmem:[%s3492_s9 + $0x8] sm:$0xff]  ;;  %898 = vmatpush.bf16.msra.mxu2 %v2727_v54  ;;  %v2728_v61 = vld [vmem:[%s3492_s9] sm:$0xff] }
  0x15   : > { %v687_v4 = vld [vmem:[%s671_s27] sm:$0xff]  ;;  %v688_v5 = vld [vmem:[%s671_s27 + $0x8] sm:$0xff]  ;;  %v689_v10 = vld [vmem:[%s671_s27 + $0x10] sm:$0x1f]  ;;  %936 = vmatpush.bf16.msra.mxu3 %v2729_v55 }
  0x16   : > { %722 = vmatpush.bf16.msra.mxu0 %v2724_v2  ;;  %v678_v6 = vld [vmem:[%s666_s30] sm:$0xff]  ;;  %v690_v7 = vpack.c.bf16 %v688_v5, %v687_v4  ;;  %v679_v8 = vld [vmem:[%s666_s30 + $0x8] sm:$0xff]  ;;  %v680_v11 = vld [vmem:[%s666_s30 + $0x10] sm:$0x1f]  ;;  %v691_v12 = vpack.c.bf16 %v689_v10, %v689_v10  ;;  %s676_s30 = scalar_lea.vmem %s3504_s21, %s3005_s23 }
  0x17   : > { %758 = vmatpush.bf16.msra.mxu1 %v2722_v3  ;;  %v681_v9 = vpack.c.bf16 %v679_v8, %v678_v6  ;;  %v682_v13 = vpack.c.bf16 %v680_v11, %v680_v11  ;;  %v2771_v15 = vld [vmem:[%s3517_s22] ss:$0 sm:$0xff]  ;;  %v2731_v56 = vld [vmem:[%s3494_s11 + $0x8] sm:$0xff]  ;;  %v2745_v55 = vld [vmem:[%s3490_s7 + $0x38] sm:$0xff] }
  0x18   : > { %v2792_v33 = vpop.eup %2791  ;;  %v2730_v62 = vld [vmem:[%s3494_s11] sm:$0xff]  ;;  %899 = vmatpush.bf16.msra.mxu2 %v2726_v60  ;;  %v2743_v54 = vld [vmem:[%s3494_s11 + $0x28] sm:$0xff]  ;;  %v2748_v60 = vld [vmem:[%s3494_s11 + $0x30] sm:$0xff] }
  0x19   : > { %2468 = vmatmul.msk.bf16.vlgmr.msra.gmra.mxu0 %vm708_vm0, %v690_v7  ;;  %v789_v34 = vmul.f32 32.0, %v2792_v33  ;;  %vm793_vm2 = vweird.f32 %v2792_v33  ;;  %937 = vmatpush.bf16.msra.mxu3 %v2728_v61  ;;  %v2740_v32 = vld [vmem:[%s3492_s9 + $0x20] sm:$0xff] }
  0x1a   : > { %2478 = vmatmul.msk.bf16.vlgmr.msra.gmra.mxu1 %vm708_vm0, %v681_v9  ;;  %974 = vmatpush.bf16.msrb.mxu0 %v2731_v56  ;;  %v2749_v56 = vld [vmem:[%s3494_s11 + $0x38] sm:$0xff] }
  0x1b   : > { %v790_v35 = vsub.f32 1.0, %v789_v34  ;;  %1014 = vmatpush.bf16.msrb.mxu1 %v2733_v57  ;;  %v2742_v57 = vld [vmem:[%s3494_s11 + $0x20] sm:$0xff] }
  0x1d   : > { %v791_v36 = vmul.f32 %v2792_v33, %v790_v35 }
  0x1e   : > { %975 = vmatpush.bf16.msrb.mxu0 %v2730_v62 }
  0x1f   : > { %v792_v37 = vadd.f32 %v2792_v33, %v791_v36  ;;  %1015 = vmatpush.bf16.msrb.mxu1 %v2732_v0 }
  0x21   : > { %v3034_v38 = vsel %vm793_vm2, %v2792_v33, %v792_v37  ;;  %v2773_v37 = vld [vmem:[%s3489_s6] ss:$0 sm:$0xff]  ;;  %vm1574_vm2 = vcmask 167936  }
  0x29   : > { %2469 = vmatmul.msk.bf16.gmra.mxu0 %vm708_vm0, %v691_v12 }
  0x2a   : > { %2479 = vmatmul.msk.bf16.gmra.mxu1 %vm708_vm0, %v682_v13 }
  0x96   : > { %v724_v14 = vpop.f32.mrf.mxu0 }
  0x97   : > { %v760_v16 = vpop.f32.mrf.mxu1 }
  0x98   : > { %v761_v17 = vadd.f32 %v760_v16, %v724_v14 }
  0x9a   : > { %v3022_v18 = vadd.f32 %v2771_v15, %v761_v17 }
  0x9c   : > { %v778_v19 = vsel %vm708_vm0, %v3022_v18, 0.0 }
  0x9d   : > { %779 = vadd.xlane.f32.xlu0 %v778_v19  ;;  %v2735_v19 = vld [vmem:[%s3492_s9 + $0x18] sm:$0xff] }
  0x9e   : > { %v726_v20 = vpop.f32.mrf.mxu0  ;;  %1054 = vmatpush.bf16.msrb.mxu2 %v2735_v19  ;;  %v2776_v19 = vld [vmem:[%s3491_s8] ss:$0 sm:$0xff] }
  0x9f   : > { %v762_v21 = vpop.f32.mrf.mxu1 }
  0xa0   : > { %v763_v22 = vadd.f32 %v762_v21, %v726_v20  ;;  %v2737_v20 = vld [vmem:[%s3494_s11 + $0x18] sm:$0xff]  ;;  %v2739_v21 = vld [vmem:[%s3490_s7 + $0x28] sm:$0xff] }
  0xa1   : > { %1094 = vmatpush.bf16.msrb.mxu3 %v2737_v20  ;;  %1134 = vmatpush.bf16.msra.mxu0 %v2739_v21 }
  0xa2   : > { %v3026_v23 = vadd.f32 %v2771_v15, %v763_v22  ;;  %v2741_v22 = vld [vmem:[%s3492_s9 + $0x28] sm:$0xff] }
  0xa3   : > { %1174 = vmatpush.bf16.msra.mxu1 %v2741_v22 }
  0xa4   : > { %v781_v24 = vsel %vm708_vm0, %v3026_v23, 0.0 }
  0xa5   : > { %782 = vadd.xlane.f32.xlu0 %v781_v24 }
  0xa6   : > { %v729_v25 = vpop.f32.mrf.mxu0 }
  0xa7   : > { %v765_v26 = vpop.f32.mrf.mxu1  ;;  %1175 = vmatpush.bf16.msra.mxu1 %v2740_v32 }
  0xa8   : > { %v766_v27 = vadd.f32 %v765_v26, %v729_v25  ;;  %v2734_v25 = vld [vmem:[%s3492_s9 + $0x10] sm:$0xff] }
  0xa9   : > { %v2736_v26 = vld [vmem:[%s3494_s11 + $0x10] sm:$0xff]  ;;  %1055 = vmatpush.bf16.msrb.mxu2 %v2734_v25 }
  0xaa   : > { %v3030_v28 = vadd.f32 %v2771_v15, %v766_v27  ;;  %1095 = vmatpush.bf16.msrb.mxu3 %v2736_v26 }
  0xac   : > { %v785_v29 = vsel %vm784_vm1, %v3030_v28, 0.0 }
  0xad   : > { %786 = vadd.xlane.f32.xlu1 %v785_v29  ;;  %v2772_v29 = vld [vmem:[%s3518_s25] ss:$0 sm:$0xff] }
  0xae   : > { %v731_v30 = vpop.f32.mrf.mxu0 }
  0xaf   : > { %v767_v31 = vpop.f32.mrf.mxu1 }
  0xb0   : > { %v2738_v31 = vld [vmem:[%s3490_s7 + $0x20] sm:$0xff] }
  0xb1   : > { %1135 = vmatpush.bf16.msra.mxu0 %v2738_v31 }
 0x110   : > { %v780_v39 = vpop.xlane.xlu0 %779 }
 0x111   : > { %v795_v40 = vmul.f32 %v3034_v38, %v780_v39 }
 0x113   : > { %v3038_v41 = vsub.f32 %v3022_v18, %v795_v40 }
 0x115   : > { %v801_v42 = vmul.f32 %v3038_v41, %v3038_v41 }
 0x117   : > { %v804_v43 = vsel %vm708_vm0, %v801_v42, 0.0 }
 0x118   : > { %805 = vadd.xlane.f32.xlu1 %v804_v43  ;;  %v783_v44 = vpop.xlane.xlu0 %782 }
 0x119   : > { %v796_v45 = vmul.f32 %v3034_v38, %v783_v44 }
 0x11b   : > { %v3045_v46 = vsub.f32 %v3026_v23, %v796_v45 }
 0x11d   : > { %v802_v47 = vmul.f32 %v3045_v46, %v3045_v46 }
 0x11f   : > { %v807_v48 = vsel %vm708_vm0, %v802_v47, 0.0 }
 0x120   : > { %v787_v49 = vpop.xlane.xlu1 %786  ;;  %808 = vadd.xlane.f32.xlu2 %v807_v48 }
 0x121   : > { %v797_v50 = vmul.f32 %v3034_v38, %v787_v49 }
 0x123   : > { %v3052_v51 = vsub.f32 %v3030_v28, %v797_v50 }
 0x125   : > { %v803_v52 = vmul.f32 %v3052_v51, %v3052_v51 }
 0x127   : > { %v810_v53 = vsel %vm784_vm1, %v803_v52, 0.0 }
 0x128   : > { %811 = vadd.xlane.f32.xlu2 %v810_v53 }
 0x18b   : > { %v806_v58 = vpop.xlane.xlu1 %805 }
 0x18c   : > { %v813_v59 = vmul.f32 %v806_v58, %v3034_v38  ;;  %v2744_v58 = vld [vmem:[%s3490_s7 + $0x30] sm:$0xff] }
 0x18e   : > { %v816_v63 = vadd.f32 1e-05, %v813_v59  ;;  %v2746_v59 = vld [vmem:[%s3492_s9 + $0x30] sm:$0xff] }
 0x190   : > { %2793 = vrsqrt.f32 %v816_v63  ;;  %vm825_vm4 = vweird.f32 %v816_v63 }
 0x193   : > { %v809_v1 = vpop.xlane.xlu2 %808 }
 0x194   : > { %v814_v2 = vmul.f32 %v809_v1, %v3034_v38 }
 0x196   : > { %v2794_v3 = vpop.eup %2793  ;;  %v817_v4 = vadd.f32 1e-05, %v814_v2 }
 0x197   : > { %v820_v5 = vmul.f32 %v2794_v3, %v816_v63  ;;  %vm826_vm3 = vweird.f32 %v2794_v3 }
 0x198   : > { %2795 = vrsqrt.f32 %v817_v4  ;;  %vm827_vm5 = vmor %vm825_vm4, %vm826_vm3  ;;  %vm835_vm7 = vweird.f32 %v817_v4  ;;  %vm1918_vm3 = vcmask 1043456  }
 0x199   : > { %v821_v6 = vmul.f32 %v2794_v3, %v820_v5 }
 0x19b   : > { %v822_v7 = vmul.f32 0.5, %v821_v6  ;;  %v812_v8 = vpop.xlane.xlu2 %811 }
 0x19c   : > { %v815_v9 = vmul.f32 %v812_v8, %v3034_v38  ;;  %v2777_v8 = vld [vmem:[%s3493_s10] ss:$0 sm:$0xff] }
 0x19d   : > { %v823_v10 = vsub.f32 1.5, %v822_v7  ;;  %v2774_v7 = vld [vmem:[%s3495_s12] ss:$0 sm:$0xff] }
 0x19e   : > { %v2796_v11 = vpop.eup %2795  ;;  %v818_v12 = vadd.f32 1e-05, %v815_v9 }
 0x19f   : > { %v824_v13 = vmul.f32 %v2794_v3, %v823_v10  ;;  %v830_v14 = vmul.f32 %v2796_v11, %v817_v4  ;;  %vm836_vm6 = vweird.f32 %v2796_v11 }
 0x1a0   : > { %2797 = vrsqrt.f32 %v818_v12  ;;  %vm837_vm8 = vmor %vm835_vm7, %vm836_vm6  ;;  %vm845_vm10 = vweird.f32 %v818_v12 }
 0x1a1   : > { %v831_v15 = vmul.f32 %v2796_v11, %v830_v14  ;;  %v828_v16 = vsel %vm827_vm5, %v2794_v3, %v824_v13 }
 0x1a2   : > { %v849_v30 = vmul.f32 %v828_v16, %v3038_v41 }
 0x1a3   : > { %v832_v17 = vmul.f32 0.5, %v831_v15 }
 0x1a4   : > { %v855_v39 = vmul.f32 %v2772_v29, %v849_v30 }
 0x1a5   : > { %v833_v24 = vsub.f32 1.5, %v832_v17 }
 0x1a6   : > { %v2798_v27 = vpop.eup %2797  ;;  %v861_v44 = vadd.f32 %v2773_v37, %v855_v39  ;;  %v2874_v39 = vmov 65535  }
 0x1a7   : > { %v834_v33 = vmul.f32 %v2796_v11, %v833_v24  ;;  %v840_v34 = vmul.f32 %v2798_v27, %v818_v12  ;;  %vm846_vm9 = vweird.f32 %v2798_v27 }
 0x1a8   : > { %vm847_vm11 = vmor %vm845_vm10, %vm846_vm9 }
 0x1a9   : > { %v838_v35 = vsel %vm837_vm8, %v2796_v11, %v834_v33  ;;  %v841_v36 = vmul.f32 %v2798_v27, %v840_v34 }
 0x1aa   : > { %v850_v40 = vmul.f32 %v838_v35, %v3045_v46 }
 0x1ab   : > { %v842_v41 = vmul.f32 0.5, %v841_v36 }
 0x1ac   : > { %v856_v42 = vmul.f32 %v2772_v29, %v850_v40  ;;  %v1750_v40 = vsel %vm1748_vm12, 4294967295, %v2874_v39 }
 0x1ad   : > { %v843_v43 = vsub.f32 1.5, %v842_v41 }
 0x1ae   : > { %v862_v45 = vadd.f32 %v2773_v37, %v856_v42 }
 0x1af   : > { %v844_v47 = vmul.f32 %v2798_v27, %v843_v43 }
 0x1b0   : > { %v864_v48 = vpack.c.bf16 %v862_v45, %v861_v44 }
 0x1b1   : > { %v848_v49 = vsel %vm847_vm11, %v2798_v27, %v844_v47 }
 0x1b2   : > { %2488 = vmatmul.msk.bf16.vlgmr.msra.gmra.mxu2 %vm708_vm0, %v864_v48  ;;  %2498 = vmatmul.msk.bf16.vlgmr.msra.gmra.mxu3 %vm708_vm0, %v864_v48  ;;  %v851_v46 = vmul.f32 %v848_v49, %v3052_v51  ;;  %v2747_v51 = vld [vmem:[%s3492_s9 + $0x38] sm:$0xff] }
 0x1b3   : > { %2508 = vmatmul.msk.bf16.vlgmr.msrb.gmra.mxu0 %vm708_vm0, %v864_v48  ;;  %2523 = vmatmul.msk.bf16.vlgmr.msrb.gmra.mxu1 %vm708_vm0, %v864_v48 }
 0x1b4   : > { %v857_v50 = vmul.f32 %v2772_v29, %v851_v46  ;;  %1214 = vmatpush.bf16.msra.mxu2 %v2743_v54  ;;  %1254 = vmatpush.bf16.msra.mxu3 %v2745_v55 }
 0x1b5   : > { %1294 = vmatpush.bf16.msrb.mxu0 %v2747_v51  ;;  %1334 = vmatpush.bf16.msrb.mxu1 %v2749_v56 }
 0x1b6   : > { %v863_v52 = vadd.f32 %v2773_v37, %v857_v50 }
 0x1b8   : > { %v865_v53 = vpack.c.bf16 %v863_v52, %v863_v52  ;;  %1215 = vmatpush.bf16.msra.mxu2 %v2742_v57  ;;  %1255 = vmatpush.bf16.msra.mxu3 %v2744_v58 }
 0x1b9   : > { %1295 = vmatpush.bf16.msrb.mxu0 %v2746_v59  ;;  %1335 = vmatpush.bf16.msrb.mxu1 %v2748_v60 }
 0x1c2   : > { %2489 = vmatmul.msk.bf16.gmra.mxu2 %vm708_vm0, %v865_v53  ;;  %2499 = vmatmul.msk.bf16.gmra.mxu3 %vm708_vm0, %v865_v53 }
 0x1c3   : > { %2509 = vmatmul.msk.bf16.gmra.mxu0 %vm708_vm0, %v865_v53  ;;  %2524 = vmatmul.msk.bf16.gmra.mxu1 %vm708_vm0, %v865_v53 }
 0x1d2   : > { %2538 = vmatmul.msk.bf16.vlgmr.msrb.gmra.mxu2 %vm708_vm0, %v864_v48  ;;  %2553 = vmatmul.msk.bf16.vlgmr.msrb.gmra.mxu3 %vm708_vm0, %v864_v48 }
 0x1d3   : > { %2568 = vmatmul.msk.bf16.vlgmr.msra.gmra.mxu0 %vm708_vm0, %v864_v48  ;;  %2583 = vmatmul.msk.bf16.vlgmr.msra.gmra.mxu1 %vm708_vm0, %v864_v48 }
 0x1e2   : > { %2539 = vmatmul.msk.bf16.gmra.mxu2 %vm708_vm0, %v865_v53  ;;  %2554 = vmatmul.msk.bf16.gmra.mxu3 %vm708_vm0, %v865_v53 }
 0x1e3   : > { %2569 = vmatmul.msk.bf16.gmra.mxu0 %vm708_vm0, %v865_v53  ;;  %2584 = vmatmul.msk.bf16.gmra.mxu1 %vm708_vm0, %v865_v53 }
 0x1f2   : > { %2598 = vmatmul.msk.bf16.vlgmr.msra.gmra.mxu2 %vm708_vm0, %v864_v48  ;;  %2613 = vmatmul.msk.bf16.vlgmr.msra.gmra.mxu3 %vm708_vm0, %v864_v48 }
 0x1f3   : > { %2628 = vmatmul.msk.bf16.vlgmr.msrb.gmra.mxu0 %vm708_vm0, %v864_v48  ;;  %2643 = vmatmul.msk.bf16.vlgmr.msrb.gmra.mxu1 %vm708_vm0, %v864_v48  ;;  %v3182_v48 = vsel %vm1749_vm14, %v1750_v40, 0 }
 0x202   : > { %2599 = vmatmul.msk.bf16.gmra.mxu2 %vm708_vm0, %v865_v53  ;;  %2614 = vmatmul.msk.bf16.gmra.mxu3 %vm708_vm0, %v865_v53 }
 0x203   : > { %2629 = vmatmul.msk.bf16.gmra.mxu0 %vm708_vm0, %v865_v53  ;;  %2644 = vmatmul.msk.bf16.gmra.mxu1 %vm708_vm0, %v865_v53 }
 0x230   : > { %v977_v61 = vpop.f32.mrf.mxu0  ;;  %v3166_v62 = vpop.f32.mrf.mxu1 }
 0x231   : > { %v978_v35 = vadd.f32 %v2774_v7, %v977_v61 }
 0x233   : > { %v1713_v49 = vpack.c.bf16 %v978_v35, %v978_v35  ;;  %v2775_v35 = vld [vmem:[%s3491_s8 + $0x1] ss:$0 sm:$0xff] }
 0x235   : > { %v901_v63 = vpop.f32.mrf.mxu2  ;;  %v939_v0 = vpop.f32.mrf.mxu3  ;;  %v1736_v56 = vunpack.c.l.b16 %v1713_v49 }
 0x236   : > { %v940_v14 = vadd.f32 %v2777_v8, %v939_v0  ;;  %v902_v27 = vadd.f32 %v2776_v19, %v901_v63 }
 0x238   : > { %v979_v1 = vpop.f32.mrf.mxu0  ;;  %v3168_v2 = vpop.f32.mrf.mxu1  ;;  %v1370_v24 = vpack.c.bf16 %v940_v14, %v940_v14  ;;  %v1346_v43 = vmul.f32 0.35355338, %v902_v27 }
 0x239   : > { %v980_v31 = vadd.f32 %v2774_v7, %v979_v1 }
 0x23a   : > { %v1393_v36 = vunpack.c.l.b16 %v1370_v24  ;;  %v1358_v53 = vpack.c.bf16 %v1346_v43, %v1346_v43 }
 0x23b   : > { %v1714_v44 = vpack.c.bf16 %v980_v31, %v980_v31 }
 0x23c   : > { %v1385_v60 = vunpack.c.l.b16 %v1358_v53  ;;  %v1018_v53 = vadd.f32 %v2775_v35, %v3166_v62 }
 0x23d   : > { %v903_v3 = vpop.f32.mrf.mxu2  ;;  %v941_v4 = vpop.f32.mrf.mxu3  ;;  %v1737_v54 = vunpack.c.l.b16 %v1714_v44 }
 0x23e   : > { %v942_v11 = vadd.f32 %v2777_v8, %v941_v4  ;;  %v904_v25 = vadd.f32 %v2776_v19, %v903_v3  ;;  %v2779_v4 = vld [vmem:[%s3493_s10 + $0x2] ss:$0 sm:$0xff] }
 0x23f   : > { %v1739_v61 = vpack.c.b16 %v1737_v54, %v1736_v56 }
 0x240   : > { %v982_v5 = vpop.f32.mrf.mxu0  ;;  %v3170_v6 = vpop.f32.mrf.mxu1  ;;  %v1371_v20 = vpack.c.bf16 %v942_v11, %v942_v11  ;;  %v1347_v37 = vmul.f32 0.35355338, %v904_v25 }
 0x241   : > { %v983_v12 = vadd.f32 %v2774_v7, %v982_v5 }
 0x242   : > { %v1394_v32 = vunpack.c.l.b16 %v1371_v20  ;;  %v1359_v46 = vpack.c.bf16 %v1347_v37, %v1347_v37 }
 0x243   : > { %v1715_v21 = vpack.c.bf16 %v983_v12, %v983_v12 }
 0x244   : > { %v1396_v47 = vpack.c.b16 %v1394_v32, %v1393_v36  ;;  %v1386_v57 = vunpack.c.l.b16 %v1359_v46 }
 0x245   : > { %v906_v9 = vpop.f32.mrf.mxu2  ;;  %v944_v10 = vpop.f32.mrf.mxu3  ;;  %v1738_v33 = vunpack.c.l.b16 %v1715_v21 }
 0x246   : > { %v945_v13 = vadd.f32 %v2777_v8, %v944_v10  ;;  %v1406_v51 = vsel %vm1398_vm13, %v1396_v47, 0  ;;  %v1388_v63 = vpack.c.b16 %v1386_v57, %v1385_v60  ;;  %v907_v0 = vadd.f32 %v2776_v19, %v906_v9  ;;  %v2780_v9 = vld [vmem:[%s3493_s10 + $0x1] ss:$0 sm:$0xff] }
 0x247   : > { %v1740_v45 = vpack.c.b16 %v1738_v33, %v1738_v33  ;;  %v1020_v47 = vadd.f32 %v2775_v35, %v3168_v2 }
 0x248   : > { %v1372_v15 = vpack.c.bf16 %v945_v13, %v945_v13  ;;  %v984_v16 = vpop.f32.mrf.mxu0  ;;  %v1024_v17 = vpop.f32.mrf.mxu1  ;;  %v1348_v5 = vmul.f32 0.35355338, %v907_v0 }
 0x249   : > { %v1753_v55 = vand.u32 %v3182_v48, %v1740_v45  ;;  %v3203_v16 = vld [vmem:[%s3491_s8 + $0x2] ss:$0 sm:$0xff] }
 0x24a   : > { %v1395_v22 = vunpack.c.l.b16 %v1372_v15  ;;  %v1360_v14 = vpack.c.bf16 %v1348_v5, %v1348_v5  ;;  %v2781_v15 = vld [vmem:[%s3495_s12 + $0x1] ss:$0 sm:$0xff]  ;;  %v1349_v5 = vmul.f32 0.35355338, %v1018_v53 }
 0x24c   : > { %v1397_v26 = vpack.c.b16 %v1395_v22, %v1395_v22 }
 0x24d   : > { %v908_v29 = vpop.f32.mrf.mxu2  ;;  %v946_v30 = vpop.f32.mrf.mxu3 }
 0x24e   : > { %v1409_v34 = vsel %vm1398_vm13, %v1397_v26, 0  ;;  %v1387_v30 = vunpack.c.l.b16 %v1360_v14 }
 0x24f   : > { %1417 = vmatpush.bf16.xpose.msrb.mxu2 %v1409_v34 }
 0x250   : > { %v1137_v41 = vpop.f32.mrf.mxu0  ;;  %v1177_v42 = vpop.f32.mrf.mxu1  ;;  %v1389_v49 = vpack.c.b16 %v1387_v30, %v1387_v30 }
 0x251   : > { %v1178_v12 = vadd.f32 %v2779_v4, %v1177_v42  ;;  %v1138_v36 = vadd.f32 %v3203_v16, %v1137_v41 }
 0x253   : > { %v1376_v26 = vpack.c.bf16 %v1178_v12, %v1178_v12  ;;  %v1352_v54 = vmul.f32 0.35355338, %v1138_v36 }
 0x255   : > { %v1057_v50 = vpop.f32.mrf.mxu2  ;;  %v3184_v52 = vpop.f32.mrf.mxu3  ;;  %v1486_v44 = vunpack.c.l.b16 %v1376_v26  ;;  %v1364_v62 = vpack.c.bf16 %v1352_v54, %v1352_v54 }
 0x256   : > { %v1058_v31 = vadd.f32 %v2780_v9, %v1057_v50 }
 0x257   : > { %1418 = vmatpush.bf16.xpose.msrb.mxu2 %v1406_v51  ;;  %v1478_v14 = vunpack.c.l.b16 %v1364_v62 }
 0x258   : > { %v1139_v58 = vpop.f32.mrf.mxu0  ;;  %v1179_v59 = vpop.f32.mrf.mxu1  ;;  %v1373_v46 = vpack.c.bf16 %v1058_v31, %v1058_v31 }
 0x259   : > { %v1180_v10 = vadd.f32 %v2779_v4, %v1179_v59  ;;  %v1140_v27 = vadd.f32 %v3203_v16, %v1139_v58 }
 0x25a   : > { %v1440_v2 = vunpack.c.l.b16 %v1373_v46  ;;  %v2784_v46 = vld [vmem:[%s3495_s12 + $0x2] ss:$0 sm:$0xff] }
 0x25b   : > { %v1377_v17 = vpack.c.bf16 %v1180_v10, %v1180_v10  ;;  %v1353_v45 = vmul.f32 0.35355338, %v1140_v27 }
 0x25d   : > { %v1059_v1 = vpop.f32.mrf.mxu2  ;;  %v1099_v3 = vpop.f32.mrf.mxu3  ;;  %v1487_v37 = vunpack.c.l.b16 %v1377_v17  ;;  %v1365_v60 = vpack.c.bf16 %v1353_v45, %v1353_v45 }
 0x25e   : > { %2645 = vmatmul.msk.bf16.vlgmr.msrb.gmra.mxu2 %vm1398_vm13, %v1388_v63  ;;  %v1060_v22 = vadd.f32 %v2780_v9, %v1059_v1  ;;  %v1100_v57 = vadd.f32 %v2781_v15, %v1099_v3  ;;  %v1098_v63 = vadd.f32 %v2781_v15, %v3184_v52 }
 0x25f   : > { %1761 = vmatpush.bf16.msra.mxu2 %v1753_v55  ;;  %v1489_v55 = vpack.c.b16 %v1487_v37, %v1486_v44  ;;  %v2783_v37 = vld [vmem:[%s3495_s12 + $0x3] ss:$0 sm:$0xff] }
 0x260   : > { %v3192_v7 = vpop.f32.mrf.mxu0  ;;  %v1182_v8 = vpop.f32.mrf.mxu1  ;;  %v1374_v40 = vpack.c.bf16 %v1060_v22, %v1060_v22  ;;  %v1717_v3 = vpack.c.bf16 %v1100_v57, %v1100_v57 }
 0x261   : > { %v1183_v11 = vadd.f32 %v2779_v4, %v1182_v8  ;;  %v1498_v4 = vsel %vm1398_vm13, %v1489_v55, 0  ;;  %v1143_v22 = vadd.f32 %v3203_v16, %v3192_v7  ;;  %v2782_v16 = vld [vmem:[%s3493_s10 + $0x3] ss:$0 sm:$0xff] }
 0x262   : > { %v1441_v56 = vunpack.c.l.b16 %v1374_v40 }
 0x263   : > { %1762 = vmatpush.bf16.msra.mxu2 %v1739_v61  ;;  %v1378_v13 = vpack.c.bf16 %v1183_v11, %v1183_v11  ;;  %v1350_v61 = vmul.f32 0.35355338, %v1020_v47  ;;  %v1479_v11 = vunpack.c.l.b16 %v1365_v60  ;;  %v1354_v31 = vmul.f32 0.35355338, %v1143_v22 }
 0x264   : > { %v1443_v8 = vpack.c.b16 %v1441_v56, %v1440_v2 }
 0x265   : > { %v1488_v19 = vunpack.c.l.b16 %v1378_v13  ;;  %v1062_v20 = vpop.f32.mrf.mxu2  ;;  %v1102_v21 = vpop.f32.mrf.mxu3  ;;  %v1362_v12 = vpack.c.bf16 %v1350_v61, %v1350_v61  ;;  %v1716_v13 = vpack.c.bf16 %v1098_v63, %v1098_v63  ;;  %v1366_v7 = vpack.c.bf16 %v1354_v31, %v1354_v31 }
 0x266   : > { %v1063_v24 = vadd.f32 %v2780_v9, %v1062_v20  ;;  %v1103_v25 = vadd.f32 %v2781_v15, %v1102_v21  ;;  %v1785_v20 = vunpack.c.l.b16 %v1717_v3  ;;  %v1452_v15 = vsel %vm1398_vm13, %v1443_v8, 0 }
 0x267   : > { %v1490_v29 = vpack.c.b16 %v1488_v19, %v1488_v19  ;;  %v1361_v19 = vpack.c.bf16 %v1349_v5, %v1349_v5  ;;  %v1481_v21 = vpack.c.b16 %v1479_v11, %v1478_v14 }
 0x268   : > { %v1375_v32 = vpack.c.bf16 %v1063_v24, %v1063_v24  ;;  %v1144_v33 = vpop.f32.mrf.mxu0  ;;  %v1184_v34 = vpop.f32.mrf.mxu1  ;;  %v1718_v43 = vpack.c.bf16 %v1103_v25, %v1103_v25  ;;  %v1433_v24 = vunpack.c.l.b16 %v1362_v12  ;;  %v1784_v25 = vunpack.c.l.b16 %v1716_v13 }
 0x269   : > { %v1501_v39 = vsel %vm1398_vm13, %v1490_v29, 0  ;;  %v1432_v29 = vunpack.c.l.b16 %v1361_v19  ;;  %v1023_v33 = vadd.f32 %v2775_v35, %v3170_v6  ;;  %v1480_v35 = vunpack.c.l.b16 %v1366_v7 }
 0x26a   : > { %v1442_v42 = vunpack.c.l.b16 %v1375_v32  ;;  %1509 = vmatpush.bf16.xpose.msra.mxu0 %v1501_v39  ;;  %v1786_v58 = vunpack.c.l.b16 %v1718_v43  ;;  %v1787_v30 = vpack.c.b16 %v1785_v20, %v1784_v25 }
 0x26b   : > { %v1435_v32 = vpack.c.b16 %v1433_v24, %v1432_v29  ;;  %v1351_v39 = vmul.f32 0.35355338, %v1023_v33 }
 0x26c   : > { %v1444_v50 = vpack.c.b16 %v1442_v42, %v1442_v42  ;;  %v1788_v10 = vpack.c.b16 %v1786_v58, %v1786_v58  ;;  %v1482_v58 = vpack.c.b16 %v1480_v35, %v1480_v35 }
 0x26d   : > { %v1064_v51 = vpop.f32.mrf.mxu2  ;;  %v1104_v41 = vpop.f32.mrf.mxu3 }
 0x26e   : > { %2646 = vmatmul.msk.bf16.gmra.mxu2 %vm1398_vm13, %v1389_v49  ;;  %v1455_v59 = vsel %vm1398_vm13, %v1444_v50, 0  ;;  %v1797_v52 = vand.u32 %v1788_v10, %v3182_v48  ;;  %v1363_v49 = vpack.c.bf16 %v1351_v39, %v1351_v39  ;;  %v2785_v50 = vld [vmem:[%s3491_s8 + $0x3] ss:$0 sm:$0xff] }
 0x26f   : > { %1463 = vmatpush.bf16.xpose.msrb.mxu3 %v1455_v59 }
 0x270   : > { %v1297_v0 = vpop.f32.mrf.mxu0  ;;  %v3216_v1 = vpop.f32.mrf.mxu1  ;;  %v1434_v2 = vunpack.c.l.b16 %v1363_v49 }
 0x271   : > { %v1298_v45 = vadd.f32 %v2782_v16, %v1297_v0  ;;  %v1338_v19 = vadd.f32 %v2783_v37, %v3216_v1 }
 0x272   : > { %1510 = vmatpush.bf16.xpose.msra.mxu0 %v1498_v4 }
 0x273   : > { %v1379_v59 = vpack.c.bf16 %v1298_v45, %v1298_v45 }
 0x275   : > { %v1217_v9 = vpop.f32.mrf.mxu2  ;;  %v1257_v17 = vpop.f32.mrf.mxu3  ;;  %v1532_v14 = vunpack.c.l.b16 %v1379_v59 }
 0x276   : > { %v1218_v63 = vadd.f32 %v2784_v46, %v1217_v9  ;;  %v1258_v0 = vadd.f32 %v2785_v50, %v1257_v17 }
 0x277   : > { %1464 = vmatpush.bf16.xpose.msrb.mxu3 %v1452_v15 }
 0x278   : > { %v1299_v26 = vpop.f32.mrf.mxu0  ;;  %v1339_v27 = vpop.f32.mrf.mxu1  ;;  %v1719_v9 = vpack.c.bf16 %v1218_v63, %v1218_v63  ;;  %v1355_v15 = vmul.f32 0.35355338, %v1258_v0 }
 0x279   : > { %2649 = vmatmul.msk.bf16.vlgmr.msra.gmra.mxu0 %vm1398_vm13, %v1481_v21  ;;  %v1300_v43 = vadd.f32 %v2782_v16, %v1299_v26  ;;  %v1340_v3 = vadd.f32 %v2783_v37, %v1339_v27 }
 0x27a   : > { %v1367_v1 = vpack.c.bf16 %v1355_v15, %v1355_v15 }
 0x27b   : > { %v1380_v53 = vpack.c.bf16 %v1300_v43, %v1300_v43  ;;  %v1723_v22 = vpack.c.bf16 %v1340_v3, %v1340_v3 }
 0x27c   : > { %v1524_v39 = vunpack.c.l.b16 %v1367_v1 }
 0x27d   : > { %v1219_v34 = vpop.f32.mrf.mxu2  ;;  %v1259_v36 = vpop.f32.mrf.mxu3  ;;  %v1533_v8 = vunpack.c.l.b16 %v1380_v53  ;;  %v1873_v33 = vunpack.c.l.b16 %v1723_v22 }
 0x27e   : > { %2647 = vmatmul.msk.bf16.vlgmr.msrb.gmra.mxu3 %vm1398_vm13, %v1435_v32  ;;  %v1220_v56 = vadd.f32 %v2784_v46, %v1219_v34  ;;  %v1260_v60 = vadd.f32 %v2785_v50, %v1259_v36  ;;  %v1828_v32 = vunpack.c.l.b16 %v1719_v9 }
 0x27f   : > { %1805 = vmatpush.bf16.msra.mxu3 %v1797_v52  ;;  %v1436_v52 = vpack.c.b16 %v1434_v2, %v1434_v2  ;;  %v1535_v21 = vpack.c.b16 %v1533_v8, %v1532_v14 }
 0x280   : > { %v1302_v40 = vpop.f32.mrf.mxu0  ;;  %v1342_v42 = vpop.f32.mrf.mxu1  ;;  %v1720_v12 = vpack.c.bf16 %v1220_v56, %v1220_v56  ;;  %v1356_v20 = vmul.f32 0.35355338, %v1260_v60 }
 0x281   : > { %v1303_v44 = vadd.f32 %v2782_v16, %v1302_v40  ;;  %v1343_v6 = vadd.f32 %v2783_v37, %v1342_v42  ;;  %v1544_v36 = vsel %vm1398_vm13, %v1535_v21, 0 }
 0x282   : > { %v1829_v27 = vunpack.c.l.b16 %v1720_v12  ;;  %v1368_v31 = vpack.c.bf16 %v1356_v20, %v1356_v20 }
 0x283   : > { %1806 = vmatpush.bf16.msra.mxu3 %v1787_v30  ;;  %v1381_v47 = vpack.c.bf16 %v1303_v44, %v1303_v44  ;;  %v1724_v55 = vpack.c.bf16 %v1343_v6, %v1343_v6  ;;  %v1722_v30 = vpack.c.bf16 %v1338_v19, %v1338_v19 }
 0x284   : > { %v1831_v7 = vpack.c.b16 %v1829_v27, %v1828_v32  ;;  %v1525_v37 = vunpack.c.l.b16 %v1368_v31 }
 0x285   : > { %v1534_v54 = vunpack.c.l.b16 %v1381_v47  ;;  %v1222_v51 = vpop.f32.mrf.mxu2  ;;  %v1262_v41 = vpop.f32.mrf.mxu3  ;;  %v1874_v10 = vunpack.c.l.b16 %v1724_v55  ;;  %v1872_v16 = vunpack.c.l.b16 %v1722_v30 }
 0x286   : > { %v1223_v57 = vadd.f32 %v2784_v46, %v1222_v51  ;;  %v1527_v42 = vpack.c.b16 %v1525_v37, %v1524_v39  ;;  %v1263_v43 = vadd.f32 %v2785_v50, %v1262_v41 }
 0x287   : > { %v1536_v61 = vpack.c.b16 %v1534_v54, %v1534_v54  ;;  %v1876_v24 = vpack.c.b16 %v1874_v10, %v1874_v10  ;;  %v1875_v40 = vpack.c.b16 %v1873_v33, %v1872_v16 }
 0x288   : > { %v1721_v62 = vpack.c.bf16 %v1223_v57, %v1223_v57  ;;  %v1304_v4 = vpop.f32.mrf.mxu0  ;;  %v1344_v5 = vpop.f32.mrf.mxu1  ;;  %v1357_v44 = vmul.f32 0.35355338, %v1263_v43 }
 0x289   : > { %2650 = vmatmul.msk.bf16.gmra.mxu0 %vm1398_vm13, %v1482_v58  ;;  %v1547_v11 = vsel %vm1398_vm13, %v1536_v61, 0  ;;  %v1885_v34 = vand.u32 %v1876_v24, %v3182_v48 }
 0x28a   : > { %v1830_v13 = vunpack.c.l.b16 %v1721_v62  ;;  %1555 = vmatpush.bf16.xpose.msra.mxu1 %v1547_v11  ;;  %v1369_v6 = vpack.c.bf16 %v1357_v44, %v1357_v44 }
 0x28c   : > { %v1832_v17 = vpack.c.b16 %v1830_v13, %v1830_v13  ;;  %v1526_v35 = vunpack.c.l.b16 %v1369_v6 }
 0x28d   : > { %v1224_v25 = vpop.f32.mrf.mxu2  ;;  %v1264_v26 = vpop.f32.mrf.mxu3 }
 0x28e   : > { %v1841_v29 = vand.u32 %v1832_v17, %v3182_v48  ;;  %2648 = vmatmul.msk.bf16.gmra.mxu3 %vm1398_vm13, %v1436_v52  ;;  %v1528_v45 = vpack.c.b16 %v1526_v35, %v1526_v35 }
 0x290   : > { %1849 = vmatpush.bf16.msrb.mxu0 %v1841_v29 }
 0x292   : > { %1556 = vmatpush.bf16.xpose.msra.mxu1 %v1544_v36 }
 0x294   : > { %1850 = vmatpush.bf16.msrb.mxu0 %v1831_v7 }
 0x299   : > { %2651 = vmatmul.msk.bf16.vlgmr.msra.gmra.mxu1 %vm1398_vm13, %v1527_v42 }
 0x29a   : > { %1893 = vmatpush.bf16.msrb.mxu1 %v1885_v34 }
 0x29e   : > { %1894 = vmatpush.bf16.msrb.mxu1 %v1875_v40 }
 0x2a9   : > { %2652 = vmatmul.msk.bf16.gmra.mxu1 %vm1398_vm13, %v1528_v45 }
 0x2e1   : > { %v1420_v48 = vpop.f32.mrf.mxu2 }
 0x2e2   : > { %v1568_v47 = vsel %vm1567_vm15, %v1420_v48, -inf }
 0x2e3   : > { %1569 = vmax.xlane.f32.xlu0 %v1568_v47 }
 0x2e9   : > { %v1422_v49 = vpop.f32.mrf.mxu2 }
 0x2ea   : > { %v1571_v46 = vsel %vm1567_vm15, %v1422_v49, -inf }
 0x2eb   : > { %1572 = vmax.xlane.f32.xlu1 %v1571_v46 }
 0x2f1   : > { %v3249_v53 = vpop.f32.mrf.mxu2 }
 0x2f2   : > { %v1575_v63 = vsel %vm1574_vm2, %v3249_v53, -inf }
 0x2f6   : > { %v3251_v50 = vpop.f32.mrf.mxu0 }
 0x2f7   : > { %v1587_v54 = vsel %vm1567_vm15, %v3251_v50, -inf }
 0x2f8   : > { %1588 = vmax.xlane.f32.xlu1 %v1587_v54 }
 0x2f9   : > { %v1427_v55 = vpop.f32.mrf.mxu2 }
 0x2fe   : > { %v1514_v51 = vpop.f32.mrf.mxu0 }
 0x2ff   : > { %v1590_v59 = vsel %vm1567_vm15, %v1514_v51, -inf }
 0x301   : > { %v1466_v41 = vpop.f32.mrf.mxu3 }
 0x302   : > { %v1578_v56 = vsel %vm1567_vm15, %v1466_v41, -inf }
 0x303   : > { %1579 = vmax.xlane.f32.xlu2 %v1578_v56 }
 0x306   : > { %v3256_v57 = vpop.f32.mrf.mxu0 }
 0x307   : > { %v1593_v22 = vsel %vm1574_vm2, %v3256_v57, -inf }
 0x309   : > { %v1468_v58 = vpop.f32.mrf.mxu3 }
 0x30a   : > { %v1581_v60 = vsel %vm1567_vm15, %v1468_v58, -inf }
 0x30b   : > { %1591 = vmax.xlane.f32.xlu2 %v1590_v59  ;;  %1582 = vmax.xlane.f32.xlu0 %v1581_v60 }
 0x30e   : > { %v1519_v61 = vpop.f32.mrf.mxu0 }
 0x311   : > { %v3260_v2 = vpop.f32.mrf.mxu3 }
 0x312   : > { %v1584_v3 = vsel %vm1574_vm2, %v3260_v2, -inf }
 0x313   : > { %1576 = vmax.xlane.f32.xlu2 %v1575_v63 }
 0x316   : > { %v1558_v0 = vpop.f32.mrf.mxu1 }
 0x317   : > { %v1596_v62 = vsel %vm1567_vm15, %v1558_v0, -inf }
 0x318   : > { %1597 = vmax.xlane.f32.xlu0 %v1596_v62 }
 0x319   : > { %v1473_v4 = vpop.f32.mrf.mxu3 }
 0x31e   : > { %v3265_v5 = vpop.f32.mrf.mxu1 }
 0x31f   : > { %v1599_v8 = vsel %vm1567_vm15, %v3265_v5, -inf }
 0x320   : > { %1600 = vmax.xlane.f32.xlu1 %v1599_v8  ;;  %1585 = vmax.xlane.f32.xlu0 %v1584_v3 }
 0x326   : > { %v3271_v10 = vpop.f32.mrf.mxu1 }
 0x327   : > { %v1602_v44 = vsel %vm1574_vm2, %v3271_v10, -inf }
 0x32e   : > { %v1565_v11 = vpop.f32.mrf.mxu1 }
 0x356   : > { %v1570_v12 = vpop.xlane.xlu0 %1569 }
 0x357   : > { %v1605_v13 = vsub.f32 %v1420_v48, %v1570_v12 }
 0x359   : > { %v1617_v14 = vmul.f32 1.442695, %v1605_v13 }
 0x35b   : > { %2799 = vpow2.f32 %v1617_v14 }
 0x35e   : > { %v1573_v19 = vpop.xlane.xlu1 %1572 }
 0x35f   : > { %v1606_v20 = vsub.f32 %v1422_v49, %v1573_v19 }
 0x361   : > { %v3273_v52 = vpop.eup %2799  ;;  %v1619_v9 = vmul.f32 1.442695, %v1606_v20 }
 0x362   : > { %v1641_v17 = vsel %vm1567_vm15, %v3273_v52, 0.0 }
 0x363   : > { %2801 = vpow2.f32 %v1619_v9  ;;  %1642 = vadd.xlane.f32.xlu1 %v1641_v17 }
 0x369   : > { %v3277_v15 = vpop.eup %2801 }
 0x36a   : > { %v1644_v21 = vsel %vm1567_vm15, %v3277_v15, 0.0 }
 0x36b   : > { %1645 = vadd.xlane.f32.xlu2 %v1644_v21  ;;  %v1589_v30 = vpop.xlane.xlu1 %1588 }
 0x36c   : > { %v1611_v36 = vsub.f32 %v3251_v50, %v1589_v30 }
 0x36e   : > { %v1629_v16 = vmul.f32 1.442695, %v1611_v36 }
 0x373   : > { %1594 = vmax.xlane.f32.xlu2 %v1593_v22 }
 0x376   : > { %v1580_v24 = vpop.xlane.xlu2 %1579 }
 0x377   : > { %v1608_v25 = vsub.f32 %v1466_v41, %v1580_v24 }
 0x379   : > { %v1623_v26 = vmul.f32 1.442695, %v1608_v25 }
 0x37b   : > { %2803 = vpow2.f32 %v1623_v26 }
 0x37e   : > { %v1592_v27 = vpop.xlane.xlu2 %1591  ;;  %v1583_v29 = vpop.xlane.xlu0 %1582 }
 0x37f   : > { %v1612_v31 = vsub.f32 %v1514_v51, %v1592_v27  ;;  %v1609_v32 = vsub.f32 %v1468_v58, %v1583_v29 }
 0x381   : > { %v3283_v1 = vpop.eup %2803  ;;  %v1631_v33 = vmul.f32 1.442695, %v1612_v31  ;;  %v1625_v34 = vmul.f32 1.442695, %v1609_v32 }
 0x382   : > { %v1650_v7 = vsel %vm1567_vm15, %v3283_v1, 0.0 }
 0x383   : > { %2805 = vpow2.f32 %v1631_v33  ;;  %1651 = vadd.xlane.f32.xlu0 %v1650_v7 }
 0x384   : > { %2807 = vpow2.f32 %v1625_v34 }
 0x385   : > { %2809 = vpow2.f32 %v1629_v16 }
 0x386   : > { %v1577_v37 = vpop.xlane.xlu2 %1576 }
 0x387   : > { %v1607_v39 = vsub.f32 %v3249_v53, %v1577_v37 }
 0x389   : > { %v3289_v40 = vpop.eup %2805  ;;  %v1621_v42 = vmul.f32 1.442695, %v1607_v39 }
 0x38a   : > { %v3291_v43 = vpop.eup %2807  ;;  %v1662_v6 = vsel %vm1567_vm15, %v3289_v40, 0.0 }
 0x38b   : > { %2811 = vpow2.f32 %v1621_v42  ;;  %v1598_v35 = vpop.xlane.xlu0 %1597  ;;  %v1653_v45 = vsel %vm1567_vm15, %v3291_v43, 0.0  ;;  %1603 = vmax.xlane.f32.xlu0 %v1602_v44  ;;  %1663 = vadd.xlane.f32.xlu2 %v1662_v6  ;;  %v3299_v49 = vpop.eup %2809 }
 0x38c   : > { %v1614_v48 = vsub.f32 %v1558_v0, %v1598_v35  ;;  %1654 = vadd.xlane.f32.xlu1 %v1653_v45  ;;  %v1659_v55 = vsel %vm1567_vm15, %v3299_v49, 0.0 }
 0x38e   : > { %v1635_v47 = vmul.f32 1.442695, %v1614_v48 }
 0x390   : > { %2813 = vpow2.f32 %v1635_v47 }
 0x391   : > { %v3301_v46 = vpop.eup %2811 }
 0x392   : > { %v1647_v53 = vsel %vm1574_vm2, %v3301_v46, 0.0 }
 0x393   : > { %v1601_v50 = vpop.xlane.xlu1 %1600  ;;  %v1586_v54 = vpop.xlane.xlu0 %1585  ;;  %1648 = vadd.xlane.f32.xlu2 %v1647_v53 }
 0x394   : > { %v1615_v51 = vsub.f32 %v3265_v5, %v1601_v50  ;;  %v1610_v41 = vsub.f32 %v3260_v2, %v1586_v54  ;;  %1660 = vadd.xlane.f32.xlu1 %v1659_v55 }
 0x396   : > { %v3309_v56 = vpop.eup %2813  ;;  %v1637_v58 = vmul.f32 1.442695, %v1615_v51  ;;  %v1627_v59 = vmul.f32 1.442695, %v1610_v41 }
 0x397   : > { %v1668_v60 = vsel %vm1567_vm15, %v3309_v56, 0.0 }
 0x398   : > { %2815 = vpow2.f32 %v1637_v58  ;;  %1669 = vadd.xlane.f32.xlu0 %v1668_v60 }
 0x399   : > { %2817 = vpow2.f32 %v1627_v59 }
 0x39e   : > { %v3313_v61 = vpop.eup %2815 }
 0x39f   : > { %v3315_v63 = vpop.eup %2817  ;;  %v1671_v0 = vsel %vm1567_vm15, %v3313_v61, 0.0 }
 0x3a0   : > { %1672 = vadd.xlane.f32.xlu1 %v1671_v0  ;;  %v1656_v2 = vsel %vm1574_vm2, %v3315_v63, 0.0 }
 0x3a1   : > { %1657 = vadd.xlane.f32.xlu0 %v1656_v2 }
 0x3d6   : > { %v1643_v62 = vpop.xlane.xlu1 %1642 }
 0x3d7   : > { %2819 = vrcp.f32 %v1643_v62 }
 0x3dd   : > { %v2820_v5 = vpop.eup %2819 }
 0x3de   : > { %v1646_v4 = vpop.xlane.xlu2 %1645  ;;  %v1689_v8 = vmul.f32 %v2820_v5, %v3273_v52 }
 0x3df   : > { %2821 = vrcp.f32 %v1646_v4 }
 0x3e0   : > { %v1701_v11 = vpack.c.bf16 %v1689_v8, %v1689_v8 }
 0x3e2   : > { %v1728_v9 = vunpack.c.l.b16 %v1701_v11 }
 0x3e5   : > { %v2822_v3 = vpop.eup %2821 }
 0x3e6   : > { %v1690_v12 = vmul.f32 %v2822_v3, %v3277_v15  ;;  %v1595_v13 = vpop.xlane.xlu2 %1594 }
 0x3e7   : > { %v1613_v14 = vsub.f32 %v3256_v57, %v1595_v13 }
 0x3e8   : > { %v1702_v19 = vpack.c.bf16 %v1690_v12, %v1690_v12 }
 0x3e9   : > { %v1633_v20 = vmul.f32 1.442695, %v1613_v14 }
 0x3ea   : > { %v1729_v17 = vunpack.c.l.b16 %v1702_v19 }
 0x3eb   : > { %2823 = vpow2.f32 %v1633_v20 }
 0x3ec   : > { %v1731_v21 = vpack.c.b16 %v1729_v17, %v1728_v9 }
 0x3ee   : > { %2653 = vmatmul.msk.bf16.vlgmr.msra.gmra.mxu2 %vm1567_vm15, %v1731_v21 }
 0x3f1   : > { %v3325_v22 = vpop.eup %2823 }
 0x3f2   : > { %v1665_v52 = vsel %vm1574_vm2, %v3325_v22, 0.0 }
 0x3f3   : > { %1666 = vadd.xlane.f32.xlu1 %v1665_v52 }
 0x3f6   : > { %v1652_v24 = vpop.xlane.xlu0 %1651 }
 0x3f7   : > { %2825 = vrcp.f32 %v1652_v24 }
 0x3fd   : > { %v2826_v27 = vpop.eup %2825 }
 0x3fe   : > { %v1604_v15 = vpop.xlane.xlu0 %1603  ;;  %v1664_v25 = vpop.xlane.xlu2 %1663  ;;  %v1692_v30 = vmul.f32 %v2826_v27, %v3283_v1 }
 0x3ff   : > { %v1655_v26 = vpop.xlane.xlu1 %1654  ;;  %v1616_v57 = vsub.f32 %v3271_v10, %v1604_v15  ;;  %v2661_v15 = vld [vmem:[%s3496_s13 + $0x4] sm:$0xf] }
 0x400   : > { %2827 = vrcp.f32 %v1655_v26  ;;  %v1704_v33 = vpack.c.bf16 %v1692_v30, %v1692_v30  ;;  %v1920_v26 = vsel %vm1918_vm3, %v2661_v15, 0 }
 0x401   : > { %v1639_v29 = vmul.f32 1.442695, %v1616_v57  ;;  %2829 = vrcp.f32 %v1664_v25  ;;  %1929 = vmatpush.bf16.msrb.mxu2 %v1920_v26  ;;  %v2666_v57 = vld [vmem:[%s3496_s13 + $0x8] sm:$0xf] }
 0x402   : > { %v1776_v39 = vunpack.c.l.b16 %v1704_v33 }
 0x403   : > { %2831 = vpow2.f32 %v1639_v29 }
 0x406   : > { %v2828_v31 = vpop.eup %2827  ;;  %v1649_v32 = vpop.xlane.xlu2 %1648 }
 0x407   : > { %v1693_v34 = vmul.f32 %v2828_v31, %v3291_v43  ;;  %v1661_v36 = vpop.xlane.xlu1 %1660  ;;  %2833 = vrcp.f32 %v1649_v32  ;;  %v2830_v7 = vpop.eup %2829  ;;  %v2669_v31 = vld [vmem:[%s3496_s13 + $0xc] sm:$0xf] }
 0x408   : > { %2835 = vrcp.f32 %v1661_v36  ;;  %v1696_v1 = vmul.f32 %v2830_v7, %v3289_v40  ;;  %v2012_v33 = vsel %vm1918_vm3, %v2669_v31, 0 }
 0x409   : > { %v3332_v16 = vpop.eup %2831  ;;  %v1705_v37 = vpack.c.bf16 %v1693_v34, %v1693_v34  ;;  %2021 = vmatpush.bf16.msra.mxu1 %v2012_v33 }
 0x40a   : > { %v1674_v10 = vsel %vm1574_vm2, %v3332_v16, 0.0  ;;  %v1708_v48 = vpack.c.bf16 %v1696_v1, %v1696_v1 }
 0x40b   : > { %v1777_v42 = vunpack.c.l.b16 %v1705_v37  ;;  %v1670_v44 = vpop.xlane.xlu0 %1669  ;;  %1675 = vadd.xlane.f32.xlu2 %v1674_v10 }
 0x40c   : > { %2837 = vrcp.f32 %v1670_v44  ;;  %v1821_v55 = vunpack.c.l.b16 %v1708_v48 }
 0x40d   : > { %v2834_v6 = vpop.eup %2833  ;;  %v1779_v35 = vpack.c.b16 %v1777_v42, %v1776_v39 }
 0x40e   : > { %v2836_v45 = vpop.eup %2835  ;;  %v1691_v43 = vmul.f32 %v2834_v6, %v3301_v46 }
 0x40f   : > { %v1695_v47 = vmul.f32 %v2836_v45, %v3299_v49  ;;  %2655 = vmatmul.msk.bf16.vlgmr.msra.gmra.mxu3 %vm1567_vm15, %v1779_v35 }
 0x410   : > { %v1703_v53 = vpack.c.bf16 %v1691_v43, %v1691_v43 }
 0x411   : > { %v1707_v50 = vpack.c.bf16 %v1695_v47, %v1695_v47 }
 0x412   : > { %v1730_v54 = vunpack.c.l.b16 %v1703_v53  ;;  %v2838_v40 = vpop.eup %2837 }
 0x413   : > { %v1820_v51 = vunpack.c.l.b16 %v1707_v50  ;;  %v1673_v41 = vpop.xlane.xlu1 %1672  ;;  %v1698_v46 = vmul.f32 %v2838_v40, %v3309_v56  ;;  %v1907_v56 = vld [vmem:[%s3496_s13] sm:$0xf] }
 0x414   : > { %2839 = vrcp.f32 %v1673_v41  ;;  %v1658_v58 = vpop.xlane.xlu0 %1657  ;;  %v1732_v59 = vpack.c.b16 %v1730_v54, %v1730_v54 }
 0x415   : > { %v1823_v60 = vpack.c.b16 %v1821_v55, %v1820_v51  ;;  %2841 = vrcp.f32 %v1658_v58  ;;  %v1710_v2 = vpack.c.bf16 %v1698_v46, %v1698_v46 }
 0x416   : > { %2654 = vmatmul.msk.bf16.gmra.mxu2 %vm1567_vm15, %v1732_v59 }
 0x417   : > { %2657 = vmatmul.msk.bf16.vlgmr.msrb.gmra.mxu0 %vm1567_vm15, %v1823_v60  ;;  %v1864_v3 = vunpack.c.l.b16 %v1710_v2 }
 0x41a   : > { %v2840_v49 = vpop.eup %2839 }
 0x41b   : > { %v2842_v0 = vpop.eup %2841  ;;  %v1699_v62 = vmul.f32 %v2840_v49, %v3313_v61  ;;  %v1947_v61 = vsel %vm1918_vm3, %v1907_v56, 0 }
 0x41c   : > { %v1694_v4 = vmul.f32 %v2842_v0, %v3315_v63  ;;  %1956 = vmatpush.bf16.msrb.mxu3 %v1947_v61 }
 0x41d   : > { %v1711_v5 = vpack.c.bf16 %v1699_v62, %v1699_v62 }
 0x41e   : > { %v1706_v8 = vpack.c.bf16 %v1694_v4, %v1694_v4 }
 0x41f   : > { %v1865_v11 = vunpack.c.l.b16 %v1711_v5 }
 0x420   : > { %v1778_v12 = vunpack.c.l.b16 %v1706_v8 }
 0x421   : > { %v1867_v13 = vpack.c.b16 %v1865_v11, %v1864_v3  ;;  %v2786_v3 = vld [vmem:[%s3497_s14] ss:$0 sm:$0xff] }
 0x422   : > { %v1780_v14 = vpack.c.b16 %v1778_v12, %v1778_v12 }
 0x423   : > { %2659 = vmatmul.msk.bf16.vlgmr.msrb.gmra.mxu1 %vm1567_vm15, %v1867_v13 }
 0x424   : > { %2656 = vmatmul.msk.bf16.gmra.mxu3 %vm1567_vm15, %v1780_v14 }
 0x466   : > { %v1667_v63 = vpop.xlane.xlu1 %1666 }
 0x467   : > { %2843 = vrcp.f32 %v1667_v63 }
 0x46d   : > { %v2844_v19 = vpop.eup %2843 }
 0x46e   : > { %v1697_v20 = vmul.f32 %v2844_v19, %v3325_v22  ;;  %v1978_v22 = vsel %vm1918_vm3, %v2666_v57, 0 }
 0x46f   : > { %1987 = vmatpush.bf16.msra.mxu0 %v1978_v22 }
 0x470   : > { %v1709_v9 = vpack.c.bf16 %v1697_v20, %v1697_v20 }
 0x471   : > { %v1764_v17 = vpop.f32.mrf.mxu2 }
 0x472   : > { %v1822_v21 = vunpack.c.l.b16 %v1709_v9 }
 0x474   : > { %v1824_v52 = vpack.c.b16 %v1822_v21, %v1822_v21 }
 0x476   : > { %2658 = vmatmul.msk.bf16.gmra.mxu0 %vm1567_vm15, %v1824_v52 }
 0x479   : > { %v1766_v24 = vpop.f32.mrf.mxu2 }
 0x47a   : > { %v1905_v25 = vpack.c.bf16 %v1766_v24, %v1764_v17 }
 0x47c   : > { %2664 = vmatmul.msk.bf16.vlgmr.msrb.gmra.mxu3 %vm1398_vm13, %v1905_v25 }
 0x47e   : > { %v1676_v27 = vpop.xlane.xlu2 %1675 }
 0x47f   : > { %2845 = vrcp.f32 %v1676_v27 }
 0x485   : > { %v2846_v29 = vpop.eup %2845 }
 0x486   : > { %v1700_v30 = vmul.f32 %v2846_v29, %v3332_v16 }
 0x488   : > { %v1712_v32 = vpack.c.bf16 %v1700_v30, %v1700_v30 }
 0x48a   : > { %v1866_v34 = vunpack.c.l.b16 %v1712_v32 }
 0x48c   : > { %v1868_v36 = vpack.c.b16 %v1866_v34, %v1866_v34 }
 0x48e   : > { %2660 = vmatmul.msk.bf16.gmra.mxu1 %vm1567_vm15, %v1868_v36 }
 0x492   : > { %v1808_v7 = vpop.f32.mrf.mxu3 }
 0x494   : > { %v1852_v37 = vpop.f32.mrf.mxu0 }
 0x499   : > { %v1769_v10 = vpop.f32.mrf.mxu2 }
 0x49a   : > { %v1906_v39 = vpack.c.bf16 %v1769_v10, %v1769_v10  ;;  %v1810_v42 = vpop.f32.mrf.mxu3 }
 0x49b   : > { %v1908_v1 = vpack.c.bf16 %v1810_v42, %v1808_v7 }
 0x49c   : > { %v1854_v44 = vpop.f32.mrf.mxu0  ;;  %2665 = vmatmul.msk.bf16.gmra.mxu3 %vm1398_vm13, %v1906_v39 }
 0x49d   : > { %v1967_v16 = vpack.c.bf16 %v1854_v44, %v1852_v37  ;;  %2662 = vmatmul.msk.bf16.vlgmr.msrb.gmra.mxu2 %vm1398_vm13, %v1908_v1 }
 0x49f   : > { %2667 = vmatmul.msk.bf16.vlgmr.msra.gmra.mxu0 %vm1398_vm13, %v1967_v16 }
 0x4a0   : > { %v1896_v6 = vpop.f32.mrf.mxu1 }
 0x4a1   : > { %v1771_v35 = vpop.f32.mrf.mxu2 }
 0x4a7   : > { %v1813_v45 = vpop.f32.mrf.mxu3 }
 0x4a8   : > { %v1898_v43 = vpop.f32.mrf.mxu1  ;;  %v1909_v47 = vpack.c.bf16 %v1813_v45, %v1813_v45 }
 0x4a9   : > { %v2001_v48 = vpack.c.bf16 %v1898_v43, %v1896_v6  ;;  %v2751_v6 = vld [vmem:[%s3500_s17 + $0x8] sm:$0xff] }
 0x4aa   : > { %2159 = vmatpush.bf16.msra.mxu2 %v2751_v6 }
 0x4ab   : > { %2670 = vmatmul.msk.bf16.vlgmr.msra.gmra.mxu1 %vm1398_vm13, %v2001_v48  ;;  %v2750_v48 = vld [vmem:[%s3500_s17] sm:$0xff] }
 0x4ad   : > { %2663 = vmatmul.msk.bf16.gmra.mxu2 %vm1398_vm13, %v1909_v47 }
 0x4ae   : > { %2160 = vmatpush.bf16.msra.mxu2 %v2750_v48  ;;  %v2755_v48 = vld [vmem:[%s3502_s19 + $0x18] sm:$0xff] }
 0x4af   : > { %v1815_v53 = vpop.f32.mrf.mxu3 }
 0x4f3   : > { %v1857_v50 = vpop.f32.mrf.mxu0 }
 0x4f4   : > { %v1968_v54 = vpack.c.bf16 %v1857_v50, %v1857_v50 }
 0x4f6   : > { %2668 = vmatmul.msk.bf16.gmra.mxu0 %vm1398_vm13, %v1968_v54 }
 0x4fb   : > { %v1859_v55 = vpop.f32.mrf.mxu0 }
 0x4ff   : > { %v1958_v40 = vpop.f32.mrf.mxu3 }
 0x507   : > { %v1960_v59 = vpop.f32.mrf.mxu3 }
 0x50b   : > { %v1901_v51 = vpop.f32.mrf.mxu1 }
 0x50c   : > { %v2002_v41 = vpack.c.bf16 %v1901_v51, %v1901_v51 }
 0x50e   : > { %2671 = vmatmul.msk.bf16.gmra.mxu1 %vm1398_vm13, %v2002_v41 }
 0x513   : > { %v1903_v58 = vpop.f32.mrf.mxu1 }
 0x51c   : > { %v1989_v0 = vpop.f32.mrf.mxu0 }
 0x51f   : > { %v1963_v60 = vpop.f32.mrf.mxu3 }
 0x520   : > { %v1931_v46 = vpop.f32.mrf.mxu2 }
 0x521   : > { %v1959_v49 = vadd.f32 %v1958_v40, %v1931_v46 }
 0x523   : > { %v1998_v62 = vadd.f32 %v1989_v0, %v1959_v49 }
 0x524   : > { %v1991_v14 = vpop.f32.mrf.mxu0 }
 0x527   : > { %v1965_v2 = vpop.f32.mrf.mxu3 }
 0x528   : > { %v1933_v4 = vpop.f32.mrf.mxu2  ;;  %v2023_v5 = vpop.f32.mrf.mxu1 }
 0x529   : > { %v2032_v8 = vadd.f32 %v2023_v5, %v1998_v62  ;;  %v1961_v11 = vadd.f32 %v1960_v59, %v1933_v4  ;;  %v2787_v62 = vld [vmem:[%s3498_s15] ss:$0 sm:$0xff] }
 0x52b   : > { %v2035_v12 = vadd.f32 %v2032_v8, %v3022_v18  ;;  %v1999_v56 = vadd.f32 %v1991_v14, %v1961_v11 }
 0x52d   : > { %v3379_v13 = vadd.f32 %v2786_v3, %v2035_v12 }
 0x52f   : > { %v2047_v61 = vsel %vm708_vm0, %v3379_v13, 0.0 }
 0x530   : > { %v2025_v63 = vpop.f32.mrf.mxu1  ;;  %2048 = vadd.xlane.f32.xlu0 %v2047_v61  ;;  %v1936_v19 = vpop.f32.mrf.mxu2 }
 0x531   : > { %v2033_v20 = vadd.f32 %v2025_v63, %v1999_v56  ;;  %v1964_v9 = vadd.f32 %v1963_v60, %v1936_v19 }
 0x533   : > { %v2036_v17 = vadd.f32 %v2033_v20, %v3026_v23 }
 0x535   : > { %v3384_v21 = vadd.f32 %v2786_v3, %v2036_v17 }
 0x537   : > { %v2050_v52 = vsel %vm708_vm0, %v3384_v21, 0.0 }
 0x538   : > { %2051 = vadd.xlane.f32.xlu1 %v2050_v52  ;;  %v1938_v18 = vpop.f32.mrf.mxu2 }
 0x573   : > { %v1994_v24 = vpop.f32.mrf.mxu0 }
 0x574   : > { %v2000_v25 = vadd.f32 %v1994_v24, %v1964_v9 }
 0x57b   : > { %v1996_v15 = vpop.f32.mrf.mxu0 }
 0x58b   : > { %v2028_v26 = vpop.f32.mrf.mxu1 }
 0x58c   : > { %v2034_v57 = vadd.f32 %v2028_v26, %v2000_v25 }
 0x58e   : > { %v2037_v22 = vadd.f32 %v2034_v57, %v3030_v28 }
 0x590   : > { %v3389_v27 = vadd.f32 %v2786_v3, %v2037_v22  ;;  %v2788_v3 = vld [vmem:[%s3499_s16] ss:$0 sm:$0xff] }
 0x592   : > { %v2053_v29 = vsel %vm784_vm1, %v3389_v27, 0.0 }
 0x593   : > { %v2030_v23 = vpop.f32.mrf.mxu1  ;;  %2054 = vadd.xlane.f32.xlu2 %v2053_v29 }
 0x5a3   : > { %v2049_v30 = vpop.xlane.xlu0 %2048 }
 0x5a4   : > { %v2056_v31 = vmul.f32 %v2049_v30, %v3034_v38 }
 0x5a6   : > { %v2059_v32 = vsub.f32 %v3379_v13, %v2056_v31 }
 0x5a8   : > { %v2062_v33 = vmul.f32 %v2059_v32, %v2059_v32 }
 0x5aa   : > { %v2065_v34 = vsel %vm708_vm0, %v2062_v33, 0.0  ;;  %v2759_v33 = vld [vmem:[%s3502_s19 + $0x38] sm:$0xff] }
 0x5ab   : > { %2066 = vadd.xlane.f32.xlu0 %v2065_v34  ;;  %v2052_v36 = vpop.xlane.xlu1 %2051  ;;  %2361 = vmatpush.bf16.msra.mxu3 %v2759_v33 }
 0x5ac   : > { %v2057_v7 = vmul.f32 %v2052_v36, %v3034_v38 }
 0x5ae   : > { %v2060_v28 = vsub.f32 %v3384_v21, %v2057_v7 }
 0x5b0   : > { %v2063_v37 = vmul.f32 %v2060_v28, %v2060_v28 }
 0x5b2   : > { %v2068_v10 = vsel %vm708_vm0, %v2063_v37, 0.0 }
 0x5b3   : > { %2069 = vadd.xlane.f32.xlu1 %v2068_v10 }
 0x606   : > { %v2055_v39 = vpop.xlane.xlu2 %2054 }
 0x607   : > { %v2058_v42 = vmul.f32 %v2055_v39, %v3034_v38 }
 0x609   : > { %v2061_v1 = vsub.f32 %v3389_v27, %v2058_v42  ;;  %v2757_v42 = vld [vmem:[%s3502_s19 + $0x28] sm:$0xff] }
 0x60b   : > { %v2064_v44 = vmul.f32 %v2061_v1, %v2061_v1 }
 0x60d   : > { %v2071_v16 = vsel %vm784_vm1, %v2064_v44, 0.0 }
 0x60e   : > { %2072 = vadd.xlane.f32.xlu2 %v2071_v16  ;;  %v2756_v16 = vld [vmem:[%s3502_s19 + $0x20] sm:$0xff] }
 0x61e   : > { %v2067_v35 = vpop.xlane.xlu0 %2066 }
 0x61f   : > { %v2074_v45 = vmul.f32 %v2067_v35, %v3034_v38 }
 0x621   : > { %v2077_v43 = vadd.f32 1e-05, %v2074_v45 }
 0x623   : > { %2847 = vrsqrt.f32 %v2077_v43  ;;  %vm2086_vm5 = vweird.f32 %v2077_v43 }
 0x626   : > { %v2070_v47 = vpop.xlane.xlu1 %2069 }
 0x627   : > { %v2075_v53 = vmul.f32 %v2070_v47, %v3034_v38 }
 0x629   : > { %v2848_v50 = vpop.eup %2847  ;;  %v2078_v54 = vadd.f32 1e-05, %v2075_v53 }
 0x62a   : > { %v2081_v55 = vmul.f32 %v2848_v50, %v2077_v43  ;;  %vm2087_vm4 = vweird.f32 %v2848_v50 }
 0x62b   : > { %2849 = vrsqrt.f32 %v2078_v54  ;;  %vm2088_vm6 = vmor %vm2086_vm5, %vm2087_vm4  ;;  %vm2096_vm8 = vweird.f32 %v2078_v54 }
 0x62c   : > { %v2082_v51 = vmul.f32 %v2848_v50, %v2081_v55  ;;  %v2754_v55 = vld [vmem:[%s3502_s19 + $0x10] sm:$0xff] }
 0x62e   : > { %v2083_v41 = vmul.f32 0.5, %v2082_v51 }
 0x630   : > { %v2084_v40 = vsub.f32 1.5, %v2083_v41 }
 0x631   : > { %v2850_v58 = vpop.eup %2849 }
 0x632   : > { %v2085_v59 = vmul.f32 %v2848_v50, %v2084_v40  ;;  %v2091_v60 = vmul.f32 %v2850_v58, %v2078_v54  ;;  %vm2097_vm7 = vweird.f32 %v2850_v58 }
 0x633   : > { %vm2098_vm9 = vmor %vm2096_vm8, %vm2097_vm7 }
 0x634   : > { %v2092_v46 = vmul.f32 %v2850_v58, %v2091_v60  ;;  %v2089_v49 = vsel %vm2088_vm6, %v2848_v50, %v2085_v59 }
 0x635   : > { %v2110_v4 = vmul.f32 %v2089_v49, %v2059_v32  ;;  %v2753_v49 = vld [vmem:[%s3502_s19 + $0x8] sm:$0xff] }
 0x636   : > { %v2093_v0 = vmul.f32 0.5, %v2092_v46 }
 0x637   : > { %v2116_v11 = vmul.f32 %v2787_v62, %v2110_v4 }
 0x638   : > { %v2094_v2 = vsub.f32 1.5, %v2093_v0 }
 0x639   : > { %v2122_v56 = vadd.f32 %v2788_v3, %v2116_v11  ;;  %v2752_v11 = vld [vmem:[%s3502_s19] sm:$0xff] }
 0x63a   : > { %v2095_v5 = vmul.f32 %v2850_v58, %v2094_v2 }
 0x63c   : > { %v2099_v8 = vsel %vm2098_vm9, %v2850_v58, %v2095_v5 }
 0x63d   : > { %v2111_v12 = vmul.f32 %v2099_v8, %v2060_v28  ;;  %v2758_v28 = vld [vmem:[%s3502_s19 + $0x30] sm:$0xff] }
 0x63e   : > { %2362 = vmatpush.bf16.msra.mxu3 %v2758_v28 }
 0x63f   : > { %v2117_v14 = vmul.f32 %v2787_v62, %v2111_v12 }
 0x641   : > { %v2123_v61 = vadd.f32 %v2788_v3, %v2117_v14 }
 0x642   : > { %2363 = vmatpush.bf16.msra.mxu3 %v2757_v42 }
 0x643   : > { %v2125_v63 = vpack.c.bf16 %v2123_v61, %v2122_v56 }
 0x645   : > { %2680 = vmatmul.msk.bf16.vlgmr.msra.gmra.mxu2 %vm708_vm0, %v2125_v63 }
 0x646   : > { %2364 = vmatpush.bf16.msra.mxu3 %v2756_v16 }
 0x64a   : > { %2365 = vmatpush.bf16.msra.mxu3 %v2755_v48 }
 0x64e   : > { %2366 = vmatpush.bf16.msra.mxu3 %v2754_v55 }
 0x652   : > { %2367 = vmatpush.bf16.msra.mxu3 %v2753_v49 }
 0x656   : > { %2368 = vmatpush.bf16.msra.mxu3 %v2752_v11 }
 0x681   : > { %v2073_v19 = vpop.xlane.xlu2 %2072 }
 0x682   : > { %v2076_v20 = vmul.f32 %v2073_v19, %v3034_v38  ;;  %v3422_v38 = vld [vmem:[%s3501_s18] ss:$0 sm:$0xff] }
 0x684   : > { %v2079_v9 = vadd.f32 1e-05, %v2076_v20 }
 0x686   : > { %2851 = vrsqrt.f32 %v2079_v9  ;;  %vm2106_vm11 = vweird.f32 %v2079_v9 }
 0x68c   : > { %v2852_v17 = vpop.eup %2851 }
 0x68d   : > { %v2101_v52 = vmul.f32 %v2852_v17, %v2079_v9  ;;  %vm2107_vm10 = vweird.f32 %v2852_v17 }
 0x68e   : > { %vm2108_vm12 = vmor %vm2106_vm11, %vm2107_vm10 }
 0x68f   : > { %v2102_v18 = vmul.f32 %v2852_v17, %v2101_v52 }
 0x691   : > { %v2103_v24 = vmul.f32 0.5, %v2102_v18 }
 0x693   : > { %v2104_v15 = vsub.f32 1.5, %v2103_v24 }
 0x695   : > { %v2105_v25 = vmul.f32 %v2852_v17, %v2104_v15 }
 0x697   : > { %v2109_v26 = vsel %vm2108_vm12, %v2852_v17, %v2105_v25 }
 0x698   : > { %v2112_v57 = vmul.f32 %v2109_v26, %v2061_v1 }
 0x69a   : > { %v2118_v22 = vmul.f32 %v2787_v62, %v2112_v57 }
 0x69c   : > { %v2124_v29 = vadd.f32 %v2788_v3, %v2118_v22 }
 0x69e   : > { %v2126_v23 = vpack.c.bf16 %v2124_v29, %v2124_v29 }
 0x6a0   : > { %2681 = vmatmul.msk.bf16.gmra.mxu2 %vm708_vm0, %v2126_v23 }
 0x6c8   : > { %v2162_v30 = vpop.f32.mrf.mxu2 }
 0x6c9   : > { %v3425_v31 = vadd.f32 %v3422_v38, %v2162_v30 }
 0x6cb   : > { %v3428_v32 = vmul.f32 0.70710677, %v3425_v31  ;;  %v2171_v48 = vmul.f32 0.5, %v3425_v31 }
 0x6cd   : > { %v2177_v34 = vand.u32 2147483647, %v3428_v32  ;;  %vm2276_vm7 = vcmp.lt.f32.partialorder %v3428_v32, 0.0 }
 0x6cf   : > { %v2180_v36 = vmul.f32 0.3275911, %v2177_v34  ;;  %v2258_v59 = vsub.f32 0.0, %v2177_v34 }
 0x6d0   : > { %v2164_v7 = vpop.f32.mrf.mxu2 }
 0x6d1   : > { %v2183_v37 = vadd.f32 1.0, %v2180_v36  ;;  %v3438_v10 = vadd.f32 %v3422_v38, %v2164_v7  ;;  %v2261_v4 = vmul.f32 %v2258_v59, %v2177_v34 }
 0x6d3   : > { %2853 = vrcp.f32 %v2183_v37  ;;  %v3441_v39 = vmul.f32 0.70710677, %v3438_v10  ;;  %v2197_v47 = vand.u32 2147483648, %v2183_v37  ;;  %v2195_v50 = vand.u32 2147483647, %v2183_v37 }
 0x6d4   : > { %vm2191_vm14 = vweird.f32 %v2183_v37  ;;  %v2264_v61 = vmul.f32 1.442695, %v2261_v4 }
 0x6d5   : > { %v2178_v1 = vand.u32 2147483647, %v3441_v39  ;;  %v2198_v51 = vor.u32 1.1754944e-38, %v2197_v47  ;;  %vm2196_vm2 = vcmp.eq.f32.partialorder %v2195_v50, 8.507059e+37  ;;  %vm2277_vm8 = vcmp.lt.f32.partialorder %v3441_v39, 0.0 }
 0x6d6   : > { %v2172_v47 = vmul.f32 0.5, %v3438_v10 }
 0x6d7   : > { %v2181_v44 = vmul.f32 0.3275911, %v2178_v1  ;;  %v2259_v9 = vsub.f32 0.0, %v2178_v1 }
 0x6d9   : > { %v2854_v6 = vpop.eup %2853  ;;  %v2184_v45 = vadd.f32 1.0, %v2181_v44  ;;  %v2262_v15 = vmul.f32 %v2259_v9, %v2178_v1 }
 0x6da   : > { %v2187_v35 = vmul.f32 %v2854_v6, %v2183_v37  ;;  %vm2192_vm13 = vweird.f32 %v2854_v6 }
 0x6db   : > { %2855 = vrcp.f32 %v2184_v45  ;;  %vm2193_vm15 = vmor %vm2191_vm14, %vm2192_vm13  ;;  %v2212_v62 = vand.u32 2147483648, %v2184_v45  ;;  %v2210_v8 = vand.u32 2147483647, %v2184_v45  ;;  %vm2206_vm4 = vweird.f32 %v2184_v45 }
 0x6dc   : > { %v2188_v43 = vsub.f32 1.0, %v2187_v35  ;;  %2857 = vpow2.f32 %v2264_v61  ;;  %v2266_v29 = vmul.f32 1.442695, %v2262_v15 }
 0x6dd   : > { %v2213_v56 = vor.u32 1.1754944e-38, %v2212_v62  ;;  %vm2211_vm6 = vcmp.eq.f32.partialorder %v2210_v8, 8.507059e+37 }
 0x6de   : > { %v2189_v53 = vmul.f32 %v2854_v6, %v2188_v43  ;;  %2859 = vpow2.f32 %v2266_v29  ;;  %v2790_v29 = vld [vmem:[%s3503_s20] ss:$0 sm:$0xff] }
 0x6e0   : > { %v2190_v54 = vadd.f32 %v2854_v6, %v2189_v53 }
 0x6e1   : > { %v2856_v41 = vpop.eup %2855 }
 0x6e2   : > { %v2194_v40 = vsel %vm2193_vm15, %v2854_v6, %v2190_v54  ;;  %v2202_v60 = vmul.f32 %v2856_v41, %v2184_v45  ;;  %vm2207_vm3 = vweird.f32 %v2856_v41  ;;  %v2858_v23 = vpop.eup %2857 }
 0x6e3   : > { %v2199_v58 = vsel %vm2196_vm2, %v2198_v51, %v2194_v40  ;;  %vm2208_vm5 = vmor %vm2206_vm4, %vm2207_vm3 }
 0x6e4   : > { %v2231_v46 = vmul.f32 1.0614054, %v2199_v58  ;;  %v2203_v0 = vsub.f32 1.0, %v2202_v60  ;;  %v2860_v44 = vpop.eup %2859 }
 0x6e6   : > { %v2682_v2 = vadd.f32 -1.4531521, %v2231_v46  ;;  %v2204_v5 = vmul.f32 %v2856_v41, %v2203_v0 }
 0x6e8   : > { %v2237_v3 = vmul.f32 %v2682_v2, %v2199_v58  ;;  %v2205_v12 = vadd.f32 %v2856_v41, %v2204_v5 }
 0x6ea   : > { %v2240_v14 = vadd.f32 1.4214138, %v2237_v3  ;;  %v2209_v63 = vsel %vm2208_vm5, %v2856_v41, %v2205_v12 }
 0x6eb   : > { %v2214_v20 = vsel %vm2211_vm6, %v2213_v56, %v2209_v63 }
 0x6ec   : > { %v2243_v19 = vmul.f32 %v2240_v14, %v2199_v58  ;;  %v2232_v17 = vmul.f32 1.0614054, %v2214_v20 }
 0x6ee   : > { %v2685_v52 = vadd.f32 -0.28449672, %v2243_v19  ;;  %v2683_v18 = vadd.f32 -1.4531521, %v2232_v17 }
 0x6f0   : > { %v2249_v24 = vmul.f32 %v2685_v52, %v2199_v58  ;;  %v2238_v25 = vmul.f32 %v2683_v18, %v2214_v20 }
 0x6f2   : > { %v2252_v26 = vadd.f32 0.2548296, %v2249_v24  ;;  %v2241_v57 = vadd.f32 1.4214138, %v2238_v25 }
 0x6f4   : > { %v2255_v22 = vmul.f32 %v2252_v26, %v2199_v58  ;;  %v2244_v30 = vmul.f32 %v2241_v57, %v2214_v20 }
 0x6f6   : > { %v2270_v33 = vmul.f32 %v2858_v23, %v2255_v22  ;;  %v2686_v34 = vadd.f32 -0.28449672, %v2244_v30 }
 0x6f8   : > { %v2273_v36 = vsub.f32 1.0, %v2270_v33  ;;  %v2250_v7 = vmul.f32 %v2686_v34, %v2214_v20 }
 0x6fa   : > { %v2253_v28 = vadd.f32 0.2548296, %v2250_v7  ;;  %v2279_v37 = vsub.f32 0.0, %v2273_v36 }
 0x6fc   : > { %v2256_v42 = vmul.f32 %v2253_v28, %v2214_v20  ;;  %v2282_v1 = vsel %vm2276_vm7, %v2279_v37, %v2273_v36 }
 0x6fd   : > { %v2285_v45 = vadd.f32 1.0, %v2282_v1 }
 0x6fe   : > { %v2271_v16 = vmul.f32 %v2860_v44, %v2256_v42 }
 0x6ff   : > { %v2288_v50 = vmul.f32 %v2285_v45, %v2171_v48 }
 0x700   : > { %v2274_v6 = vsub.f32 1.0, %v2271_v16 }
 0x702   : > { %v2280_v35 = vsub.f32 0.0, %v2274_v6 }
 0x704   : > { %v2283_v43 = vsel %vm2277_vm8, %v2280_v35, %v2274_v6 }
 0x705   : > { %v2286_v53 = vadd.f32 1.0, %v2283_v43 }
 0x707   : > { %v2289_v54 = vmul.f32 %v2286_v53, %v2172_v47 }
 0x709   : > { %v2291_v55 = vpack.c.bf16 %v2289_v54, %v2288_v50 }
 0x70b   : > { %2369 = vmatmul.bf16.vlgmr.msra.gmra.mxu3 %v2291_v55 }
 0x723   : > { %v2167_v51 = vpop.f32.mrf.mxu2 }
 0x724   : > { %v2168_v41 = vadd.f32 %v3422_v38, %v2167_v51 }
 0x726   : > { %v2176_v32 = vmul.f32 0.70710677, %v2168_v41  ;;  %v2173_v25 = vmul.f32 0.5, %v2168_v41 }
 0x728   : > { %v2179_v40 = vand.u32 2147483647, %v2176_v32  ;;  %vm2278_vm13 = vcmp.lt.f32.partialorder %v2176_v32, 0.0 }
 0x72a   : > { %v2182_v58 = vmul.f32 0.3275911, %v2179_v40  ;;  %v2260_v38 = vsub.f32 0.0, %v2179_v40 }
 0x72b   : > { %v2169_v59 = vpop.f32.mrf.mxu2 }
 0x72c   : > { %v2185_v60 = vadd.f32 1.0, %v2182_v58  ;;  %v2263_v11 = vmul.f32 %v2260_v38, %v2179_v40 }
 0x72e   : > { %2861 = vrcp.f32 %v2185_v60  ;;  %v2227_v31 = vand.u32 2147483648, %v2185_v60  ;;  %v2225_v10 = vand.u32 2147483647, %v2185_v60  ;;  %vm2221_vm10 = vweird.f32 %v2185_v60 }
 0x72f   : > { %v2268_v56 = vmul.f32 1.442695, %v2263_v11 }
 0x730   : > { %v2228_v62 = vor.u32 1.1754944e-38, %v2227_v31  ;;  %vm2226_vm12 = vcmp.eq.f32.partialorder %v2225_v10, 8.507059e+37 }
 0x731   : > { %2863 = vpow2.f32 %v2268_v56 }
 0x734   : > { %v2862_v39 = vpop.eup %2861 }
 0x735   : > { %v2217_v46 = vmul.f32 %v2862_v39, %v2185_v60  ;;  %vm2222_vm9 = vweird.f32 %v2862_v39 }
 0x736   : > { %vm2223_vm11 = vmor %vm2221_vm10, %vm2222_vm9 }
 0x737   : > { %v2218_v49 = vsub.f32 1.0, %v2217_v46  ;;  %v2864_v17 = vpop.eup %2863 }
 0x739   : > { %v2219_v0 = vmul.f32 %v2862_v39, %v2218_v49 }
 0x73b   : > { %v2220_v2 = vadd.f32 %v2862_v39, %v2219_v0 }
 0x73d   : > { %v2224_v4 = vsel %vm2223_vm11, %v2862_v39, %v2220_v2 }
 0x73e   : > { %v2229_v5 = vsel %vm2226_vm12, %v2228_v62, %v2224_v4 }
 0x73f   : > { %v2233_v8 = vmul.f32 1.0614054, %v2229_v5 }
 0x741   : > { %v2684_v3 = vadd.f32 -1.4531521, %v2233_v8 }
 0x743   : > { %v2239_v12 = vmul.f32 %v2684_v3, %v2229_v5 }
 0x745   : > { %v2242_v14 = vadd.f32 1.4214138, %v2239_v12 }
 0x747   : > { %v2245_v61 = vmul.f32 %v2242_v14, %v2229_v5 }
 0x749   : > { %v2687_v63 = vadd.f32 -0.28449672, %v2245_v61 }
 0x74b   : > { %v2251_v19 = vmul.f32 %v2687_v63, %v2229_v5 }
 0x74d   : > { %v2254_v20 = vadd.f32 0.2548296, %v2251_v19 }
 0x74f   : > { %v2257_v9 = vmul.f32 %v2254_v20, %v2229_v5 }
 0x751   : > { %v2272_v52 = vmul.f32 %v2864_v17, %v2257_v9 }
 0x753   : > { %v2275_v18 = vsub.f32 1.0, %v2272_v52 }
 0x755   : > { %v2281_v24 = vsub.f32 0.0, %v2275_v18 }
 0x757   : > { %v2284_v15 = vsel %vm2278_vm13, %v2281_v24, %v2275_v18 }
 0x758   : > { %v2287_v26 = vadd.f32 1.0, %v2284_v15 }
 0x75a   : > { %v2290_v57 = vmul.f32 %v2287_v26, %v2173_v25 }
 0x75c   : > { %v2292_v22 = vpack.c.bf16 %v2290_v57, %v2290_v57 }
 0x75e   : > { %2374 = vmatmul.bf16.gmra.mxu3 %v2292_v22 }
 0x78e   : > { %v2370_v23 = vpop.f32.mrf.mxu3 }
 0x78f   : > { %v2371_v30 = vadd.f32 %v2790_v29, %v2370_v23 }
 0x791   : > { %v2379_v33 = vadd.f32 %v2371_v30, %v3379_v13 }
 0x793   : > { %2382 = vst.msk [vmem:[%s676_s30] sm:$0xff] %vm708_vm0, %v2379_v33 }
 0x796   : > { %v2372_v34 = vpop.f32.mrf.mxu3 }
 0x797   : > { %v2373_v36 = vadd.f32 %v2790_v29, %v2372_v34 }
 0x799   : > { %v2380_v7 = vadd.f32 %v2373_v36, %v3384_v21 }
 0x79b   : > { %2383 = vst.msk [vmem:[%s676_s30 + $0x8] sm:$0xff] %vm708_vm0, %v2380_v7 }
 0x7e1   : > { %v2375_v28 = vpop.f32.mrf.mxu3 }
 0x7e2   : > { %v2376_v37 = vadd.f32 %v2790_v29, %v2375_v28 }
 0x7e4   : > { %v2381_v42 = vadd.f32 %v2376_v37, %v3389_v27 }
 0x7e6   : > { %2384 = vst.msk [vmem:[%s676_s30 + $0x10] sm:$0x1f] %vm784_vm1, %v2381_v42 }
 0x7e9   : > { %v2377_v44 = vpop.f32.mrf.mxu3 }
 0x7ea PF: > { %s31_s2 = sadd.s32 1, %s2871_s2  }
 0x7eb   : > { %p28_p4 = scmp.ge.s32.totalorder %s31_s2, 4  }
 0x7ed   :  { %30 = sbr.rel (!%p28_p4) target bundleno = 7 (0x7), region = 158 }

// kernel: model_forward.17
= control target key start
LH: loop header
LB: loop body
LE: loop exit
PB: predicated region body
PF: predicated region fallthrough
CT: control target
= control target key end

     0   :  { %s857_s12 = smov 0   ;;  %s859_s13 = smov 0   ;;  %s992_s0 = inlined_call_operand.vmem [shape: bf16[16,128], index: 0, kind: input, shape index: {}]   ;;  %s993_s1 = inlined_call_operand.vmem [shape: bf16[128,512], index: 1, kind: input, shape index: {}]   ;;  %s994_s2 = inlined_call_operand.vmem [shape: f32[1,512], index: 2, kind: input, shape index: {}]   ;;  %s995_s3 = inlined_call_operand.vmem [shape: f32[16,512], index: 3, kind: output, shape index: {}]  }
   0x1   :  { %s861_s14 = smov 0   ;;  %s863_s15 = smov 0  }
   0x2   :  { %s865_s16 = smov 0  }
   0x3 LB: > { %s28_s17 = sadd.s32 1, %s831_s15  ;;  %s653_s18 = sadd.s32 4294967295, %s835_s16   ;;  %s835_s16 = sphi %s865_s16, %s13_s16   ;;  %s831_s15 = sphi %s863_s15, %s1000_s15   ;;  %s827_s14 = sphi %s861_s14, %s999_s14   ;;  %s823_s13 = sphi %s859_s13, %s998_s13   ;;  %s819_s12 = sphi %s857_s12, %s997_s12  }
   0x4   : > { %p30_p0 = scmp.ge.s32.totalorder %s28_s17, 2  ;;  %p76_p1 = scmp.ne.s32.totalorder %s823_s13, %s819_s12 }
   0x5   : > { %p77_p2 = scmp.eq.s32.totalorder %s835_s16, 0  ;;  %p134_p4 = scmp.eq.s32.totalorder %s653_s18, 1 }
   0x6   : > { %s1002_s17 = smov (%p30_p0, %s28_s17), 0  ;;  %s69_s20 = sadd.s32 1, %s823_s13 }
   0x7   : > { %p78_p3 = por %p77_p2, %p76_p1  ;;  %s65_s19 = ssub.s32 %s831_s15, %s1002_s17 }
   0x8   : > { %p67_p5 = scmp.eq.s32.totalorder %s65_s19, 0  ;;  %p892_p6 = por %p134_p4, %p76_p1 }
   0x9   : > { %p657_p7 = scmp.ge.s32.totalorder %s835_s16, 2 }
   0xa   : > { %s897_s22 = scalar_select %p67_p5, %s823_s13, %s69_s20  }
   0xb   : > { %168 = sbr.rel (%p657_p7) target bundleno = 36 (0x24), region = 20 }
  0x10   : > { %171 = sbr.rel (!%p78_p3) target bundleno = 36 (0x24), region = 24  ;;  %s173_s23 = sand.u32 (%p78_p3), 1, %s823_s13  }
  0x11   : > { %s738_s24 = sshll.u32 (%p78_p3), %s831_s15, 3  ;;  %s658_s25 = sshll.u32 (%p78_p3), %s173_s23, 7 }
  0x12   : > { %s905_s28 = scalar_lea.vmem (%p78_p3), %s993_s1, %s738_s24  ;;  %s175_s29 = scalar_lea.vmem (%p78_p3), [#allocation3], %s658_s25 }
  0x13   : > { %v240_v0 = vld [vmem:[%s905_s28] sm:$0xff] (%p78_p3)  ;;  %v242_v1 = vld [vmem:[%s905_s28 + $0x10] sm:$0xff] (%p78_p3) }
  0x14   : > { %v244_v2 = vld [vmem:[%s905_s28 + $0x20] sm:$0xff] (%p78_p3)  ;;  %241 = vst [vmem:[%s175_s29] sm:$0xff] (%p78_p3), %v240_v0  ;;  %v246_v3 = vld [vmem:[%s905_s28 + $0x30] sm:$0xff] (%p78_p3) }
  0x15   : > { %243 = vst [vmem:[%s175_s29 + $0x8] sm:$0xff] %v242_v1  ;;  %v248_v4 = vld [vmem:[%s905_s28 + $0x40] sm:$0xff]  ;;  %v250_v5 = vld [vmem:[%s905_s28 + $0x50] sm:$0xff] }
  0x16   : > { %245 = vst [vmem:[%s175_s29 + $0x10] sm:$0xff] %v244_v2  ;;  %v252_v6 = vld [vmem:[%s905_s28 + $0x60] sm:$0xff]  ;;  %v254_v7 = vld [vmem:[%s905_s28 + $0x70] sm:$0xff] }
  0x17   : > { %247 = vst [vmem:[%s175_s29 + $0x18] sm:$0xff] %v246_v3  ;;  %v256_v8 = vld [vmem:[%s905_s28 + $0x80] sm:$0xff]  ;;  %v258_v9 = vld [vmem:[%s905_s28 + $0x90] sm:$0xff] }
  0x18   : > { %249 = vst [vmem:[%s175_s29 + $0x20] sm:$0xff] %v248_v4  ;;  %v260_v10 = vld [vmem:[%s905_s28 + $0xa0] sm:$0xff]  ;;  %v262_v11 = vld [vmem:[%s905_s28 + $0xb0] sm:$0xff] }
  0x19   : > { %251 = vst [vmem:[%s175_s29 + $0x28] sm:$0xff] %v250_v5  ;;  %v264_v12 = vld [vmem:[%s905_s28 + $0xc0] sm:$0xff]  ;;  %v266_v13 = vld [vmem:[%s905_s28 + $0xd0] sm:$0xff] }
  0x1a   : > { %253 = vst [vmem:[%s175_s29 + $0x30] sm:$0xff] %v252_v6  ;;  %v268_v14 = vld [vmem:[%s905_s28 + $0xe0] sm:$0xff]  ;;  %v270_v15 = vld [vmem:[%s905_s28 + $0xf0] sm:$0xff] }
  0x1b   : > { %255 = vst [vmem:[%s175_s29 + $0x38] sm:$0xff] %v254_v7 }
  0x1c   : > { %257 = vst [vmem:[%s175_s29 + $0x40] sm:$0xff] %v256_v8 }
  0x1d   : > { %259 = vst [vmem:[%s175_s29 + $0x48] sm:$0xff] %v258_v9 }
  0x1e   : > { %261 = vst [vmem:[%s175_s29 + $0x50] sm:$0xff] %v260_v10 }
  0x1f   : > { %263 = vst [vmem:[%s175_s29 + $0x58] sm:$0xff] %v262_v11 }
  0x20   : > { %265 = vst [vmem:[%s175_s29 + $0x60] sm:$0xff] %v264_v12 }
  0x21   : > { %267 = vst [vmem:[%s175_s29 + $0x68] sm:$0xff] %v266_v13 }
  0x22   : > { %269 = vst [vmem:[%s175_s29 + $0x70] sm:$0xff] %v268_v14 }
  0x23   : > { %271 = vst [vmem:[%s175_s29 + $0x78] sm:$0xff] %v270_v15 }
  0x24 PF: > { %p661_p8 = scmp.ge.s32.totalorder %s835_s16, 1  ;;  %p284_p9 = scmp.lt.s32.totalorder %s835_s16, 3 }
  0x26   : > { %p285_p10 = pnand %p661_p8, %p284_p9 }
  0x27   : > { %s291_s30 = sand.u32 (!%p285_p10), 1, %s819_s12   ;;  %s664_s8 = sshll.u32 (!%p285_p10), %s827_s14, 1 }
  0x28   : > { %288 = sbr.rel (%p285_p10) target bundleno = 225 (0xe1), region = 66  ;;  %s662_s4 = sshll.u32 (!%p285_p10), %s291_s30, 7 }
  0x29   : > { %s928_s5 = scalar_lea.vmem (!%p285_p10), [#allocation3], %s662_s4  ;;  %p337_p11 = scmp.lt.s32.totalorder (!%p285_p10), %s664_s8, 3 }
  0x2a   : > { %s663_s18 = sshll.u32 (!%p285_p10), %s291_s30, 5 }
  0x2b   : > { %s324_s19 = scalar_lea.vmem (!%p285_p10), [#allocation4], %s663_s18 }
  0x2d   : > { %v727_v16 = vld [vmem:[%s928_s5 + $0x70] sm:$0xf]  ;;  %v755_v17 = vld [vmem:[%s928_s5 + $0x74] sm:$0xf0]  ;;  %v754_v18 = vld [vmem:[%s928_s5 + $0x74] sm:$0xf] }
  0x2e   : > { %v728_v19 = vor.u32 %v755_v17, %v727_v16  ;;  %v729_v20 = vld [vmem:[%s928_s5 + $0x78] sm:$0xf0]  ;;  %v719_v21 = vld [vmem:[%s928_s5 + $0x60] sm:$0xf]  ;;  %v753_v22 = vld [vmem:[%s928_s5 + $0x64] sm:$0xf0] }
  0x2f   : > { %v732_v23 = vor.u32 %v754_v18, %v729_v20  ;;  %v752_v24 = vld [vmem:[%s928_s5 + $0x64] sm:$0xf]  ;;  %v721_v25 = vld [vmem:[%s928_s5 + $0x68] sm:$0xf0]  ;;  %v720_v26 = vor.u32 %v753_v22, %v719_v21  ;;  %v711_v28 = vld [vmem:[%s928_s5 + $0x50] sm:$0xf] }
  0x30   : > { %459 = vmatpush.bf16.msra.mxu0 %v728_v19  ;;  %v724_v27 = vor.u32 %v752_v24, %v721_v25  ;;  %v751_v29 = vld [vmem:[%s928_s5 + $0x54] sm:$0xf0]  ;;  %v750_v30 = vld [vmem:[%s928_s5 + $0x54] sm:$0xf]  ;;  %v713_v31 = vld [vmem:[%s928_s5 + $0x58] sm:$0xf0] }
  0x31   : > { %473 = vmatpush.bf16.msra.mxu1 %v732_v23  ;;  %v712_v32 = vor.u32 %v751_v29, %v711_v28  ;;  %v716_v33 = vor.u32 %v750_v30, %v713_v31  ;;  %v703_v34 = vld [vmem:[%s928_s5 + $0x40] sm:$0xf]  ;;  %v749_v35 = vld [vmem:[%s928_s5 + $0x44] sm:$0xf0]  ;;  %v748_v36 = vld [vmem:[%s928_s5 + $0x44] sm:$0xf] }
  0x32   : > { %v705_v37 = vld [vmem:[%s928_s5 + $0x48] sm:$0xf0]  ;;  %v704_v38 = vor.u32 %v749_v35, %v703_v34  ;;  %v695_v40 = vld [vmem:[%s928_s5 + $0x30] sm:$0xf]  ;;  %v747_v41 = vld [vmem:[%s928_s5 + $0x34] sm:$0xf0] }
  0x33   : > { %v708_v39 = vor.u32 %v748_v36, %v705_v37  ;;  %v746_v42 = vld [vmem:[%s928_s5 + $0x34] sm:$0xf]  ;;  %v697_v43 = vld [vmem:[%s928_s5 + $0x38] sm:$0xf0]  ;;  %v696_v44 = vor.u32 %v747_v41, %v695_v40  ;;  %v687_v46 = vld [vmem:[%s928_s5 + $0x20] sm:$0xf] }
  0x34   : > { %460 = vmatpush.bf16.msra.mxu0 %v720_v26  ;;  %v700_v45 = vor.u32 %v746_v42, %v697_v43  ;;  %v745_v47 = vld [vmem:[%s928_s5 + $0x24] sm:$0xf0]  ;;  %v744_v48 = vld [vmem:[%s928_s5 + $0x24] sm:$0xf]  ;;  %v689_v49 = vld [vmem:[%s928_s5 + $0x28] sm:$0xf0] }
  0x35   : > { %474 = vmatpush.bf16.msra.mxu1 %v724_v27  ;;  %v688_v50 = vor.u32 %v745_v47, %v687_v46  ;;  %v692_v51 = vor.u32 %v744_v48, %v689_v49  ;;  %v679_v52 = vld [vmem:[%s928_s5 + $0x10] sm:$0xf]  ;;  %v743_v53 = vld [vmem:[%s928_s5 + $0x14] sm:$0xf0]  ;;  %v742_v54 = vld [vmem:[%s928_s5 + $0x14] sm:$0xf] }
  0x36   : > { %v681_v55 = vld [vmem:[%s928_s5 + $0x18] sm:$0xf0]  ;;  %v680_v56 = vor.u32 %v743_v53, %v679_v52  ;;  %v671_v58 = vld [vmem:[%s928_s5] sm:$0xf]  ;;  %v741_v59 = vld [vmem:[%s928_s5 + $0x4] sm:$0xf0] }
  0x37   : > { %v684_v57 = vor.u32 %v742_v54, %v681_v55  ;;  %v740_v60 = vld [vmem:[%s928_s5 + $0x4] sm:$0xf]  ;;  %v673_v61 = vld [vmem:[%s928_s5 + $0x8] sm:$0xf0]  ;;  %v672_v62 = vor.u32 %v741_v59, %v671_v58  ;;  %s1004_s8 = smov (!%p337_p11, %s664_s8), 3  ;;  %s756_s12 = sshll.u32 (%p892_p6), %s827_s14, 4 }
  0x38   : > { %461 = vmatpush.bf16.msra.mxu0 %v712_v32  ;;  %v676_v63 = vor.u32 %v740_v60, %v673_v61  ;;  %v739_v0 = vld [vmem:[%s992_s0] sm:$0xff]  ;;  %s339_s11 = scalar_lea.vmem %s994_s2, %s1004_s8  ;;  %s528_s24 = scalar_lea.vmem (%p892_p6), %s995_s3, %s756_s12 }
  0x39   : > { %475 = vmatpush.bf16.msra.mxu1 %v716_v33  ;;  %v502_v1 = vld [vmem:[%s339_s11] sm:$0x3] }
  0x3a   : > { %v504_v2 = vperm.slane %v502_v1, 0  ;;  %v505_v3 = vperm.slane %v502_v1, 1 }
  0x3c   : > { %462 = vmatpush.bf16.msra.mxu0 %v704_v38 }
  0x3d   : > { %476 = vmatpush.bf16.msra.mxu1 %v708_v39 }
  0x40   : > { %463 = vmatpush.bf16.msra.mxu0 %v696_v44 }
  0x41   : > { %477 = vmatpush.bf16.msra.mxu1 %v700_v45 }
  0x44   : > { %464 = vmatpush.bf16.msra.mxu0 %v688_v50 }
  0x45   : > { %478 = vmatpush.bf16.msra.mxu1 %v692_v51 }
  0x48   : > { %465 = vmatpush.bf16.msra.mxu0 %v680_v56 }
  0x49   : > { %479 = vmatpush.bf16.msra.mxu1 %v684_v57 }
  0x4c   : > { %466 = vmatpush.bf16.msra.mxu0 %v672_v62 }
  0x4d   : > { %480 = vmatpush.bf16.msra.mxu1 %v676_v63 }
  0x4f   : > { %467 = vmatmul.bf16.vlgmr.msra.gmra.mxu0 %v739_v0 }
  0x50   : > { %481 = vmatmul.bf16.vlgmr.msra.gmra.mxu1 %v739_v0 }
  0xcc   : > { %v468_v4 = vpop.f32.mrf.mxu0 }
  0xcd   : > { %v508_v5 = vadd.f32 %v504_v2, %v468_v4  ;;  %v482_v6 = vpop.f32.mrf.mxu1 }
  0xce   : > { %v509_v7 = vadd.f32 %v505_v3, %v482_v6 }
  0xcf   : > { %512 = vst [vmem:[%s324_s19] sm:$0xff] %v508_v5 }
  0xd0   : > { %513 = vst [vmem:[%s324_s19 + $0x8] sm:$0xff] %v509_v7 }
  0xd4   : > { %v470_v8 = vpop.f32.mrf.mxu0  ;;  %522 = sbr.rel (!%p892_p6) target bundleno = 225 (0xe1), region = 82 }
  0xd5   : > { %v510_v9 = vadd.f32 %v504_v2, %v470_v8  ;;  %v484_v10 = vpop.f32.mrf.mxu1 }
  0xd6   : > { %v511_v11 = vadd.f32 %v505_v3, %v484_v10  ;;  %v541_v12 = vld [vmem:[%s324_s19] sm:$0xff] (%p892_p6) }
  0xd7   : > { %514 = vst [vmem:[%s324_s19 + $0x10] sm:$0xff] %v510_v9  ;;  %v543_v13 = vld [vmem:[%s324_s19 + $0x8] sm:$0xff] (%p892_p6) }
  0xd8   : > { %515 = vst [vmem:[%s324_s19 + $0x18] sm:$0xff] %v511_v11 }
  0xd9   : > { %542 = vst [vmem:[%s528_s24] sm:$0xff] %v541_v12 }
  0xda   : > { %544 = vst [vmem:[%s528_s24 + $0x8] sm:$0xff] %v543_v13 }
  0xde   : > { %v545_v14 = vld [vmem:[%s324_s19 + $0x10] sm:$0xff] }
  0xdf   : > { %v547_v15 = vld [vmem:[%s324_s19 + $0x18] sm:$0xff]  ;;  %546 = vst [vmem:[%s528_s24 + $0x20] sm:$0xff] %v545_v14 }
  0xe0   : > { %548 = vst [vmem:[%s528_s24 + $0x28] sm:$0xff] %v547_v15 }
  0xe1 PF: > { %s13_s16 = sadd.s32 1, %s835_s16   ;;  %s997_s12 = smov %s823_s13 }
  0xe2   : > { %p10_p12 = scmp.ge.s32.totalorder %s13_s16, 4   ;;  %s998_s13 = smov %s897_s22 }
  0xe3   : > { %s999_s14 = smov %s831_s15  ;;  %s1000_s15 = smov %s1002_s17 }
  0xe4   :  { %12 = sbr.rel (!%p10_p12) target bundleno = 3 (0x3), region = 142 }

</bundles_post_ra>
